<compile_context>
chip_gen: v7x
topology: tpu7x:2x2x1
jax: 0.10.0
libtpu: 0.0.40
codegen_flags: <defaults>
</compile_context>

<pallas_src>
import functools

import jax
import jax.numpy as jnp
from jax import lax
from jax.experimental import pallas as pl
from jax.experimental.pallas import tpu as pltpu


# ----------------------------- small helpers --------------------------------

def _round_up(x, m):
    return ((x + m - 1) // m) * m


def _cdiv(a, b):
    return (a + b - 1) // b


def _tpu_generation():
    """Best-effort TPU generation detection ('v5e' | 'v6e' | 'v7x' | None)."""
    try:
        kind = jax.devices()[0].device_kind.lower()
    except Exception:
        return None
    if "v6" in kind:
        return "v6e"
    if "v7" in kind or "7x" in kind:
        return "v7x"
    if "v5" in kind:
        return "v5e"
    return None


def _vmem_estimate(tm, th, D, in_isz, out_isz, elem_isz):
    """Rough VMEM residency (bytes) for one grid step (double-buffered blocks)."""
    w = 2 * 2 * (D * th) * in_isz          # w1 + w2 slices, double-buffered
    xb = 2 * tm * D * in_isz               # x tile
    ob = 2 * tm * D * out_isz              # out tile
    bias = 2 * (th * elem_isz + D * 4)
    inter = tm * th * (4 + in_isz)         # f32 dot result + gelu'd hidden tile
    acc = tm * D * 4                       # worst case: f32 scratch accumulator
    return w + xb + ob + bias + inter + acc


def _pick_th(H, tm, D, in_isz, out_isz, elem_isz, budget, target=None):
    """Largest divisor of H fitting the VMEM budget; prefer 256-, then 128-alignment."""
    divs = [d for d in range(H, 0, -1) if H % d == 0]
    if target is not None:
        capped = [d for d in divs if d <= target]
        divs = capped if capped else [divs[-1]]
    for align in (256, 128, 8, 1):
        for d in divs:
            if (d == H or d % align == 0) and _vmem_estimate(
                    tm, d, D, in_isz, out_isz, elem_isz) <= budget:
                return d
    return divs[-1]


def _gelu(x, approx):
    if approx:
        # tanh-approx GELU: transcendental goes to the EUP slot (VALU stays light).
        return jax.nn.gelu(x, approximate=True)
    # Exact erf form (torch.nn.GELU() default) — heavier on the VALU.
    return 0.5 * x * (1.0 + lax.erf(x * jnp.asarray(0.7071067811865476, x.dtype)))


# --------------------------------- kernel -----------------------------------

def _mlp_kernel(x_ref, w1_ref, b1_ref, w2_ref, b2_ref, o_ref, *scratch,
                acc_mode, approx_gelu):
    # x_ref:  (tm, D)   compute dtype (bf16)        token tile
    # w1_ref: (D, th)   compute dtype               c_fc weight slice (contiguous block)
    # b1_ref: (1, th)   elementwise dtype           c_fc bias slice
    # w2_ref: (th, D)   compute dtype               c_proj weight slice
    # b2_ref: (1, D)    f32                         c_proj bias
    # o_ref:  (tm, D)   output dtype
    # scratch: optional (tm, D) f32 accumulator (only when acc_mode == "scratch")

    # First matmul on the MXU (f32 accumulate).
    h = jnp.dot(x_ref[...], w1_ref[...], preferred_element_type=jnp.float32)
    # Bias + GELU in b1's dtype (bf16 on v6e/v7x halves VALU vreg-ops; f32 on v5e).
    h = h.astype(b1_ref.dtype) + b1_ref[...]
    h = _gelu(h, approx_gelu)
    # Second (H-tiled) matmul, f32 accumulate.
    partial = jnp.dot(h.astype(w2_ref.dtype), w2_ref[...],
                      preferred_element_type=jnp.float32)

    if acc_mode == "none":
        # Single hidden step: no reduction axis, no accumulator needed.
        o_ref[...] = (partial + b2_ref[...]).astype(o_ref.dtype)
        return

    acc_ref = o_ref if acc_mode == "out" else scratch[0]
    j = pl.program_id(1)

    @pl.when(j == 0)
    def _init():
        acc_ref[...] = jnp.zeros_like(acc_ref)

    acc_ref[...] += partial

    @pl.when(j == pl.num_programs(1) - 1)
    def _finalize():
        # TODO(synk): dropout is identity (inference/eval mode); training-mode dropout
        # would use pltpu.prng_seed + pltpu.prng_random_bits masking here.
        if acc_mode == "out":
            o_ref[...] += b2_ref[...]
        else:
            o_ref[...] = (acc_ref[...] + b2_ref[...]).astype(o_ref.dtype)


# -------------------------------- wrapper -----------------------------------

@functools.partial(
    jax.jit,
    static_argnames=("tm", "th", "compute_dtype", "elem_dtype", "approx_gelu"),
)
def mlp_pallas(x, w1, b1, w2, b2, *, tm=None, th=None,
               compute_dtype=jnp.bfloat16, elem_dtype=None, approx_gelu=True):
    """x: (B, T, D). w1: (D, 4D) (c_fc.weight.T), b1: (4D,), w2: (4D, D), b2: (D,)."""
    B, T, D = x.shape
    H = w1.shape[1]
    M = B * T
    out_dtype = x.dtype

    gen = _tpu_generation()
    # Per-generation defaults (weight-streaming roofline vs. VMEM capacity).
    if gen == "v6e":
        tm_target, vmem_limit = 1024, 96 * 1024 * 1024
    elif gen == "v7x":
        tm_target, vmem_limit = 512, 56 * 1024 * 1024   # 64 MiB/TC physical
    elif gen == "v5e":
        tm_target, vmem_limit = 256, 96 * 1024 * 1024
    else:
        tm_target, vmem_limit = 256, 48 * 1024 * 1024
    if tm is not None:
        tm_target = tm

    if elem_dtype is None:
        # bf16 VPU exists on v6e/v7x; keep f32 elementwise on v5e/unknown.
        elem_dtype = jnp.bfloat16 if gen in ("v6e", "v7x") else jnp.float32

    # Token tiling: minimal padding (<= 8 dead rows per tile) and >= 2 tiles on
    # v7x so both TensorCores get work on the "parallel" axis.
    n_tiles = max(1, _cdiv(M, tm_target))
    if gen == "v7x" and n_tiles == 1 and M >= 16:
        n_tiles = 2
    tm_eff = _round_up(_cdiv(M, n_tiles), 8)
    M_pad = n_tiles * tm_eff

    in_isz = jnp.dtype(compute_dtype).itemsize
    out_isz = jnp.dtype(out_dtype).itemsize
    elem_isz = jnp.dtype(elem_dtype).itemsize
    budget = int(0.8 * vmem_limit)
    th_eff = _pick_th(H, tm_eff, D, in_isz, out_isz, elem_isz, budget, target=th)
    n_h = H // th_eff

    # Accumulation strategy:
    #   "none"    : single hidden step (th == H)      -> no accumulator at all
    #   "out"     : f32 output                        -> accumulate into o_ref
    #   "scratch" : non-f32 output                    -> f32 VMEM scratch
    acc_mode = ("none" if n_h == 1
                else "out" if out_dtype == jnp.float32
                else "scratch")

    # --- operand preparation (bf16 MXU inputs, block-contiguous weight layout) ---
    x2 = x.reshape(M, D)
    if M_pad != M:
        x2 = jnp.pad(x2, ((0, M_pad - M), (0, 0)))
    x2c = x2.astype(compute_dtype)

    w1c = w1.astype(compute_dtype)
    w2c = w2.astype(compute_dtype)
    if n_h == 1:
        w1r = w1c.reshape(1, D, H)
    else:
        # (n_h, D, th): each hidden slice is one contiguous DMA (no D strided
        # descriptors per weight fetch).
        w1r = w1c.reshape(D, n_h, th_eff).transpose(1, 0, 2)
    w2r = w2c.reshape(n_h, th_eff, D)
    b1r = b1.astype(elem_dtype).reshape(n_h, 1, th_eff)
    b2r = b2.astype(jnp.float32).reshape(1, D)

    # Advisory cost: weights are re-streamed once per token tile.
    w_bytes = (w1c.size + w2c.size) * in_isz
    cost = pl.CostEstimate(
        flops=4 * M_pad * D * H + 10 * M_pad * H,
        transcendentals=M_pad * H,
        bytes_accessed=(M_pad * D * in_isz
                        + n_tiles * w_bytes
                        + n_tiles * (H * elem_isz + D * 4)
                        + M_pad * D * out_isz),
    )

    scratch_shapes = (
        [pltpu.VMEM((tm_eff, D), jnp.float32)] if acc_mode == "scratch" else []
    )

    kernel = functools.partial(_mlp_kernel, acc_mode=acc_mode,
                               approx_gelu=approx_gelu)

    out = pl.pallas_call(
        kernel,
        out_shape=jax.ShapeDtypeStruct((M_pad, D), out_dtype),
        grid_spec=pltpu.PrefetchScalarGridSpec(
            num_scalar_prefetch=0,
            grid=(n_tiles, n_h),
            in_specs=[
                pl.BlockSpec((tm_eff, D), lambda i, j: (i, 0)),          # x tile
                pl.BlockSpec((None, D, th_eff), lambda i, j: (j, 0, 0)),  # w1 slice
                pl.BlockSpec((None, 1, th_eff), lambda i, j: (j, 0, 0)),  # b1 slice
                pl.BlockSpec((None, th_eff, D), lambda i, j: (j, 0, 0)),  # w2 slice
                pl.BlockSpec((1, D), lambda i, j: (0, 0)),               # b2
            ],
            out_specs=pl.BlockSpec((tm_eff, D), lambda i, j: (i, 0)),
            scratch_shapes=scratch_shapes,
        ),
        compiler_params=pltpu.CompilerParams(
            dimension_semantics=("parallel", "arbitrary"),
            vmem_limit_bytes=vmem_limit,
        ),
        cost_estimate=cost,
    )(x2c, w1r, b1r, w2r, b2r)

    return out[:M].reshape(B, T, D)


# ------------------------------- references ---------------------------------

def mlp_reference(x, w1, b1, w2, b2, compute_dtype=None, elem_dtype=None,
                  approximate=True):
    """Pure-JAX reference. With compute_dtype/elem_dtype it mirrors the kernel's
    bf16 MXU inputs / elementwise dtype; otherwise full f32 (exact erf if
    approximate=False, matching torch.nn.GELU() default)."""
    if compute_dtype is not None:
        xc = x.astype(compute_dtype)
        w1c = w1.astype(compute_dtype)
        w2c = w2.astype(compute_dtype)
    else:
        xc, w1c, w2c = x, w1, w2
    h = jnp.dot(xc, w1c, preferred_element_type=jnp.float32)
    ed = elem_dtype if elem_dtype is not None else jnp.float32
    h = h.astype(ed) + b1.astype(ed)
    h = _gelu(h, approximate)
    h2 = h.astype(w2c.dtype) if compute_dtype is not None else h
    y = jnp.dot(h2, w2c, preferred_element_type=jnp.float32)
    return (y + b2.astype(jnp.float32)).astype(x.dtype)


# ----------------------------------- main ------------------------------------

if __name__ == "__main__":
    # config: n_embd=128 (lane-aligned), bias=True, dropout=0.0 (identity in eval).
    # Token count deliberately NOT a multiple of the default row tile to exercise
    # the low-padding tiling path.
    B, T, D = 2, 200, 128
    H = 4 * D

    key = jax.random.PRNGKey(0)
    kx, kw1, kb1, kw2, kb2 = jax.random.split(key, 5)

    x = jax.random.normal(kx, (B, T, D), dtype=jnp.float32)

    # Deterministic nn.Linear-style init: U(-1/sqrt(fan_in), 1/sqrt(fan_in)).
    lim1 = 1.0 / jnp.sqrt(jnp.float32(D))
    lim2 = 1.0 / jnp.sqrt(jnp.float32(H))
    w1 = jax.random.uniform(kw1, (D, H), jnp.float32, -lim1, lim1)   # c_fc.weight.T
    b1 = jax.random.uniform(kb1, (H,), jnp.float32, -lim1, lim1)     # c_fc.bias
    w2 = jax.random.uniform(kw2, (H, D), jnp.float32, -lim2, lim2)   # c_proj.weight.T
    b2 = jax.random.uniform(kb2, (D,), jnp.float32, -lim2, lim2)     # c_proj.bias

    gen = _tpu_generation()
    elem = jnp.bfloat16 if gen in ("v6e", "v7x") else jnp.float32

    # References: one mirroring the kernel's precision, one full-f32 exact-erf GELU.
    y_ref_mirror = mlp_reference(x, w1, b1, w2, b2, compute_dtype=jnp.bfloat16,
                                 elem_dtype=elem, approximate=True)
    y_ref_exact = mlp_reference(x, w1, b1, w2, b2, approximate=False)

    # 1) Auto-tiled path (small model -> th == H, no reduction axis).
    y = mlp_pallas(x, w1, b1, w2, b2)
    y = jax.block_until_ready(y)
    assert y.shape == (B, T, D)
    assert jnp.allclose(y, y_ref_mirror, atol=2e-2, rtol=2e-2), "mismatch vs mirrored ref"
    assert jnp.allclose(y, y_ref_exact, atol=6e-2, rtol=6e-2), "mismatch vs exact f32 ref"

    # 2) Forced hidden-tiled path (exercises the reduction axis, contiguous w1
    #    block layout, and accumulate-into-output for f32 outputs).
    y2 = mlp_pallas(x, w1, b1, w2, b2, tm=128, th=128)
    y2 = jax.block_until_ready(y2)
    assert y2.shape == (B, T, D)
    assert jnp.allclose(y2, y_ref_mirror, atol=2e-2, rtol=2e-2), "mismatch (tiled) vs mirrored ref"
    assert jnp.allclose(y2, y_ref_exact, atol=6e-2, rtol=6e-2), "mismatch (tiled) vs exact f32 ref"

    print("KERNEL_OK")
</pallas_src>

<mosaic_0001>
module attributes {stable_mosaic.version = 11 : i64} {
  func.func @_mlp_kernel(%arg0: i32, %arg1: i32, %arg2: memref<200x128xbf16, #tpu.memory_space<vmem>>, %arg3: memref<1x128x512xbf16, #tpu.memory_space<vmem>>, %arg4: memref<1x1x512xf32, #tpu.memory_space<vmem>>, %arg5: memref<1x512x128xbf16, #tpu.memory_space<vmem>>, %arg6: memref<1x128xf32, #tpu.memory_space<vmem>>, %arg7: memref<200x128xf32, #tpu.memory_space<vmem>>) attributes {dimension_semantics = [#tpu.dimension_semantics<parallel>, #tpu.dimension_semantics<arbitrary>], iteration_bounds = array<i64: 2, 1>, scalar_prefetch = 0 : i64, scratch_operands = 0 : i64, tpu.core_type = #tpu.core_type<tc>, window_params = [{transform_indices = @transform_0, window_bounds = array<i64: 200, 128>}, {transform_indices = @transform_1, window_bounds = array<i64: 1, 128, 512>}, {transform_indices = @transform_2, window_bounds = array<i64: 1, 1, 512>}, {transform_indices = @transform_3, window_bounds = array<i64: 1, 512, 128>}, {pipeline_mode = #tpu.pipeline_mode<synchronous>, transform_indices = @transform_4, window_bounds = array<i64: 1, 128>}, {transform_indices = @transform_5, window_bounds = array<i64: 200, 128>}]} {
    %c0 = arith.constant 0 : index
    %c0_0 = arith.constant 0 : index
    %0 = vector.load %arg2[%c0, %c0_0] : memref<200x128xbf16, #tpu.memory_space<vmem>>, vector<200x128xbf16>
    %c0_1 = arith.constant 0 : index
    %c0_2 = arith.constant 0 : index
    %c0_3 = arith.constant 0 : index
    %1 = vector.load %arg3[%c0_1, %c0_2, %c0_3] : memref<1x128x512xbf16, #tpu.memory_space<vmem>>, vector<1x128x512xbf16>
    %2 = vector.shape_cast %1 : vector<1x128x512xbf16> to vector<128x512xbf16>
    %cst = arith.constant dense<0.000000e+00> : vector<200x512xf32>
    %3 = tpu.matmul %0, %2, %cst {dimension_numbers = #tpu.dot_dimension_numbers<[1], [0], [0], [1], [0, 0, 1, 1], [], []>} : vector<200x128xbf16>, vector<128x512xbf16>, vector<200x512xf32> -> vector<200x512xf32>
    %c0_4 = arith.constant 0 : index
    %c0_5 = arith.constant 0 : index
    %c0_6 = arith.constant 0 : index
    %4 = vector.load %arg4[%c0_4, %c0_5, %c0_6] : memref<1x1x512xf32, #tpu.memory_space<vmem>>, vector<1x1x512xf32>
    %5 = vector.shape_cast %4 : vector<1x1x512xf32> to vector<1x512xf32>
    %6 = vector.broadcast %5 : vector<1x512xf32> to vector<200x512xf32>
    %7 = arith.addf %3, %6 : vector<200x512xf32>
    %8 = arith.mulf %7, %7 : vector<200x512xf32>
    %9 = arith.mulf %7, %8 : vector<200x512xf32>
    %cst_7 = arith.constant 4.471500e-02 : f32
    %10 = vector.broadcast %cst_7 : f32 to vector<200x512xf32>
    %11 = arith.mulf %10, %9 : vector<200x512xf32>
    %12 = arith.addf %7, %11 : vector<200x512xf32>
    %cst_8 = arith.constant 0.797884583 : f32
    %13 = vector.broadcast %cst_8 : f32 to vector<200x512xf32>
    %14 = arith.mulf %13, %12 : vector<200x512xf32>
    %15 = math.tanh %14 : vector<200x512xf32>
    %cst_9 = arith.constant 1.000000e+00 : f32
    %16 = vector.broadcast %cst_9 : f32 to vector<200x512xf32>
    %17 = arith.addf %16, %15 : vector<200x512xf32>
    %cst_10 = arith.constant 5.000000e-01 : f32
    %18 = vector.broadcast %cst_10 : f32 to vector<200x512xf32>
    %19 = arith.mulf %18, %17 : vector<200x512xf32>
    %20 = arith.mulf %7, %19 : vector<200x512xf32>
    %21 = arith.truncf %20 : vector<200x512xf32> to vector<200x512xbf16>
    %c0_11 = arith.constant 0 : index
    %c0_12 = arith.constant 0 : index
    %c0_13 = arith.constant 0 : index
    %22 = vector.load %arg5[%c0_11, %c0_12, %c0_13] : memref<1x512x128xbf16, #tpu.memory_space<vmem>>, vector<1x512x128xbf16>
    %23 = vector.shape_cast %22 : vector<1x512x128xbf16> to vector<512x128xbf16>
    %cst_14 = arith.constant dense<0.000000e+00> : vector<200x128xf32>
    %24 = tpu.matmul %21, %23, %cst_14 {dimension_numbers = #tpu.dot_dimension_numbers<[1], [0], [0], [1], [0, 0, 1, 1], [], []>} : vector<200x512xbf16>, vector<512x128xbf16>, vector<200x128xf32> -> vector<200x128xf32>
    %c0_15 = arith.constant 0 : index
    %c0_16 = arith.constant 0 : index
    %25 = vector.load %arg6[%c0_15, %c0_16] : memref<1x128xf32, #tpu.memory_space<vmem>>, vector<1x128xf32>
    %26 = vector.broadcast %25 : vector<1x128xf32> to vector<200x128xf32>
    %27 = arith.addf %24, %26 : vector<200x128xf32>
    %c0_17 = arith.constant 0 : index
    %c0_18 = arith.constant 0 : index
    %28 = vector.load %arg7[%c0_17, %c0_18] : memref<200x128xf32, #tpu.memory_space<vmem>>, vector<200x128xf32>
    tpu.vector_store %arg7[%c0_17, %c0_18], %27 {strides = array<i32>} : memref<200x128xf32, #tpu.memory_space<vmem>>, vector<200x128xf32>,
    return
  }
  func.func @transform_0(%arg0: i32, %arg1: i32) -> (i32, i32) {
    %c0_i32 = arith.constant 0 : i32
    %c0_i32_0 = arith.constant 0 : i32
    return %arg0, %c0_i32 : i32, i32
  }
  func.func @transform_1(%arg0: i32, %arg1: i32) -> (i32, i32, i32) {
    %c0_i32 = arith.constant 0 : i32
    %c0_i32_0 = arith.constant 0 : i32
    %c0_i32_1 = arith.constant 0 : i32
    return %arg1, %c0_i32, %c0_i32_0 : i32, i32, i32
  }
  func.func @transform_2(%arg0: i32, %arg1: i32) -> (i32, i32, i32) {
    %c0_i32 = arith.constant 0 : i32
    %c0_i32_0 = arith.constant 0 : i32
    %c0_i32_1 = arith.constant 0 : i32
    return %arg1, %c0_i32, %c0_i32_0 : i32, i32, i32
  }
  func.func @transform_3(%arg0: i32, %arg1: i32) -> (i32, i32, i32) {
    %c0_i32 = arith.constant 0 : i32
    %c0_i32_0 = arith.constant 0 : i32
    %c0_i32_1 = arith.constant 0 : i32
    return %arg1, %c0_i32, %c0_i32_0 : i32, i32, i32
  }
  func.func @transform_4(%arg0: i32, %arg1: i32) -> (i32, i32) {
    %c0_i32 = arith.constant 0 : i32
    %c0_i32_0 = arith.constant 0 : i32
    %c0_i32_1 = arith.constant 0 : i32
    return %c0_i32, %c0_i32_0 : i32, i32
  }
  func.func @transform_5(%arg0: i32, %arg1: i32) -> (i32, i32) {
    %c0_i32 = arith.constant 0 : i32
    %c0_i32_0 = arith.constant 0 : i32
    return %arg0, %c0_i32 : i32, i32
  }
}

</mosaic_0001>

<bundles_post_ra>
// kernel: mlp_pallas.1
= control target key start
LH: loop header
LB: loop body
LE: loop exit
PB: predicated region body
PF: predicated region fallthrough
CT: control target
= control target key end

     0   :  { %10 = vsyncpa [#allocation3], 0  ;;  %s5091_s0 = inlined_call_operand.vmem [shape: bf16[400,128], index: 0, kind: input, shape index: {}]   ;;  %s5092_s1 = inlined_call_operand.vmem [shape: bf16[1,128,512], index: 1, kind: input, shape index: {}]   ;;  %s5093_s2 = inlined_call_operand.vmem [shape: f32[1,1,512], index: 2, kind: input, shape index: {}]   ;;  %s5094_s3 = inlined_call_operand.vmem [shape: bf16[1,512,128], index: 3, kind: input, shape index: {}]   ;;  %s5095_s4 = inlined_call_operand.vmem [shape: f32[1,128], index: 4, kind: input, shape index: {}]   ;;  %s5096_s5 = inlined_call_operand.hbm [shape: f32[400,128], index: 5, kind: output, shape index: {}]  }
   0x1   :  { %12 = vsyncpa [#allocation3 + $0x1], 0  ;;  %s3319_s18 = smov 0   ;;  %s3321_s19 = smov 0  }
   0x2   :  { %s3323_s20 = smov 0   ;;  %s3325_s21 = smov 0  }
   0x3   :  { %s3327_s22 = smov 0   ;;  %s3329_s23 = smov 0  }
   0x4 LB: > { %s2574_s24 = sadd.s32 4294967295, %s3283_s23   ;;  %s2575_s25 = sadd.s32 4294967294, %s3283_s23   ;;  %s3283_s23 = sphi %s3329_s23, %s18_s23   ;;  %s3279_s22 = sphi %s3327_s22, %s5435_s22   ;;  %s3275_s21 = sphi %s3325_s21, %s5434_s21   ;;  %s3271_s20 = sphi %s3323_s20, %s5433_s20   ;;  %s3267_s19 = sphi %s3321_s19, %s5432_s19   ;;  %s3263_s18 = sphi %s3319_s18, %s5431_s18  }
   0x5   : > { %s30_s26 = sadd.s32 1, %s3279_s22  ;;  %s162_s27 = sadd.s32 1, %s3271_s20 }
   0x6   : > { %p32_p0 = scmp.ge.s32.totalorder %s30_s26, 2  ;;  %p172_p1 = scmp.ne.s32.totalorder %s3271_s20, %s3267_s19 }
   0x7   : > { %p173_p2 = scmp.eq.s32.totalorder %s2574_s24, 1  ;;  %p178_p3 = scmp.ne.s32.totalorder %s3267_s19, %s3263_s18 }
   0x8   : > { %s5437_s26 = smov (%p32_p0, %s30_s26), 0  ;;  %p179_p5 = scmp.eq.s32.totalorder %s2575_s25, 1 }
   0x9   : > { %p3359_p4 = por %p173_p2, %p172_p1  ;;  %s159_s29 = ssub.s32 %s3279_s22, %s5437_s26 }
   0xa   : > { %p2581_p6 = scmp.ge.s32.totalorder %s3283_s23, 1  ;;  %p160_p7 = scmp.eq.s32.totalorder %s159_s29, 0 }
   0xb   : > { %p3366_p8 = por %p179_p5, %p178_p3  ;;  %p232_p9 = scmp.lt.s32.totalorder %s3283_s23, 3 }
   0xc   : > { %s3372_s6 = scalar_select %p160_p7, %s3271_s20, %s162_s27  }
   0xd   : > { %p233_p10 = pnand %p2581_p6, %p232_p9 }
   0xf   : > { %236 = sbr.rel (%p233_p10) target bundleno = 782 (0x30e), region = 40 }
  0x16   : > { %v2912_v0 = vld [vmem:[%s5092_s1 + $0x4] ss:$16 sps:$4 sm:$0xff]   ;;  %v2914_v1 = vld [vmem:[%s5092_s1 + $0xc] ss:$16 sps:$4 sm:$0xff]   ;;  %v3285_v2 = vmov 0   ;;  %s274_s8 = smul.u32 25, %s3275_s21 }
  0x17   : > { %643 = vmatprep.mubr.bf16.mxu0 %v3285_v2  ;;  %804 = vmatprep.mubr.bf16.mxu1 %v3285_v2  ;;  %v2916_v3 = vld [vmem:[%s5092_s1] ss:$16 sps:$4 sm:$0xff]   ;;  %v2917_v4 = vld [vmem:[%s5092_s1 + $0x8] ss:$16 sps:$4 sm:$0xff]   ;;  %v2918_v5 = vld [vmem:[%s5092_s1 + $0x24] ss:$16 sps:$4 sm:$0xff]  }
  0x18   : > { %611 = vmatprep.subr.bf16.mxu0 %v2912_v0  ;;  %772 = vmatprep.subr.bf16.mxu1 %v2914_v1  ;;  %v2920_v6 = vld [vmem:[%s5092_s1 + $0x2c] ss:$16 sps:$4 sm:$0xff]   ;;  %v2922_v7 = vld [vmem:[%s5092_s1 + $0x20] ss:$16 sps:$4 sm:$0xff]   ;;  %v2923_v8 = vld [vmem:[%s5092_s1 + $0x28] ss:$16 sps:$4 sm:$0xff]  }
  0x19   : > { %612 = vmatpush1.bf16.msra.mxu0 %v2916_v3  ;;  %773 = vmatpush1.bf16.msra.mxu1 %v2917_v4  ;;  %v2924_v9 = vld [vmem:[%s5092_s1 + $0x44] ss:$16 sps:$4 sm:$0xff]   ;;  %v2926_v10 = vld [vmem:[%s5092_s1 + $0x4c] ss:$16 sps:$4 sm:$0xff]   ;;  %v2928_v11 = vld [vmem:[%s5092_s1 + $0x40] ss:$16 sps:$4 sm:$0xff]  }
  0x1a   : > { %613 = vmatprep.subr.bf16.mxu0 %v2918_v5  ;;  %774 = vmatprep.subr.bf16.mxu1 %v2920_v6  ;;  %v2929_v12 = vld [vmem:[%s5092_s1 + $0x48] ss:$16 sps:$4 sm:$0xff]   ;;  %v2930_v13 = vld [vmem:[%s5092_s1 + $0x64] ss:$16 sps:$4 sm:$0xff]   ;;  %v2932_v14 = vld [vmem:[%s5092_s1 + $0x6c] ss:$16 sps:$4 sm:$0xff]  }
  0x1b   : > { %p275_p11 = scmp.lt.s32.totalorder %s274_s8, 49  ;;  %v2934_v15 = vld [vmem:[%s5092_s1 + $0x60] ss:$16 sps:$4 sm:$0xff]   ;;  %v2935_v16 = vld [vmem:[%s5092_s1 + $0x68] ss:$16 sps:$4 sm:$0xff]   ;;  %s271_s13 = sand.u32 1, %s3267_s19  }
  0x1c   : > { %v2936_v17 = vld [vmem:[%s5092_s1 + $0x84] ss:$16 sps:$4 sm:$0xff]   ;;  %v2938_v18 = vld [vmem:[%s5092_s1 + $0x8c] ss:$16 sps:$4 sm:$0xff]   ;;  %v2940_v19 = vld [vmem:[%s5092_s1 + $0x80] ss:$16 sps:$4 sm:$0xff]  }
  0x1d   : > { %614 = vmatpush1.bf16.msra.mxu0 %v2922_v7  ;;  %775 = vmatpush1.bf16.msra.mxu1 %v2923_v8  ;;  %s5439_s8 = smov (!%p275_p11, %s274_s8), 49  ;;  %v2941_v20 = vld [vmem:[%s5092_s1 + $0x88] ss:$16 sps:$4 sm:$0xff]   ;;  %v2942_v21 = vld [vmem:[%s5092_s1 + $0xa4] ss:$16 sps:$4 sm:$0xff]   ;;  %s2853_s16 = smul.u32 200, %s271_s13 }
  0x1e   : > { %615 = vmatprep.subr.bf16.mxu0 %v2924_v9  ;;  %776 = vmatprep.subr.bf16.mxu1 %v2926_v10  ;;  %v2944_v22 = vld [vmem:[%s5092_s1 + $0xac] ss:$16 sps:$4 sm:$0xff]   ;;  %s2582_s9 = sshll.u32 %s5439_s8, 2  ;;  %v2946_v23 = vld [vmem:[%s5092_s1 + $0xa0] ss:$16 sps:$4 sm:$0xff]   ;;  %s3286_s10 = smov [#allocation2]  }
  0x1f   : > { %v2947_v24 = vld [vmem:[%s5092_s1 + $0xa8] ss:$16 sps:$4 sm:$0xff]   ;;  %v2948_v25 = vld [vmem:[%s5092_s1 + $0xc4] ss:$16 sps:$4 sm:$0xff]   ;;  %s3455_s24 = scalar_lea.vmem %s5091_s0, %s2582_s9  ;;  %v2950_v26 = vld [vmem:[%s5092_s1 + $0xcc] ss:$16 sps:$4 sm:$0xff]  }
  0x20   : > { %v2952_v27 = vld [vmem:[%s5092_s1 + $0xc0] ss:$16 sps:$4 sm:$0xff]   ;;  %v2953_v28 = vld [vmem:[%s5092_s1 + $0xc8] ss:$16 sps:$4 sm:$0xff]   ;;  %v2954_v29 = vld [vmem:[%s5092_s1 + $0xe4] ss:$16 sps:$4 sm:$0xff]  }
  0x21   : > { %616 = vmatpush1.bf16.msra.mxu0 %v2928_v11  ;;  %777 = vmatpush1.bf16.msra.mxu1 %v2929_v12  ;;  %v2956_v30 = vld [vmem:[%s5092_s1 + $0xec] ss:$16 sps:$4 sm:$0xff]   ;;  %v2958_v31 = vld [vmem:[%s5092_s1 + $0xe0] ss:$16 sps:$4 sm:$0xff]   ;;  %v2959_v32 = vld [vmem:[%s5092_s1 + $0xe8] ss:$16 sps:$4 sm:$0xff]  }
  0x22   : > { %617 = vmatprep.subr.bf16.mxu0 %v2930_v13  ;;  %778 = vmatprep.subr.bf16.mxu1 %v2932_v14  ;;  %v2960_v33 = vld [vmem:[%s3455_s24] sm:$0xff]   ;;  %v2961_v37 = vld [vmem:[%s3455_s24 + $0x8] sm:$0xff]   ;;  %v2981_v43 = vld [vmem:[%s5094_s3 + $0x50] sm:$0xff]   ;;  %v355_v14 = vlaneseq  ;;  %s4984_s17 = scalar_lea.vmem [#allocation2], %s2853_s16  ;;  %s3209_s11 = sshll.u32 %s3286_s10, 4  ;;  %s3210_s11 = int_to_ptr.vmem [resolvable:$false] %s3209_s11 }
  0x23   : > { %v2973_v34 = vld [vmem:[%s5094_s3 + $0x40] sm:$0xff]   ;;  %v2977_v39 = vld [vmem:[%s5094_s3 + $0x48] sm:$0xff]   ;;  %v2982_v44 = vld [vmem:[%s5094_s3 + $0x10] sm:$0xff]   ;;  %s2459_s8 = sshll.u32 %s4984_s17, 4  ;;  %s3211_s9 = scalar_lea.vmem %s3210_s11, 6400  ;;  %s5035_s8 = int_to_ptr.vmem [resolvable:$true] %s2459_s8 }
  0x24   : > { %v2974_v35 = vld [vmem:[%s5094_s3] sm:$0xff]   ;;  %v2978_v40 = vld [vmem:[%s5094_s3 + $0x8] sm:$0xff]   ;;  %v2983_v45 = vld [vmem:[%s5094_s3 + $0xd0] sm:$0xff]   ;;  %s3205_s7 = scalar_lea.vmem %s5035_s8, 3200  ;;  %p3212_p1 = scmp.lt.s32.totalorder %s5035_s8, %s3210_s11 }
  0x25   : > { %618 = vmatpush1.bf16.msra.mxu0 %v2934_v15  ;;  %779 = vmatpush1.bf16.msra.mxu1 %v2935_v16  ;;  %v2975_v36 = vld [vmem:[%s5094_s3 + $0xc0] sm:$0xff]   ;;  %v2979_v41 = vld [vmem:[%s5094_s3 + $0xc8] sm:$0xff]   ;;  %v2962_v46 = vld [vmem:[%s3455_s24 + $0x10] sm:$0xff]   ;;  %v356_v15 = vshrl.u32 %v355_v14, 7  ;;  %p3206_p12 = scmp.ne.s32.totalorder %s5035_s8, %s3205_s7  ;;  %p3213_p2 = scmp.lt.s32.totalorder %s3211_s9, %s3205_s7 }
  0x26   : > { %619 = vmatprep.subr.bf16.mxu0 %v2936_v17  ;;  %780 = vmatprep.subr.bf16.mxu1 %v2938_v18  ;;  %v2976_v38 = vld [vmem:[%s5094_s3 + $0x80] sm:$0xff]   ;;  %v2980_v42 = vld [vmem:[%s5094_s3 + $0x88] sm:$0xff]   ;;  %v2984_v47 = vld [vmem:[%s5094_s3 + $0x90] sm:$0xff]  }
  0x27   : > { %v2985_v48 = vld [vmem:[%s5094_s3 + $0x58] sm:$0xff]   ;;  %v2989_v52 = vld [vmem:[%s5094_s3 + $0x60] sm:$0xff]   ;;  %v2993_v57 = vld [vmem:[%s5094_s3 + $0x68] sm:$0xff]   ;;  %v357_v16 = vsub.s32 0, %v356_v15  ;;  %v365_v17 = vsub.s32 2, %v356_v15  ;;  %p3207_p13 = pnand %p3206_p12, %p3359_p4  ;;  %p3214_p3 = por %p3213_p2, %p3212_p1 }
  0x28   : > { %v2986_v49 = vld [vmem:[%s5094_s3 + $0x18] sm:$0xff]   ;;  %v2990_v53 = vld [vmem:[%s5094_s3 + $0x20] sm:$0xff]   ;;  %v2994_v58 = vld [vmem:[%s5094_s3 + $0x28] sm:$0xff]  }
  0x29   : > { %620 = vmatpush1.bf16.msra.mxu0 %v2940_v19  ;;  %781 = vmatpush1.bf16.msra.mxu1 %v2941_v20  ;;  %v2987_v50 = vld [vmem:[%s5094_s3 + $0xd8] sm:$0xff]   ;;  %v2991_v54 = vld [vmem:[%s5094_s3 + $0xe0] sm:$0xff]   ;;  %v2995_v59 = vld [vmem:[%s5094_s3 + $0xe8] sm:$0xff]   ;;  %v361_v19 = vsub.s32 1, %v356_v15  ;;  %v369_v20 = vsub.s32 3, %v356_v15  ;;  %p3208_p0 = pneg %p3207_p13 }
  0x2a   : > { %621 = vmatprep.subr.bf16.mxu0 %v2942_v21  ;;  %782 = vmatprep.subr.bf16.mxu1 %v2944_v22  ;;  %v2988_v51 = vld [vmem:[%s5094_s3 + $0x98] sm:$0xff]   ;;  %v2992_v56 = vld [vmem:[%s5094_s3 + $0xa0] sm:$0xff]   ;;  %v2996_v60 = vld [vmem:[%s5094_s3 + $0xa8] sm:$0xff]  }
  0x2b   : > { %v2963_v55 = vld [vmem:[%s3455_s24 + $0x18] sm:$0xff]   ;;  %v2964_v61 = vld [vmem:[%s3455_s24 + $0x20] sm:$0xff]   ;;  %v2965_v62 = vld [vmem:[%s3455_s24 + $0x28] sm:$0xff]   ;;  %p3215_p5 = pnand %p3214_p3, %p3208_p0 }
  0x2c   : > { %v2966_v63 = vld [vmem:[%s3455_s24 + $0x30] sm:$0xff]   ;;  %v2967_v0 = vld [vmem:[%s3455_s24 + $0x38] sm:$0xff]   ;;  %v2968_v1 = vld [vmem:[%s3455_s24 + $0x40] sm:$0xff]  }
  0x2d   : > { %622 = vmatpush1.bf16.msra.mxu0 %v2946_v23  ;;  %783 = vmatpush1.bf16.msra.mxu1 %v2947_v24  ;;  %v2969_v3 = vld [vmem:[%s3455_s24 + $0x48] sm:$0xff]   ;;  %v2970_v4 = vld [vmem:[%s3455_s24 + $0x50] sm:$0xff]   ;;  %v2971_v5 = vld [vmem:[%s3455_s24 + $0x58] sm:$0xff]  }
  0x2e   : > { %623 = vmatprep.subr.bf16.mxu0 %v2948_v25  ;;  %784 = vmatprep.subr.bf16.mxu1 %v2950_v26  ;;  %v2972_v6 = vld [vmem:[%s3455_s24 + $0x60] ss:$0 sps:$4 sm:$0xff]   ;;  %v2997_v7 = vld [vmem:[%s5094_s3 + $0x70] sm:$0xff]   ;;  %v3001_v10 = vld [vmem:[%s5094_s3 + $0x78] sm:$0xff]   ;;  %s2664_s24 = smul.u32 3200, %s3275_s21  ;;  %s5045_s21 = scalar_lea.sflag [#allocation3], %s271_s13 }
  0x2f   : > { %v2998_v8 = vld [vmem:[%s5094_s3 + $0x30] sm:$0xff]   ;;  %v3003_v11 = vld [vmem:[%s5094_s3 + $0xf8] sm:$0xff]   ;;  %v353_v18 = vld [vmem:[%s5093_s2] sm:$0xf] }
  0x30   : > { %v2999_v9 = vld [vmem:[%s5094_s3 + $0xf0] sm:$0xff]   ;;  %v3002_v12 = vld [vmem:[%s5094_s3 + $0x38] sm:$0xff]   ;;  %v3614_v21 = vrot.slane %v353_v18, %v357_v16  ;;  %v3616_v22 = vrot.slane %v353_v18, %v365_v17  ;;  %v3618_v23 = vrot.slane %v353_v18, %v361_v19  ;;  %v3620_v24 = vrot.slane %v353_v18, %v369_v20  ;;  %s5040_s29 = scalar_lea.hbm %s5096_s5, %s2664_s24 }
  0x31   : > { %624 = vmatpush1.bf16.msra.mxu0 %v2952_v27  ;;  %785 = vmatpush1.bf16.msra.mxu1 %v2953_v28  ;;  %v3004_v13 = vld [vmem:[%s5094_s3 + $0xb8] sm:$0xff]  }
  0x32   : > { %625 = vmatprep.subr.bf16.mxu0 %v2954_v29  ;;  %786 = vmatprep.subr.bf16.mxu1 %v2956_v30 }
  0x35   : > { %626 = vmatpush1.bf16.msra.mxu0 %v2958_v31  ;;  %787 = vmatpush1.bf16.msra.mxu1 %v2959_v32 }
  0x36   : > { %2665 = vmatprep.subr.bf16.mxu0 %v2973_v34  ;;  %2759 = vmatprep.subr.bf16.mxu1 %v2975_v36 }
  0x38   : > { %644 = vmatmul.mubr.bf16.vlgmr.msra.gmra.mrb[0].mxu0 %v2960_v33  ;;  %805 = vmatmul.mubr.bf16.vlgmr.msra.gmra.mrb[0].mxu1 %v2960_v33 }
  0x39   : > { %653 = vmatprep.mubr.bf16.mxu0 %v3285_v2  ;;  %814 = vmatprep.mubr.bf16.mxu1 %v3285_v2 }
  0x3a   : > { %2666 = vmatpush3.bf16.msra.mxu0 %v2974_v35  ;;  %2760 = vmatpush3.bf16.msra.mxu1 %v2976_v38 }
  0x3b   : > { %2667 = vmatprep.subr.bf16.mxu0 %v2977_v39  ;;  %2761 = vmatprep.subr.bf16.mxu1 %v2979_v41 }
  0x3e   : > { %2668 = vmatpush3.bf16.msra.mxu0 %v2978_v40  ;;  %2762 = vmatpush3.bf16.msra.mxu1 %v2980_v42 }
  0x3f   : > { %2669 = vmatprep.subr.bf16.mxu0 %v2981_v43  ;;  %2763 = vmatprep.subr.bf16.mxu1 %v2983_v45 }
  0x40   : > { %654 = vmatmul.mubr.bf16.gmra.mrb[4].mxu0 %v2961_v37  ;;  %815 = vmatmul.mubr.bf16.gmra.mrb[4].mxu1 %v2961_v37 }
  0x41   : > { %663 = vmatprep.mubr.bf16.mxu0 %v3285_v2  ;;  %824 = vmatprep.mubr.bf16.mxu1 %v3285_v2 }
  0x42   : > { %2670 = vmatpush3.bf16.msra.mxu0 %v2982_v44  ;;  %2764 = vmatpush3.bf16.msra.mxu1 %v2984_v47 }
  0x43   : > { %2671 = vmatprep.subr.bf16.mxu0 %v2985_v48  ;;  %2765 = vmatprep.subr.bf16.mxu1 %v2987_v50 }
  0x46   : > { %2672 = vmatpush3.bf16.msra.mxu0 %v2986_v49  ;;  %2766 = vmatpush3.bf16.msra.mxu1 %v2988_v51 }
  0x47   : > { %2673 = vmatprep.subr.bf16.mxu0 %v2989_v52  ;;  %2767 = vmatprep.subr.bf16.mxu1 %v2991_v54 }
  0x48   : > { %664 = vmatmul.mubr.bf16.gmra.mrb[8].mxu0 %v2962_v46  ;;  %825 = vmatmul.mubr.bf16.gmra.mrb[8].mxu1 %v2962_v46 }
  0x49   : > { %673 = vmatprep.mubr.bf16.mxu0 %v3285_v2  ;;  %834 = vmatprep.mubr.bf16.mxu1 %v3285_v2 }
  0x4a   : > { %2674 = vmatpush3.bf16.msra.mxu0 %v2990_v53  ;;  %2768 = vmatpush3.bf16.msra.mxu1 %v2992_v56 }
  0x4b   : > { %2675 = vmatprep.subr.bf16.mxu0 %v2993_v57  ;;  %2769 = vmatprep.subr.bf16.mxu1 %v2995_v59 }
  0x4e   : > { %2676 = vmatpush3.bf16.msra.mxu0 %v2994_v58  ;;  %2770 = vmatpush3.bf16.msra.mxu1 %v2996_v60 }
  0x4f   : > { %2677 = vmatprep.subr.bf16.mxu0 %v2997_v7  ;;  %2771 = vmatprep.subr.bf16.mxu1 %v2999_v9 }
  0x50   : > { %674 = vmatmul.mubr.bf16.gmra.mrb[12].mxu0 %v2963_v55  ;;  %835 = vmatmul.mubr.bf16.gmra.mrb[12].mxu1 %v2963_v55 }
  0x51   : > { %683 = vmatprep.mubr.bf16.mxu0 %v3285_v2  ;;  %844 = vmatprep.mubr.bf16.mxu1 %v3285_v2 }
  0x52   : > { %2678 = vmatpush3.bf16.msra.mxu0 %v2998_v8 }
  0x53   : > { %2679 = vmatprep.subr.bf16.mxu0 %v3001_v10 }
  0x56   : > { %2680 = vmatpush3.bf16.msra.mxu0 %v3002_v12 }
  0x58   : > { %684 = vmatmul.mubr.bf16.gmra.mrb[16].mxu0 %v2964_v61  ;;  %845 = vmatmul.mubr.bf16.gmra.mrb[16].mxu1 %v2964_v61 }
  0x59   : > { %693 = vmatprep.mubr.bf16.mxu0 %v3285_v2  ;;  %854 = vmatprep.mubr.bf16.mxu1 %v3285_v2 }
  0x60   : > { %694 = vmatmul.mubr.bf16.gmra.mrb[20].mxu0 %v2965_v62  ;;  %855 = vmatmul.mubr.bf16.gmra.mrb[20].mxu1 %v2965_v62 }
  0x61   : > { %703 = vmatprep.mubr.bf16.mxu0 %v3285_v2  ;;  %864 = vmatprep.mubr.bf16.mxu1 %v3285_v2 }
  0x68   : > { %704 = vmatmul.mubr.bf16.gmra.mrb[24].mxu0 %v2966_v63  ;;  %865 = vmatmul.mubr.bf16.gmra.mrb[24].mxu1 %v2966_v63 }
  0x69   : > { %713 = vmatprep.mubr.bf16.mxu0 %v3285_v2  ;;  %874 = vmatprep.mubr.bf16.mxu1 %v3285_v2 }
  0x70   : > { %714 = vmatmul.mubr.bf16.gmra.mrb[28].mxu0 %v2967_v0  ;;  %875 = vmatmul.mubr.bf16.gmra.mrb[28].mxu1 %v2967_v0 }
  0x71   : > { %723 = vmatprep.mubr.bf16.mxu0 %v3285_v2  ;;  %884 = vmatprep.mubr.bf16.mxu1 %v3285_v2 }
  0x78   : > { %724 = vmatmul.mubr.bf16.gmra.mrb[32].mxu0 %v2968_v1  ;;  %885 = vmatmul.mubr.bf16.gmra.mrb[32].mxu1 %v2968_v1 }
  0x79   : > { %733 = vmatprep.mubr.bf16.mxu0 %v3285_v2  ;;  %894 = vmatprep.mubr.bf16.mxu1 %v3285_v2 }
  0x80   : > { %734 = vmatmul.mubr.bf16.gmra.mrb[36].mxu0 %v2969_v3  ;;  %895 = vmatmul.mubr.bf16.gmra.mrb[36].mxu1 %v2969_v3 }
  0x81   : > { %743 = vmatprep.mubr.bf16.mxu0 %v3285_v2  ;;  %904 = vmatprep.mubr.bf16.mxu1 %v3285_v2 }
  0x88   : > { %744 = vmatmul.mubr.bf16.gmra.mrb[40].mxu0 %v2970_v4  ;;  %905 = vmatmul.mubr.bf16.gmra.mrb[40].mxu1 %v2970_v4 }
  0x89   : > { %753 = vmatprep.mubr.bf16.mxu0 %v3285_v2  ;;  %914 = vmatprep.mubr.bf16.mxu1 %v3285_v2 }
  0x90   : > { %754 = vmatmul.mubr.bf16.gmra.mrb[44].mxu0 %v2971_v5  ;;  %915 = vmatmul.mubr.bf16.gmra.mrb[44].mxu1 %v2971_v5 }
  0x91   : > { %763 = vmatprep.mubr.bf16.mxu0 %v3285_v2  ;;  %924 = vmatprep.mubr.bf16.mxu1 %v3285_v2  ;;  %v3000_v2 = vld [vmem:[%s5094_s3 + $0xb0] sm:$0xff]  }
  0x92   : > { %2772 = vmatpush3.bf16.msra.mxu1 %v3000_v2 }
  0x93   : > { %2773 = vmatprep.subr.bf16.mxu1 %v3003_v11 }
  0x96   : > { %2774 = vmatpush3.bf16.msra.mxu1 %v3004_v13 }
  0x98   : > { %764 = vmatmul.mubr.bf16.gmra.mrb[48].mxu0 %v2972_v6  ;;  %925 = vmatmul.mubr.bf16.gmra.mrb[48].mxu1 %v2972_v6 }
 0x10b   : > { %v645_v25 = vpop.f32.mrb[0].mxu0  ;;  %v806_v26 = vpop.f32.mrb[0].mxu1 }
 0x10c   : > { %v3623_v27 = vadd.f32 %v645_v25, %v3614_v21  ;;  %v3626_v28 = vadd.f32 %v806_v26, %v3616_v22  ;;  %v647_v29 = vpop.f32.mrb[1].mxu0  ;;  %v808_v30 = vpop.f32.mrb[1].mxu1 }
 0x10d   : > { %v3629_v31 = vadd.f32 %v647_v29, %v3618_v23  ;;  %v3632_v32 = vadd.f32 %v808_v30, %v3620_v24  ;;  %v649_v33 = vpop.f32.mrb[2].mxu0  ;;  %v810_v34 = vpop.f32.mrb[2].mxu1 }
 0x10e   : > { %v933_v35 = vmul.f32 %v3623_v27, %v3623_v27  ;;  %v935_v36 = vmul.f32 %v3626_v28, %v3626_v28  ;;  %v3639_v37 = vadd.f32 %v649_v33, %v3614_v21  ;;  %v3642_v38 = vadd.f32 %v810_v34, %v3616_v22  ;;  %v651_v39 = vpop.f32.mrb[3].mxu0  ;;  %v812_v40 = vpop.f32.mrb[3].mxu1 }
 0x10f   : > { %v934_v41 = vmul.f32 %v3629_v31, %v3629_v31  ;;  %v936_v42 = vmul.f32 %v3632_v32, %v3632_v32  ;;  %v3649_v43 = vadd.f32 %v651_v39, %v3618_v23  ;;  %v3652_v44 = vadd.f32 %v812_v40, %v3620_v24 }
 0x110   : > { %v1033_v45 = vmul.f32 %v933_v35, %v3623_v27  ;;  %v1035_v46 = vmul.f32 %v935_v36, %v3626_v28  ;;  %v937_v47 = vmul.f32 %v3639_v37, %v3639_v37  ;;  %v939_v48 = vmul.f32 %v3642_v38, %v3642_v38 }
 0x111   : > { %v1034_v49 = vmul.f32 %v934_v41, %v3629_v31  ;;  %v1036_v50 = vmul.f32 %v936_v42, %v3632_v32  ;;  %v938_v51 = vmul.f32 %v3649_v43, %v3649_v43  ;;  %v940_v52 = vmul.f32 %v3652_v44, %v3652_v44 }
 0x112   : > { %v1133_v53 = vmul.f32 0.044715, %v1033_v45  ;;  %v1135_v54 = vmul.f32 0.044715, %v1035_v46  ;;  %v1037_v55 = vmul.f32 %v937_v47, %v3639_v37  ;;  %v1039_v56 = vmul.f32 %v939_v48, %v3642_v38 }
 0x113   : > { %v1134_v57 = vmul.f32 0.044715, %v1034_v49  ;;  %v1136_v58 = vmul.f32 0.044715, %v1036_v50  ;;  %v1038_v59 = vmul.f32 %v938_v51, %v3649_v43  ;;  %v1040_v60 = vmul.f32 %v940_v52, %v3652_v44  ;;  %v655_v61 = vpop.f32.mrb[4].mxu0  ;;  %v816_v62 = vpop.f32.mrb[4].mxu1 }
 0x114   : > { %v1233_v63 = vadd.f32 %v1133_v53, %v3623_v27  ;;  %v1235_v0 = vadd.f32 %v1135_v54, %v3626_v28  ;;  %v1137_v1 = vmul.f32 0.044715, %v1037_v55  ;;  %v1139_v3 = vmul.f32 0.044715, %v1039_v56  ;;  %v657_v4 = vpop.f32.mrb[5].mxu0  ;;  %v818_v5 = vpop.f32.mrb[5].mxu1 }
 0x115   : > { %v1234_v6 = vadd.f32 %v1134_v57, %v3629_v31  ;;  %v1236_v7 = vadd.f32 %v1136_v58, %v3632_v32  ;;  %v1138_v8 = vmul.f32 0.044715, %v1038_v59  ;;  %v1140_v9 = vmul.f32 0.044715, %v1040_v60  ;;  %v659_v2 = vpop.f32.mrb[6].mxu0  ;;  %v820_v10 = vpop.f32.mrb[6].mxu1 }
 0x116   : > { %v1333_v11 = vmul.f32 0.7978846, %v1233_v63  ;;  %v1335_v12 = vmul.f32 0.7978846, %v1235_v0  ;;  %v1237_v13 = vadd.f32 %v1137_v1, %v3639_v37  ;;  %v1239_v14 = vadd.f32 %v1139_v3, %v3642_v38  ;;  %v661_v15 = vpop.f32.mrb[7].mxu0  ;;  %v822_v16 = vpop.f32.mrb[7].mxu1 }
 0x117   : > { %v1334_v17 = vmul.f32 0.7978846, %v1234_v6  ;;  %v1336_v18 = vmul.f32 0.7978846, %v1236_v7  ;;  %v1238_v19 = vadd.f32 %v1138_v8, %v3649_v43  ;;  %v1240_v20 = vadd.f32 %v1140_v9, %v3652_v44 }
 0x118   : > { %3005 = vtanh.f32 %v1333_v11  ;;  %v1337_v25 = vmul.f32 0.7978846, %v1237_v13  ;;  %v1339_v26 = vmul.f32 0.7978846, %v1239_v14  ;;  %v3679_v29 = vadd.f32 %v655_v61, %v3614_v21 }
 0x119   : > { %3007 = vtanh.f32 %v1335_v12  ;;  %v1338_v30 = vmul.f32 0.7978846, %v1238_v19  ;;  %v1340_v33 = vmul.f32 0.7978846, %v1240_v20  ;;  %v3682_v34 = vadd.f32 %v816_v62, %v3616_v22 }
 0x11a   : > { %5165 = vst [vmem:[#allocation5_spill] sm:$0xff] %v3679_v29  ;;  %3009 = vtanh.f32 %v1334_v17  ;;  %v941_v35 = vmul.f32 %v3679_v29, %v3679_v29  ;;  %v3687_v36 = vadd.f32 %v657_v4, %v3618_v23  ;;  %v3690_v39 = vadd.f32 %v818_v5, %v3620_v24 }
 0x11b   : > { %5166 = vst [vmem:[#allocation6_spill] sm:$0xff] %v3682_v34  ;;  %3011 = vtanh.f32 %v1336_v18  ;;  %v943_v40 = vmul.f32 %v3682_v34, %v3682_v34  ;;  %v3695_v41 = vadd.f32 %v659_v2, %v3614_v21  ;;  %v3698_v42 = vadd.f32 %v820_v10, %v3616_v22  ;;  %v3700_v45 = vpop.f32.mrb[8].mxu0  ;;  %v3702_v46 = vpop.f32.mrb[8].mxu1 }
 0x11c   : > { %5167 = vst [vmem:[#allocation7_spill] sm:$0xff] %v3690_v39  ;;  %3013 = vtanh.f32 %v1337_v25  ;;  %v1041_v47 = vmul.f32 %v941_v35, %v3679_v29  ;;  %v942_v48 = vmul.f32 %v3687_v36, %v3687_v36  ;;  %v944_v49 = vmul.f32 %v3690_v39, %v3690_v39  ;;  %v3709_v50 = vpop.f32.mrb[9].mxu0  ;;  %v3711_v51 = vpop.f32.mrb[9].mxu1 }
 0x11d   : > { %5168 = vst [vmem:[#allocation8_spill] sm:$0xff] %v3695_v41  ;;  %5169 = vst [vmem:[#allocation9_spill] sm:$0xff] %v3698_v42  ;;  %3015 = vtanh.f32 %v1339_v26  ;;  %v1043_v52 = vmul.f32 %v943_v40, %v3682_v34  ;;  %v945_v53 = vmul.f32 %v3695_v41, %v3695_v41  ;;  %v947_v54 = vmul.f32 %v3698_v42, %v3698_v42  ;;  %v3718_v55 = vpop.f32.mrb[10].mxu0  ;;  %v3720_v56 = vpop.f32.mrb[10].mxu1 }
 0x11e   : > { %3017 = vtanh.f32 %v1338_v30  ;;  %v1141_v57 = vmul.f32 0.044715, %v1041_v47  ;;  %v1042_v58 = vmul.f32 %v942_v48, %v3687_v36  ;;  %v1044_v59 = vmul.f32 %v944_v49, %v3690_v39  ;;  %v3724_v60 = vpop.f32.mrb[11].mxu0  ;;  %v3726_v61 = vpop.f32.mrb[11].mxu1 }
 0x11f   : > { %3019 = vtanh.f32 %v1340_v33  ;;  %v1143_v62 = vmul.f32 0.044715, %v1043_v52  ;;  %v1045_v63 = vmul.f32 %v945_v53, %v3695_v41  ;;  %v1047_v0 = vmul.f32 %v947_v54, %v3698_v42 }
 0x120   : > { %v1241_v1 = vadd.f32 %v1141_v57, %v3679_v29  ;;  %v1142_v3 = vmul.f32 0.044715, %v1042_v58  ;;  %v1144_v4 = vmul.f32 0.044715, %v1044_v59  ;;  %v3732_v5 = vadd.f32 %v661_v15, %v3618_v23 }
 0x121   : > { %v1243_v6 = vadd.f32 %v1143_v62, %v3682_v34  ;;  %v1145_v7 = vmul.f32 0.044715, %v1045_v63  ;;  %v1147_v8 = vmul.f32 0.044715, %v1047_v0  ;;  %v3736_v9 = vadd.f32 %v822_v16, %v3620_v24 }
 0x122   : > { %5170 = vst [vmem:[#allocation10_spill] sm:$0xff] %v3732_v5  ;;  %v3006_v2 = vpop.eup %3005  ;;  %v1341_v10 = vmul.f32 0.7978846, %v1241_v1  ;;  %v1242_v11 = vadd.f32 %v1142_v3, %v3687_v36  ;;  %v1244_v12 = vadd.f32 %v1144_v4, %v3690_v39  ;;  %v946_v13 = vmul.f32 %v3732_v5, %v3732_v5 }
 0x123   : > { %5171 = vst [vmem:[#allocation11_spill] sm:$0xff] %v3736_v9  ;;  %v3008_v14 = vpop.eup %3007  ;;  %v1533_v17 = vadd.f32 1.0, %v3006_v2  ;;  %v1343_v15 = vmul.f32 0.7978846, %v1243_v6  ;;  %v1245_v18 = vadd.f32 %v1145_v7, %v3695_v41  ;;  %v1247_v19 = vadd.f32 %v1147_v8, %v3698_v42  ;;  %v3744_v20 = vpop.f32.mrb[12].mxu0 }
 0x124   : > { %v3746_v16 = vpop.f32.mrb[12].mxu1  ;;  %v3748_v25 = vpop.eup %3009  ;;  %v1535_v26 = vadd.f32 1.0, %v3008_v14  ;;  %3021 = vtanh.f32 %v1341_v10  ;;  %v1342_v30 = vmul.f32 0.7978846, %v1242_v11  ;;  %v1344_v33 = vmul.f32 0.7978846, %v1244_v12 }
 0x125   : > { %v3750_v35 = vpop.f32.mrb[13].mxu0  ;;  %v3752_v40 = vpop.eup %3011  ;;  %v1633_v47 = vmul.f32 0.5, %v1533_v17  ;;  %3023 = vtanh.f32 %v1343_v15  ;;  %v1345_v48 = vmul.f32 0.7978846, %v1245_v18  ;;  %v1347_v49 = vmul.f32 0.7978846, %v1247_v19 }
 0x126   : > { %v3754_v52 = vpop.f32.mrb[13].mxu1  ;;  %v3014_v53 = vpop.eup %3013  ;;  %v1635_v54 = vmul.f32 0.5, %v1535_v26  ;;  %3025 = vtanh.f32 %v1342_v30  ;;  %v1046_v57 = vmul.f32 %v946_v13, %v3732_v5  ;;  %v948_v58 = vmul.f32 %v3736_v9, %v3736_v9 }
 0x127   : > { %v3759_v59 = vpop.f32.mrb[14].mxu0  ;;  %v3761_v62 = vpop.f32.mrb[14].mxu1  ;;  %v3764_v0 = vmul.f32 %v1633_v47, %v3623_v27  ;;  %v1537_v1 = vadd.f32 1.0, %v3014_v53  ;;  %3027 = vtanh.f32 %v1344_v33  ;;  %v3768_v3 = vadd.f32 %v3700_v45, %v3614_v21 }
 0x128   : > { %v3016_v63 = vpop.eup %3015  ;;  %v3770_v4 = vpop.f32.mrb[15].mxu0  ;;  %v3777_v8 = vmul.f32 %v1635_v54, %v3626_v28  ;;  %3029 = vtanh.f32 %v1345_v48  ;;  %v1146_v10 = vmul.f32 0.044715, %v1046_v57  ;;  %v1048_v12 = vmul.f32 %v948_v58, %v3736_v9 }
 0x129   : > { %5172 = vst [vmem:[#allocation12_spill] sm:$0xff] %v3768_v3  ;;  %v3772_v6 = vpop.f32.mrb[15].mxu1  ;;  %v3774_v7 = vpop.eup %3017  ;;  %v1539_v2 = vadd.f32 1.0, %v3016_v63  ;;  %v1637_v11 = vmul.f32 0.5, %v1537_v1  ;;  %3031 = vtanh.f32 %v1347_v49  ;;  %v949_v45 = vmul.f32 %v3768_v3, %v3768_v3 }
 0x12a   : > { %v3779_v27 = vpop.eup %3019  ;;  %v1246_v14 = vadd.f32 %v1146_v10, %v3732_v5  ;;  %v3787_v17 = vadd.f32 %v3702_v46, %v3616_v22  ;;  %v3791_v28 = vadd.f32 %v3709_v50, %v3618_v23  ;;  %v1148_v18 = vmul.f32 0.044715, %v1048_v12 }
 0x12b   : > { %v1639_v13 = vmul.f32 0.5, %v1539_v2  ;;  %v3794_v15 = vmul.f32 %v1637_v11, %v3639_v37  ;;  %v1049_v19 = vmul.f32 %v949_v45, %v3768_v3  ;;  %v3799_v26 = vadd.f32 %v3711_v51, %v3620_v24  ;;  %v3801_v30 = vpop.f32.mrb[16].mxu0  ;;  %v3803_v33 = vpop.f32.mrb[16].mxu1 }
 0x12c   : > { %5173 = vst [vmem:[#allocation13_spill] sm:$0xff] %v3787_v17  ;;  %5174 = vst [vmem:[#allocation14_spill] sm:$0xff] %v3791_v28  ;;  %v1346_v47 = vmul.f32 0.7978846, %v1246_v14  ;;  %v951_v50 = vmul.f32 %v3787_v17, %v3787_v17  ;;  %v950_v37 = vmul.f32 %v3791_v28, %v3791_v28  ;;  %v3812_v48 = vpop.f32.mrb[17].mxu0  ;;  %v3814_v49 = vpop.f32.mrb[17].mxu1  ;;  %v1248_v53 = vadd.f32 %v1148_v18, %v3736_v9 }
 0x12d   : > { %5175 = vst [vmem:[#allocation15_spill] sm:$0xff] %v3799_v26  ;;  %v3806_v46 = vmul.f32 %v1639_v13, %v3642_v38  ;;  %v1149_v54 = vmul.f32 0.044715, %v1049_v19  ;;  %v952_v38 = vmul.f32 %v3799_v26, %v3799_v26  ;;  %v3821_v57 = vpop.f32.mrb[18].mxu0  ;;  %v3823_v58 = vpop.f32.mrb[18].mxu1  ;;  %v3841_v19 = vadd.f32 %v3718_v55, %v3614_v21 }
 0x12e   : > { %v3825_v63 = vpop.eup %3021  ;;  %3033 = vtanh.f32 %v1346_v47  ;;  %v1051_v2 = vmul.f32 %v951_v50, %v3787_v17  ;;  %v1050_v10 = vmul.f32 %v950_v37, %v3791_v28  ;;  %v3831_v11 = vpop.f32.mrb[19].mxu0  ;;  %v1348_v13 = vmul.f32 0.7978846, %v1248_v53 }
 0x12f   : > { %v3833_v12 = vpop.f32.mrb[19].mxu1  ;;  %v3835_v45 = vpop.eup %3023  ;;  %v1249_v14 = vadd.f32 %v1149_v54, %v3768_v3  ;;  %v1052_v18 = vmul.f32 %v952_v38, %v3799_v26  ;;  %5177 = vst [vmem:[#allocation17_spill] sm:$0xff] %v3841_v19  ;;  %v3847_v37 = vadd.f32 %v3720_v56, %v3616_v22  ;;  %v3851_v51 = vadd.f32 %v3724_v60, %v3618_v23 }
 0x130   : > { %5176 = vst [vmem:[#allocation16_spill] sm:$0xff] %v3835_v45  ;;  %v3843_v47 = vpop.eup %3025  ;;  %v1151_v50 = vmul.f32 0.044715, %v1051_v2  ;;  %v1150_v1 = vmul.f32 0.044715, %v1050_v10  ;;  %3035 = vtanh.f32 %v1348_v13  ;;  %v953_v55 = vmul.f32 %v3841_v19, %v3841_v19 }
 0x131   : > { %5178 = vst [vmem:[#allocation18_spill] sm:$0xff] %v3847_v37  ;;  %5179 = vst [vmem:[#allocation19_spill] sm:$0xff] %v3851_v51  ;;  %v3853_v53 = vpop.eup %3027  ;;  %v1349_v54 = vmul.f32 0.7978846, %v1249_v14  ;;  %v1152_v38 = vmul.f32 0.044715, %v1052_v18  ;;  %v955_v56 = vmul.f32 %v3847_v37, %v3847_v37  ;;  %v954_v60 = vmul.f32 %v3851_v51, %v3851_v51 }
 0x132   : > { %v3857_v3 = vpop.eup %3029  ;;  %v1251_v2 = vadd.f32 %v1151_v50, %v3787_v17  ;;  %v1250_v10 = vadd.f32 %v1150_v1, %v3791_v28  ;;  %v1053_v14 = vmul.f32 %v953_v55, %v3841_v19  ;;  %v3871_v18 = vadd.f32 %v3726_v61, %v3620_v24 }
 0x133   : > { %5180 = vst [vmem:[#allocation20_spill] sm:$0xff] %v3857_v3  ;;  %v3865_v42 = vpop.eup %3031  ;;  %3037 = vtanh.f32 %v1349_v54  ;;  %v1252_v13 = vadd.f32 %v1152_v38, %v3799_v26  ;;  %v3873_v50 = vpop.f32.mrb[20].mxu0  ;;  %v1055_v34 = vmul.f32 %v955_v56, %v3847_v37  ;;  %v1054_v41 = vmul.f32 %v954_v60, %v3851_v51 }
 0x134   : > { %5181 = vst [vmem:[#allocation21_spill] sm:$0xff] %v3865_v42  ;;  %5182 = vst [vmem:[#allocation22_spill] sm:$0xff] %v3871_v18  ;;  %v3875_v1 = vpop.f32.mrb[20].mxu1  ;;  %v1351_v17 = vmul.f32 0.7978846, %v1251_v2  ;;  %v3879_v29 = vpop.f32.mrb[21].mxu0  ;;  %v956_v61 = vmul.f32 %v3871_v18, %v3871_v18  ;;  %v3887_v26 = vadd.f32 %v3744_v20, %v3614_v21  ;;  %v3895_v60 = vadd.f32 %v3746_v16, %v3616_v22 }
 0x135   : > { %v1350_v28 = vmul.f32 0.7978846, %v1250_v10  ;;  %v3881_v54 = vpop.f32.mrb[21].mxu1  ;;  %v1352_v38 = vmul.f32 0.7978846, %v1252_v13  ;;  %v3889_v42 = vpop.f32.mrb[22].mxu0 }
 0x136   : > { %v1153_v55 = vmul.f32 0.044715, %v1053_v14  ;;  %5183 = vst [vmem:[#allocation23_spill] sm:$0xff] %v3887_v26  ;;  %v3891_v2 = vpop.f32.mrb[22].mxu1  ;;  %3039 = vtanh.f32 %v1351_v17  ;;  %v1155_v10 = vmul.f32 0.044715, %v1055_v34  ;;  %v1056_v20 = vmul.f32 %v956_v61, %v3871_v18 }
 0x137   : > { %v1154_v56 = vmul.f32 0.044715, %v1054_v41  ;;  %5184 = vst [vmem:[#allocation24_spill] sm:$0xff] %v3895_v60  ;;  %v3897_v13 = vpop.f32.mrb[23].mxu0  ;;  %v3899_v14 = vpop.f32.mrb[23].mxu1  ;;  %3041 = vtanh.f32 %v1350_v28  ;;  %v957_v9 = vmul.f32 %v3887_v26, %v3887_v26  ;;  %v959_v16 = vmul.f32 %v3895_v60, %v3895_v60 }
 0x138   : > { %v1253_v45 = vadd.f32 %v1153_v55, %v3841_v19  ;;  %v3905_v3 = vpop.eup %3033  ;;  %3043 = vtanh.f32 %v1352_v38  ;;  %v1255_v34 = vadd.f32 %v1155_v10, %v3847_v37  ;;  %v1156_v39 = vmul.f32 0.044715, %v1056_v20 }
 0x139   : > { %v1254_v41 = vadd.f32 %v1154_v56, %v3851_v51  ;;  %v1057_v28 = vmul.f32 %v957_v9, %v3887_v26  ;;  %v3914_v55 = vadd.f32 %v3750_v35, %v3618_v23  ;;  %v1059_v5 = vmul.f32 %v959_v16, %v3895_v60 }
 0x13a   : > { %v1353_v17 = vmul.f32 0.7978846, %v1253_v45  ;;  %v1355_v61 = vmul.f32 0.7978846, %v1255_v34  ;;  %v3919_v38 = vadd.f32 %v3754_v52, %v3620_v24  ;;  %v3921_v10 = vpop.eup %3035  ;;  %v1256_v45 = vadd.f32 %v1156_v39, %v3871_v18 }
 0x13b   : > { %5185 = vst [vmem:[#allocation25_spill] sm:$0xff] %v3914_v55  ;;  %v1354_v19 = vmul.f32 0.7978846, %v1254_v41  ;;  %v1157_v56 = vmul.f32 0.044715, %v1057_v28  ;;  %v958_v9 = vmul.f32 %v3914_v55, %v3914_v55  ;;  %v3926_v20 = vpop.f32.mrb[24].mxu0  ;;  %v3934_v52 = vadd.f32 %v3759_v59, %v3614_v21 }
 0x13c   : > { %5186 = vst [vmem:[#allocation26_spill] sm:$0xff] %v3919_v38  ;;  %3045 = vtanh.f32 %v1353_v17  ;;  %v3928_v35 = vpop.f32.mrb[24].mxu1  ;;  %v1159_v34 = vmul.f32 0.044715, %v1059_v5  ;;  %v960_v41 = vmul.f32 %v3919_v38, %v3919_v38  ;;  %v3936_v16 = vpop.f32.mrb[25].mxu0 }
 0x13d   : > { %3047 = vtanh.f32 %v1355_v61  ;;  %5187 = vst [vmem:[#allocation27_spill] sm:$0xff] %v3934_v52  ;;  %5188 = vst [vmem:[#allocation28_spill] sm:$0xff] %v3936_v16  ;;  %v3938_v39 = vpop.f32.mrb[25].mxu1  ;;  %v3940_v17 = vpop.eup %3037  ;;  %v1356_v28 = vmul.f32 0.7978846, %v1256_v45  ;;  %v1257_v37 = vadd.f32 %v1157_v56, %v3887_v26  ;;  %v1058_v61 = vmul.f32 %v958_v9, %v3914_v55 }
 0x13e   : > { %5189 = vst [vmem:[#allocation29_spill] sm:$0xff] %v3940_v17  ;;  %3049 = vtanh.f32 %v1354_v19  ;;  %v3944_v5 = vpop.f32.mrb[26].mxu0  ;;  %v3946_v18 = vpop.f32.mrb[26].mxu1  ;;  %v1259_v51 = vadd.f32 %v1159_v34, %v3895_v60  ;;  %v1060_v59 = vmul.f32 %v960_v41, %v3919_v38  ;;  %v961_v16 = vmul.f32 %v3934_v52, %v3934_v52 }
 0x13f   : > { %5190 = vst [vmem:[#allocation30_spill] sm:$0xff] %v3944_v5  ;;  %5191 = vst [vmem:[#allocation31_spill] sm:$0xff] %v3946_v18  ;;  %v3954_v17 = vadd.f32 %v3761_v62, %v3616_v22  ;;  %v3956_v19 = vpop.f32.mrb[27].mxu0  ;;  %v3958_v45 = vpop.f32.mrb[27].mxu1  ;;  %3051 = vtanh.f32 %v1356_v28  ;;  %v1357_v56 = vmul.f32 0.7978846, %v1257_v37  ;;  %v3962_v26 = vadd.f32 %v3770_v4, %v3618_v23 }
 0x140   : > { %v1158_v9 = vmul.f32 0.044715, %v1058_v61  ;;  %v3964_v34 = vpop.eup %3039  ;;  %v1359_v41 = vmul.f32 0.7978846, %v1259_v51  ;;  %v1160_v60 = vmul.f32 0.044715, %v1060_v59  ;;  %v1061_v18 = vmul.f32 %v961_v16, %v3934_v52 }
 0x141   : > { %5192 = vst [vmem:[#allocation32_spill] sm:$0xff] %v3954_v17  ;;  %5193 = vst [vmem:[#allocation33_spill] sm:$0xff] %v3962_v26  ;;  %v963_v62 = vmul.f32 %v3954_v17, %v3954_v17  ;;  %v3969_v5 = vpop.eup %3041  ;;  %3053 = vtanh.f32 %v1357_v56  ;;  %v962_v37 = vmul.f32 %v3962_v26, %v3962_v26  ;;  %v3976_v4 = vadd.f32 %v3772_v6, %v3620_v24 }
 0x142   : > { %5194 = vst [vmem:[#allocation34_spill] sm:$0xff] %v3964_v34  ;;  %5195 = vst [vmem:[#allocation35_spill] sm:$0xff] %v3969_v5  ;;  %v1258_v28 = vadd.f32 %v1158_v9, %v3914_v55  ;;  %v3978_v61 = vpop.eup %3043  ;;  %3055 = vtanh.f32 %v1359_v41  ;;  %v1260_v51 = vadd.f32 %v1160_v60, %v3919_v38  ;;  %v1161_v16 = vmul.f32 0.044715, %v1061_v18 }
 0x143   : > { %5196 = vst [vmem:[#allocation36_spill] sm:$0xff] %v3976_v4  ;;  %v1063_v59 = vmul.f32 %v963_v62, %v3954_v17  ;;  %v1062_v56 = vmul.f32 %v962_v37, %v3962_v26  ;;  %v964_v9 = vmul.f32 %v3976_v4, %v3976_v4  ;;  %v3987_v55 = vadd.f32 %v3801_v30, %v3614_v21  ;;  %v3989_v6 = vpop.f32.mrb[28].mxu0  ;;  %v3991_v5 = vpop.f32.mrb[28].mxu1 }
 0x144   : > { %v1358_v34 = vmul.f32 0.7978846, %v1258_v28  ;;  %5198 = vst [vmem:[#allocation38_spill] sm:$0xff] %v3989_v6  ;;  %5199 = vst [vmem:[#allocation39_spill] sm:$0xff] %v3991_v5  ;;  %v1360_v41 = vmul.f32 0.7978846, %v1260_v51  ;;  %v1261_v60 = vadd.f32 %v1161_v16, %v3934_v52  ;;  %v3996_v62 = vadd.f32 %v3803_v33, %v3616_v22 }
 0x145   : > { %5197 = vst [vmem:[#allocation37_spill] sm:$0xff] %v3987_v55  ;;  %v1163_v18 = vmul.f32 0.044715, %v1063_v59  ;;  %v3998_v28 = vpop.f32.mrb[29].mxu0  ;;  %v4000_v37 = vpop.f32.mrb[29].mxu1  ;;  %v1064_v6 = vmul.f32 %v964_v9, %v3976_v4  ;;  %v965_v51 = vmul.f32 %v3987_v55, %v3987_v55 }
 0x146   : > { %5200 = vst [vmem:[#allocation40_spill] sm:$0xff] %v3996_v62  ;;  %5201 = vst [vmem:[#allocation41_spill] sm:$0xff] %v3998_v28  ;;  %v4002_v38 = vpop.eup %3045  ;;  %3057 = vtanh.f32 %v1358_v34  ;;  %v1162_v30 = vmul.f32 0.044715, %v1062_v56  ;;  %v4007_v5 = vpop.f32.mrb[30].mxu0 }
 0x147   : > { %5202 = vst [vmem:[#allocation42_spill] sm:$0xff] %v4000_v37  ;;  %5203 = vst [vmem:[#allocation43_spill] sm:$0xff] %v4007_v5  ;;  %v4009_v16 = vpop.f32.mrb[30].mxu1  ;;  %v4011_v59 = vpop.eup %3047  ;;  %3059 = vtanh.f32 %v1360_v41  ;;  %v1361_v33 = vmul.f32 0.7978846, %v1261_v60  ;;  %v1263_v52 = vadd.f32 %v1163_v18, %v3954_v17  ;;  %v967_v37 = vmul.f32 %v3996_v62, %v3996_v62 }
 0x148   : > { %5204 = vst [vmem:[#allocation44_spill] sm:$0xff] %v4009_v16  ;;  %v4016_v34 = vpop.f32.mrb[31].mxu0  ;;  %v4018_v56 = vpop.f32.mrb[31].mxu1  ;;  %v1262_v28 = vadd.f32 %v1162_v30, %v3962_v26  ;;  %v1164_v5 = vmul.f32 0.044715, %v1064_v6  ;;  %v1065_v16 = vmul.f32 %v965_v51, %v3987_v55  ;;  %v4026_v41 = vadd.f32 %v3812_v48, %v3618_v23 }
 0x149   : > { %5205 = vst [vmem:[#allocation45_spill] sm:$0xff] %v4016_v34  ;;  %5206 = vst [vmem:[#allocation46_spill] sm:$0xff] %v4018_v56  ;;  %v4020_v9 = vpop.eup %3049  ;;  %3061 = vtanh.f32 %v1361_v33  ;;  %v1363_v60 = vmul.f32 0.7978846, %v1263_v52  ;;  %v1067_v18 = vmul.f32 %v967_v37, %v3996_v62  ;;  %v4031_v17 = vadd.f32 %v3814_v49, %v3620_v24 }
 0x14a   : > { %5207 = vst [vmem:[#allocation47_spill] sm:$0xff] %v4026_v41  ;;  %v4033_v56 = vpop.eup %3051  ;;  %v1362_v34 = vmul.f32 0.7978846, %v1262_v28  ;;  %v1264_v30 = vadd.f32 %v1164_v5, %v3976_v4  ;;  %v1165_v6 = vmul.f32 0.044715, %v1065_v16  ;;  %v966_v51 = vmul.f32 %v4026_v41, %v4026_v41 }
 0x14b   : > { %5208 = vst [vmem:[#allocation48_spill] sm:$0xff] %v4031_v17  ;;  %3063 = vtanh.f32 %v1363_v60  ;;  %v1167_v48 = vmul.f32 0.044715, %v1067_v18  ;;  %v968_v52 = vmul.f32 %v4031_v17, %v4031_v17  ;;  %v4042_v37 = vadd.f32 %v3821_v57, %v3614_v21  ;;  %v4044_v49 = vpop.eup %3053  ;;  %v4048_v16 = vpop.f32.mrb[32].mxu0 }
 0x14c   : > { %5210 = vst [vmem:[#allocation50_spill] sm:$0xff] %v4044_v49  ;;  %3065 = vtanh.f32 %v1362_v34  ;;  %v1364_v33 = vmul.f32 0.7978846, %v1264_v30  ;;  %v1265_v28 = vadd.f32 %v1165_v6, %v3987_v55  ;;  %v1066_v5 = vmul.f32 %v966_v51, %v4026_v41  ;;  %5211 = vst [vmem:[#allocation51_spill] sm:$0xff] %v4048_v16  ;;  %v4050_v4 = vpop.f32.mrb[32].mxu1  ;;  %v4052_v60 = vpop.eup %3055 }
 0x14d   : > { %5209 = vst [vmem:[#allocation49_spill] sm:$0xff] %v4042_v37  ;;  %5212 = vst [vmem:[#allocation52_spill] sm:$0xff] %v4050_v4  ;;  %v1267_v18 = vadd.f32 %v1167_v48, %v3996_v62  ;;  %v1068_v26 = vmul.f32 %v968_v52, %v4031_v17  ;;  %v969_v57 = vmul.f32 %v4042_v37, %v4042_v37  ;;  %v4062_v30 = vpop.f32.mrb[33].mxu0  ;;  %v4064_v6 = vpop.f32.mrb[33].mxu1 }
 0x14e   : > { %5213 = vst [vmem:[#allocation53_spill] sm:$0xff] %v4052_v60  ;;  %v4060_v34 = vadd.f32 %v3823_v58, %v3616_v22  ;;  %5215 = vst [vmem:[#allocation55_spill] sm:$0xff] %v4062_v30  ;;  %3067 = vtanh.f32 %v1364_v33  ;;  %v1365_v51 = vmul.f32 0.7978846, %v1265_v28  ;;  %v1166_v55 = vmul.f32 0.044715, %v1066_v5 }
 0x14f   : > { %5216 = vst [vmem:[#allocation56_spill] sm:$0xff] %v4064_v6  ;;  %v4068_v4 = vadd.f32 %v3831_v11, %v3618_v23  ;;  %v4070_v48 = vpop.f32.mrb[34].mxu0  ;;  %v4072_v52 = vpop.f32.mrb[34].mxu1  ;;  %v1367_v62 = vmul.f32 0.7978846, %v1267_v18  ;;  %v1069_v58 = vmul.f32 %v969_v57, %v4042_v37 }
 0x150   : > { %5214 = vst [vmem:[#allocation54_spill] sm:$0xff] %v4060_v34  ;;  %5217 = vst [vmem:[#allocation57_spill] sm:$0xff] %v4070_v48  ;;  %v1168_v16 = vmul.f32 0.044715, %v1068_v26  ;;  %v971_v30 = vmul.f32 %v4060_v34, %v4060_v34  ;;  %v4077_v60 = vpop.f32.mrb[35].mxu0  ;;  %v4079_v33 = vpop.f32.mrb[35].mxu1  ;;  %3069 = vtanh.f32 %v1365_v51  ;;  %v1266_v11 = vadd.f32 %v1166_v55, %v4026_v41 }
 0x151   : > { %5218 = vst [vmem:[#allocation58_spill] sm:$0xff] %v4072_v52  ;;  %5219 = vst [vmem:[#allocation59_spill] sm:$0xff] %v4077_v60  ;;  %v4081_v28 = vpop.eup %3057  ;;  %v970_v5 = vmul.f32 %v4068_v4, %v4068_v4  ;;  %v4088_v26 = vadd.f32 %v3833_v12, %v3620_v24  ;;  %3071 = vtanh.f32 %v1367_v62  ;;  %v1169_v60 = vmul.f32 0.044715, %v1069_v58 }
 0x152   : > { %5220 = vst [vmem:[#allocation60_spill] sm:$0xff] %v4079_v33  ;;  %v4090_v18 = vpop.eup %3059  ;;  %v1268_v57 = vadd.f32 %v1168_v16, %v4031_v17  ;;  %v1071_v33 = vmul.f32 %v971_v30, %v4060_v34  ;;  %v1366_v52 = vmul.f32 0.7978846, %v1266_v11  ;;  %v1534_v41 = vadd.f32 1.0, %v3748_v25 }
 0x153   : > { %v1070_v51 = vmul.f32 %v970_v5, %v4068_v4  ;;  %v972_v55 = vmul.f32 %v4088_v26, %v4088_v26  ;;  %v4098_v48 = vpop.eup %3061  ;;  %v1269_v6 = vadd.f32 %v1169_v60, %v4042_v37  ;;  %v1538_v62 = vadd.f32 1.0, %v3774_v7  ;;  %v4103_v11 = vpop.f32.mrb[36].mxu0 }
 0x154   : > { %5221 = vst [vmem:[#allocation61_spill] sm:$0xff] %v4098_v48  ;;  %v1368_v12 = vmul.f32 0.7978846, %v1268_v57  ;;  %v1171_v49 = vmul.f32 0.044715, %v1071_v33  ;;  %3073 = vtanh.f32 %v1366_v52  ;;  %v1634_v58 = vmul.f32 0.5, %v1534_v41 }
 0x155   : > { %v1170_v16 = vmul.f32 0.044715, %v1070_v51  ;;  %v1072_v30 = vmul.f32 %v972_v55, %v4088_v26  ;;  %v4105_v5 = vpop.f32.mrb[36].mxu1  ;;  %v4107_v17 = vpop.eup %3063  ;;  %v1369_v25 = vmul.f32 0.7978846, %v1269_v6  ;;  %v1638_v48 = vmul.f32 0.5, %v1538_v62 }
 0x156   : > { %3075 = vtanh.f32 %v1368_v12  ;;  %v1271_v57 = vadd.f32 %v1171_v49, %v4060_v34  ;;  %v4110_v60 = vpop.f32.mrb[37].mxu0  ;;  %v4112_v33 = vpop.f32.mrb[37].mxu1  ;;  %v1734_v51 = vmul.f32 %v1634_v58, %v3629_v31  ;;  %v1536_v55 = vadd.f32 1.0, %v3752_v40 }
 0x157   : > { %5222 = vst [vmem:[#allocation62_spill] sm:$0xff] %v4112_v33  ;;  %v4114_v7 = vpop.eup %3065  ;;  %v1270_v52 = vadd.f32 %v1170_v16, %v4068_v4  ;;  %v1172_v41 = vmul.f32 0.044715, %v1072_v30  ;;  %v4119_v37 = vpop.f32.mrb[38].mxu0  ;;  %3077 = vtanh.f32 %v1369_v25  ;;  %v1738_v6 = vmul.f32 %v1638_v48, %v3649_v43 }
 0x158   : > { %v4121_v12 = vpop.f32.mrb[38].mxu1  ;;  %v1371_v49 = vmul.f32 0.7978846, %v1271_v57  ;;  %v1540_v62 = vadd.f32 1.0, %v3779_v27  ;;  %v4125_v33 = vpop.f32.mrb[39].mxu0  ;;  %v1636_v40 = vmul.f32 0.5, %v1536_v55  ;;  %v4134_v58 = vadd.f32 %v3873_v50, %v3614_v21 }
 0x159   : > { %5223 = vst [vmem:[#allocation63_spill] sm:$0xff] %v4125_v33  ;;  %v4127_v34 = vpop.f32.mrb[39].mxu1  ;;  %v4129_v16 = vpop.eup %3067  ;;  %v1370_v30 = vmul.f32 0.7978846, %v1270_v52  ;;  %v1272_v31 = vadd.f32 %v1172_v41, %v4088_v26  ;;  %v1834_v25 = vpack.c.bf16 %v1738_v6, %v1734_v51  ;;  %v4138_v43 = vadd.f32 %v3875_v1, %v3616_v22 }
 0x15a   : > { %5224 = vst [vmem:[#allocation64_spill] sm:$0xff] %v4127_v34  ;;  %5225 = vst [vmem:[#allocation65_spill] sm:$0xff] %v4134_v58  ;;  %3079 = vtanh.f32 %v1371_v49  ;;  %v1640_v57 = vmul.f32 0.5, %v1540_v62  ;;  %v4140_v27 = vpop.eup %3069  ;;  %v1736_v52 = vmul.f32 %v1636_v40, %v3632_v32  ;;  %v973_v41 = vmul.f32 %v4134_v58, %v4134_v58 }
 0x15b   : > { %5226 = vst [vmem:[#allocation66_spill] sm:$0xff] %v4138_v43  ;;  %3081 = vtanh.f32 %v1370_v30  ;;  %v1372_v48 = vmul.f32 0.7978846, %v1272_v31  ;;  %v4145_v55 = vpop.eup %3071  ;;  %2180 = vmatprep.mubr.bf16.mxu0 %v1834_v25  ;;  %v975_v51 = vmul.f32 %v4138_v43, %v4138_v43  ;;  %v4152_v1 = vadd.f32 %v3879_v29, %v3618_v23  ;;  %v4170_v29 = vpop.f32.mrb[40].mxu0 }
 0x15c   : > { %v1740_v50 = vmul.f32 %v1640_v57, %v3652_v44  ;;  %v4156_v49 = vadd.f32 %v3881_v54, %v3620_v24  ;;  %v5228_v32 = vpack.c.bf16 %v3794_v15, %v3764_v0  ;;  %v1073_v6 = vmul.f32 %v973_v41, %v4134_v58  ;;  %5231 = vst [vmem:[#allocation70_spill] sm:$0xff] %v4170_v29  ;;  %v4172_v30 = vpop.f32.mrb[40].mxu1  ;;  %v4179_v40 = vpop.f32.mrb[41].mxu0 }
 0x15d   : > { %3083 = vtanh.f32 %v1372_v48  ;;  %v4164_v44 = vadd.f32 %v3889_v42, %v3614_v21  ;;  %v4168_v62 = vadd.f32 %v3891_v2, %v3616_v22  ;;  %5232 = vst [vmem:[#allocation71_spill] sm:$0xff] %v4172_v30  ;;  %v1075_v31 = vmul.f32 %v975_v51, %v4138_v43  ;;  %5233 = vst [vmem:[#allocation72_spill] sm:$0xff] %v4179_v40  ;;  %v4181_v42 = vpop.f32.mrb[41].mxu1  ;;  %v4193_v41 = vpop.f32.mrb[42].mxu0 }
 0x15e   : > { %5227 = vst [vmem:[#allocation67_spill] sm:$0xff] %v4156_v49  ;;  %2181 = vmatmul.mubr.bf16.vlgmr.msra.gmra.mrb[52].mxu0 %v5228_v32  ;;  %v1836_v54 = vpack.c.bf16 %v1740_v50, %v1736_v52  ;;  %v974_v0 = vmul.f32 %v4152_v1, %v4152_v1  ;;  %v976_v15 = vmul.f32 %v4156_v49, %v4156_v49  ;;  %5234 = vst [vmem:[#allocation73_spill] sm:$0xff] %v4181_v42  ;;  %v4183_v25 = vpop.eup %3073  ;;  %v4195_v50 = vpop.f32.mrb[42].mxu1 }
 0x15f   : > { %5229 = vst [vmem:[#allocation68_spill] sm:$0xff] %v4164_v44  ;;  %5230 = vst [vmem:[#allocation69_spill] sm:$0xff] %v4168_v62  ;;  %v1173_v2 = vmul.f32 0.044715, %v1073_v6  ;;  %v977_v57 = vmul.f32 %v4164_v44, %v4164_v44  ;;  %v979_v48 = vmul.f32 %v4168_v62, %v4168_v62  ;;  %v4191_v52 = vadd.f32 %v3897_v13, %v3618_v23  ;;  %v4205_v30 = vpop.f32.mrb[43].mxu0  ;;  %v4207_v13 = vpop.f32.mrb[43].mxu1 }
 0x160   : > { %5235 = vst [vmem:[#allocation74_spill] sm:$0xff] %v4193_v41  ;;  %5236 = vst [vmem:[#allocation75_spill] sm:$0xff] %v4195_v50  ;;  %v4197_v51 = vpop.eup %3075  ;;  %2316 = vmatprep.mubr.bf16.mxu1 %v1836_v54  ;;  %v1175_v32 = vmul.f32 0.044715, %v1075_v31  ;;  %v1074_v6 = vmul.f32 %v974_v0, %v4152_v1  ;;  %v1076_v42 = vmul.f32 %v976_v15, %v4156_v49 }
 0x161   : > { %v4203_v40 = vadd.f32 %v3899_v14, %v3620_v24  ;;  %5238 = vst [vmem:[#allocation77_spill] sm:$0xff] %v4205_v30  ;;  %5239 = vst [vmem:[#allocation78_spill] sm:$0xff] %v4207_v13  ;;  %v5240_v41 = vpack.c.bf16 %v3806_v46, %v3777_v8  ;;  %v1273_v50 = vadd.f32 %v1173_v2, %v4134_v58  ;;  %v4217_v15 = vpop.eup %3077 }
 0x162   : > { %v1077_v54 = vmul.f32 %v977_v57, %v4164_v44  ;;  %v1079_v31 = vmul.f32 %v979_v48, %v4168_v62  ;;  %v978_v0 = vmul.f32 %v4191_v52, %v4191_v52  ;;  %v1275_v14 = vadd.f32 %v1175_v32, %v4138_v43 }
 0x163   : > { %5237 = vst [vmem:[#allocation76_spill] sm:$0xff] %v4203_v40  ;;  %2317 = vmatmul.mubr.bf16.vlgmr.msra.gmra.mrb[52].mxu1 %v5240_v41  ;;  %v1174_v30 = vmul.f32 0.044715, %v1074_v6  ;;  %v1176_v29 = vmul.f32 0.044715, %v1076_v42  ;;  %v980_v13 = vmul.f32 %v4203_v40, %v4203_v40 }
 0x164   : > { %v1373_v8 = vmul.f32 0.7978846, %v1273_v50  ;;  %v1177_v46 = vmul.f32 0.044715, %v1077_v54  ;;  %v1179_v41 = vmul.f32 0.044715, %v1079_v31  ;;  %v1078_v2 = vmul.f32 %v978_v0, %v4191_v52  ;;  %v4223_v57 = vpop.eup %3079 }
 0x165   : > { %v1375_v48 = vmul.f32 0.7978846, %v1275_v14  ;;  %v1274_v58 = vadd.f32 %v1174_v30, %v4152_v1  ;;  %v1276_v34 = vadd.f32 %v1176_v29, %v4156_v49  ;;  %v1080_v33 = vmul.f32 %v980_v13, %v4203_v40  ;;  %v4228_v32 = vpop.eup %3081  ;;  %v4232_v54 = vpop.f32.mrb[44].mxu0 }
 0x166   : > { %3085 = vtanh.f32 %v1373_v8  ;;  %v1277_v42 = vadd.f32 %v1177_v46, %v4164_v44  ;;  %v1279_v50 = vadd.f32 %v1179_v41, %v4168_v62  ;;  %v1178_v6 = vmul.f32 0.044715, %v1078_v2  ;;  %5241 = vst [vmem:[#allocation79_spill] sm:$0xff] %v4232_v54  ;;  %v4234_v31 = vpop.f32.mrb[44].mxu1  ;;  %v4240_v46 = vpop.f32.mrb[45].mxu0  ;;  %v5254_v54 = vld [vmem:[#allocation21_spill] sm:$0xff] }
 0x167   : > { %5242 = vst [vmem:[#allocation80_spill] sm:$0xff] %v4234_v31  ;;  %3087 = vtanh.f32 %v1375_v48  ;;  %v1374_v0 = vmul.f32 0.7978846, %v1274_v58  ;;  %v1376_v14 = vmul.f32 0.7978846, %v1276_v34  ;;  %v4236_v43 = vpop.eup %3083  ;;  %v1542_v8 = vadd.f32 1.0, %v3843_v47 }
 0x168   : > { %v1180_v30 = vmul.f32 0.044715, %v1080_v33  ;;  %v1377_v29 = vmul.f32 0.7978846, %v1277_v42  ;;  %v1379_v13 = vmul.f32 0.7978846, %v1279_v50  ;;  %v1278_v49 = vadd.f32 %v1178_v6, %v4191_v52 }
 0x169   : > { %5243 = vst [vmem:[#allocation81_spill] sm:$0xff] %v4240_v46  ;;  %3089 = vtanh.f32 %v1374_v0  ;;  %v1546_v2 = vadd.f32 1.0, %v3905_v3  ;;  %v1544_v48 = vadd.f32 1.0, %v3853_v53  ;;  %v4245_v58 = vpop.f32.mrb[45].mxu1  ;;  %v4247_v34 = vpop.f32.mrb[46].mxu0  ;;  %v1642_v42 = vmul.f32 0.5, %v1542_v8 }
 0x16a   : > { %v1280_v41 = vadd.f32 %v1180_v30, %v4203_v40  ;;  %5244 = vst [vmem:[#allocation82_spill] sm:$0xff] %v4245_v58  ;;  %5245 = vst [vmem:[#allocation83_spill] sm:$0xff] %v4247_v34  ;;  %3091 = vtanh.f32 %v1376_v14  ;;  %v1378_v33 = vmul.f32 0.7978846, %v1278_v49  ;;  %v1548_v50 = vadd.f32 1.0, %v3921_v10  ;;  %v4250_v6 = vpop.f32.mrb[46].mxu1 }
 0x16b   : > { %5246 = vst [vmem:[#allocation84_spill] sm:$0xff] %v4250_v6  ;;  %v4252_v47 = vpop.f32.mrb[47].mxu0  ;;  %3093 = vtanh.f32 %v1377_v29  ;;  %v1646_v30 = vmul.f32 0.5, %v1546_v2  ;;  %v1644_v46 = vmul.f32 0.5, %v1544_v48  ;;  %v4254_v3 = vpop.f32.mrb[47].mxu1  ;;  %v1742_v53 = vmul.f32 %v1642_v42, %v3687_v36  ;;  %v5249_v49 = vld [vmem:[#allocation10_spill] sm:$0xff] }
 0x16c   : > { %5247 = vst [vmem:[#allocation85_spill] sm:$0xff] %v4252_v47  ;;  %v1380_v0 = vmul.f32 0.7978846, %v1280_v41  ;;  %5248 = vst [vmem:[#allocation86_spill] sm:$0xff] %v4254_v3  ;;  %3095 = vtanh.f32 %v1379_v13  ;;  %v1648_v58 = vmul.f32 0.5, %v1548_v50  ;;  %v1541_v14 = vadd.f32 1.0, %v3825_v63 }
 0x16d   : > { %3097 = vtanh.f32 %v1378_v33  ;;  %v1746_v8 = vmul.f32 %v1646_v30, %v5249_v49  ;;  %v5250_v10 = vld [vmem:[#allocation7_spill] sm:$0xff]  ;;  %v5251_v6 = vld [vmem:[#allocation20_spill] sm:$0xff]  ;;  %v1547_v36 = vadd.f32 1.0, %v5254_v54  ;;  %v4266_v63 = vadd.f32 %v3926_v20, %v3614_v21 }
 0x16e   : > { %v1744_v34 = vmul.f32 %v1644_v46, %v5250_v10  ;;  %v1545_v31 = vadd.f32 1.0, %v5251_v6  ;;  %3099 = vtanh.f32 %v1380_v0  ;;  %v5252_v29 = vld [vmem:[#allocation11_spill] sm:$0xff]  ;;  %v1641_v2 = vmul.f32 0.5, %v1541_v14  ;;  %v5253_v48 = vld [vmem:[#allocation16_spill] sm:$0xff]  ;;  %v5256_v46 = vld [vmem:[#allocation5_spill] sm:$0xff] }
 0x16f   : > { %v1748_v41 = vmul.f32 %v1648_v58, %v5252_v29  ;;  %v1543_v47 = vadd.f32 1.0, %v5253_v48  ;;  %v1838_v3 = vpack.c.bf16 %v1746_v8, %v1742_v53  ;;  %5255 = vst [vmem:[#allocation10_spill] sm:$0xff] %v4266_v63  ;;  %v4273_v58 = vadd.f32 %v3928_v35, %v3616_v22  ;;  %v5259_v53 = vld [vmem:[#allocation28_spill] sm:$0xff] }
 0x170   : > { %v1645_v13 = vmul.f32 0.5, %v1545_v31  ;;  %v4268_v33 = vpop.eup %3085  ;;  %v1741_v50 = vmul.f32 %v1641_v2, %v5256_v46  ;;  %v5258_v31 = vld [vmem:[#allocation8_spill] sm:$0xff]  ;;  %v1647_v54 = vmul.f32 0.5, %v1547_v36  ;;  %v981_v20 = vmul.f32 %v4266_v63, %v4266_v63 }
 0x171   : > { %v1840_v42 = vpack.c.bf16 %v1748_v41, %v1744_v34  ;;  %v1643_v6 = vmul.f32 0.5, %v1543_v47  ;;  %5257 = vst [vmem:[#allocation7_spill] sm:$0xff] %v4273_v58  ;;  %v4275_v0 = vpop.eup %3087  ;;  %2188 = vmatprep.mubr.bf16.mxu0 %v1838_v3  ;;  %v4282_v14 = vadd.f32 %v5259_v53, %v3618_v23  ;;  %v5261_v34 = vld [vmem:[#allocation6_spill] sm:$0xff]  ;;  %v983_v35 = vmul.f32 %v4273_v58, %v4273_v58  ;;  %v5265_v41 = vld [vmem:[#allocation9_spill] sm:$0xff] }
 0x172   : > { %v1745_v30 = vmul.f32 %v1645_v13, %v5258_v31  ;;  %v4289_v49 = vadd.f32 %v3938_v39, %v3620_v24  ;;  %v5263_v3 = vld [vmem:[#allocation30_spill] sm:$0xff]  ;;  %v1747_v2 = vmul.f32 %v1647_v54, %v5265_v41  ;;  %v1081_v48 = vmul.f32 %v981_v20, %v4266_v63  ;;  %v4312_v31 = vpop.f32.mrb[48].mxu0 }
 0x173   : > { %5260 = vst [vmem:[#allocation20_spill] sm:$0xff] %v4282_v14  ;;  %2324 = vmatprep.mubr.bf16.mxu1 %v1840_v42  ;;  %v1743_v47 = vmul.f32 %v1643_v6, %v5261_v34  ;;  %v4293_v8 = vadd.f32 %v5263_v3, %v3614_v21  ;;  %v4295_v10 = vpop.eup %3089  ;;  %v982_v13 = vmul.f32 %v4282_v14, %v4282_v14  ;;  %v5266_v6 = vld [vmem:[#allocation31_spill] sm:$0xff]  ;;  %5268 = vst [vmem:[#allocation5_spill] sm:$0xff] %v4312_v31 }
 0x174   : > { %5262 = vst [vmem:[#allocation11_spill] sm:$0xff] %v4289_v49  ;;  %v1837_v29 = vpack.c.bf16 %v1745_v30, %v1741_v50  ;;  %v4301_v36 = vpop.eup %3091  ;;  %v1083_v42 = vmul.f32 %v983_v35, %v4273_v58  ;;  %v984_v39 = vmul.f32 %v4289_v49, %v4289_v49  ;;  %v4310_v50 = vadd.f32 %v5266_v6, %v3616_v22 }
 0x175   : > { %5264 = vst [vmem:[#allocation16_spill] sm:$0xff] %v4293_v8  ;;  %v985_v46 = vmul.f32 %v4293_v8, %v4293_v8  ;;  %v4314_v30 = vpop.eup %3093  ;;  %v1839_v54 = vpack.c.bf16 %v1747_v2, %v1743_v47  ;;  %v1181_v20 = vmul.f32 0.044715, %v1081_v48  ;;  %v1082_v53 = vmul.f32 %v982_v13, %v4282_v14 }
 0x176   : > { %5267 = vst [vmem:[#allocation21_spill] sm:$0xff] %v4310_v50  ;;  %2189 = vmatmul.mubr.bf16.gmra.mrb[56].mxu0 %v1837_v29  ;;  %v4319_v34 = vadd.f32 %v3956_v19, %v3618_v23  ;;  %v4321_v35 = vpop.eup %3095  ;;  %v1183_v3 = vmul.f32 0.044715, %v1083_v42  ;;  %v1084_v41 = vmul.f32 %v984_v39, %v4289_v49  ;;  %v987_v31 = vmul.f32 %v4310_v50, %v4310_v50 }
 0x177   : > { %5270 = vst [vmem:[#allocation28_spill] sm:$0xff] %v4321_v35  ;;  %v1085_v6 = vmul.f32 %v985_v46, %v4293_v8  ;;  %v4327_v62 = vpop.eup %3097  ;;  %2325 = vmatmul.mubr.bf16.gmra.mrb[56].mxu1 %v1839_v54  ;;  %v1281_v47 = vadd.f32 %v1181_v20, %v4266_v63  ;;  %v1182_v29 = vmul.f32 0.044715, %v1082_v53  ;;  %v4334_v2 = vadd.f32 %v3958_v45, %v3620_v24  ;;  %v4344_v63 = vpop.f32.mrb[48].mxu1 }
 0x178   : > { %5269 = vst [vmem:[#allocation8_spill] sm:$0xff] %v4319_v34  ;;  %v986_v19 = vmul.f32 %v4319_v34, %v4319_v34  ;;  %v4336_v48 = vpop.eup %3099  ;;  %v1283_v13 = vadd.f32 %v1183_v3, %v4273_v58  ;;  %v1184_v42 = vmul.f32 0.044715, %v1084_v41  ;;  %v1087_v46 = vmul.f32 %v987_v31, %v4310_v50  ;;  %5272 = vst [vmem:[#allocation30_spill] sm:$0xff] %v4344_v63  ;;  %v4348_v41 = vpop.f32.mrb[49].mxu0 }
 0x179   : > { %5271 = vst [vmem:[#allocation6_spill] sm:$0xff] %v4334_v2  ;;  %v1185_v39 = vmul.f32 0.044715, %v1085_v6  ;;  %v1381_v44 = vmul.f32 0.7978846, %v1281_v47  ;;  %v1282_v54 = vadd.f32 %v1182_v29, %v4282_v14  ;;  %v988_v53 = vmul.f32 %v4334_v2, %v4334_v2  ;;  %5273 = vst [vmem:[#allocation9_spill] sm:$0xff] %v4348_v41 }
 0x17a   : > { %v1086_v20 = vmul.f32 %v986_v19, %v4319_v34  ;;  %v1383_v45 = vmul.f32 0.7978846, %v1283_v13  ;;  %v1284_v40 = vadd.f32 %v1184_v42, %v4289_v49  ;;  %v1187_v3 = vmul.f32 0.044715, %v1087_v46  ;;  %v4351_v29 = vpop.f32.mrb[49].mxu1  ;;  %v769_v19 = vpop.f32.mrb[50].mxu0 }
 0x17b   : > { %v1285_v35 = vadd.f32 %v1185_v39, %v4293_v8  ;;  %3101 = vtanh.f32 %v1381_v44  ;;  %v1382_v31 = vmul.f32 0.7978846, %v1282_v54  ;;  %v1088_v47 = vmul.f32 %v988_v53, %v4334_v2  ;;  %5274 = vst [vmem:[#allocation31_spill] sm:$0xff] %v4351_v29  ;;  %v770_v63 = vpop.f32.mrb[51].mxu0  ;;  %v930_v42 = vpop.f32.mrb[50].mxu1  ;;  %v5275_v41 = vld [vmem:[#allocation35_spill] sm:$0xff] }
 0x17c   : > { %v1186_v6 = vmul.f32 0.044715, %v1086_v20  ;;  %3103 = vtanh.f32 %v1383_v45  ;;  %v1384_v58 = vmul.f32 0.7978846, %v1284_v40  ;;  %v1287_v13 = vadd.f32 %v1187_v3, %v4310_v50  ;;  %v931_v54 = vpop.f32.mrb[51].mxu1  ;;  %v5278_v42 = vld [vmem:[#allocation19_spill] sm:$0xff] }
 0x17d   : > { %v1385_v14 = vmul.f32 0.7978846, %v1285_v35  ;;  %3105 = vtanh.f32 %v1382_v31  ;;  %v1188_v46 = vmul.f32 0.044715, %v1088_v47  ;;  %v1550_v44 = vadd.f32 1.0, %v5275_v41  ;;  %v5276_v41 = vld [vmem:[#allocation14_spill] sm:$0xff] }
 0x17e   : > { %v1286_v39 = vadd.f32 %v1186_v6, %v4319_v34  ;;  %3107 = vtanh.f32 %v1384_v58  ;;  %v1387_v20 = vmul.f32 0.7978846, %v1287_v13  ;;  %v1554_v53 = vadd.f32 1.0, %v4020_v9  ;;  %v5277_v58 = vld [vmem:[#allocation29_spill] sm:$0xff] }
 0x17f   : > { %v1552_v19 = vadd.f32 1.0, %v3978_v61  ;;  %3109 = vtanh.f32 %v1385_v14  ;;  %v1288_v35 = vadd.f32 %v1188_v46, %v4334_v2  ;;  %v1650_v45 = vmul.f32 0.5, %v1550_v44  ;;  %v5279_v61 = vld [vmem:[#allocation15_spill] sm:$0xff]  ;;  %v5280_v44 = vld [vmem:[#allocation34_spill] sm:$0xff] }
 0x180   : > { %v1386_v40 = vmul.f32 0.7978846, %v1286_v39  ;;  %3111 = vtanh.f32 %v1387_v20  ;;  %v1654_v63 = vmul.f32 0.5, %v1554_v53  ;;  %v1556_v3 = vadd.f32 1.0, %v4033_v56 }
 0x181   : > { %v1652_v31 = vmul.f32 0.5, %v1552_v19  ;;  %v1388_v6 = vmul.f32 0.7978846, %v1288_v35  ;;  %v1750_v47 = vmul.f32 %v1650_v45, %v5276_v41  ;;  %v1549_v13 = vadd.f32 1.0, %v5277_v58  ;;  %v5281_v19 = vld [vmem:[#allocation22_spill] sm:$0xff] }
 0x182   : > { %3113 = vtanh.f32 %v1386_v40  ;;  %v1754_v9 = vmul.f32 %v1654_v63, %v5278_v42  ;;  %v1656_v54 = vmul.f32 0.5, %v1556_v3  ;;  %v1553_v39 = vadd.f32 1.0, %v4002_v38  ;;  %v5282_v45 = vld [vmem:[#allocation38_spill] sm:$0xff]  ;;  %v5285_v3 = vld [vmem:[#allocation12_spill] sm:$0xff] }
 0x183   : > { %v1752_v14 = vmul.f32 %v1652_v31, %v5279_v61  ;;  %3115 = vtanh.f32 %v1388_v6  ;;  %v1649_v46 = vmul.f32 0.5, %v1549_v13  ;;  %v1551_v20 = vadd.f32 1.0, %v5280_v44  ;;  %v5286_v6 = vld [vmem:[#allocation39_spill] sm:$0xff]  ;;  %v5290_v61 = vld [vmem:[#allocation41_spill] sm:$0xff] }
 0x184   : > { %v1555_v56 = vadd.f32 1.0, %v4011_v59  ;;  %v1842_v53 = vpack.c.bf16 %v1754_v9, %v1750_v47  ;;  %v1756_v40 = vmul.f32 %v1656_v54, %v5281_v19  ;;  %v1653_v35 = vmul.f32 0.5, %v1553_v39  ;;  %v5289_v47 = vld [vmem:[#allocation17_spill] sm:$0xff] }
 0x185   : > { %v4370_v41 = vadd.f32 %v5282_v45, %v3614_v21  ;;  %v4372_v63 = vpop.eup %3101  ;;  %v1749_v31 = vmul.f32 %v1649_v46, %v5285_v3  ;;  %v1651_v58 = vmul.f32 0.5, %v1551_v20  ;;  %v4377_v13 = vadd.f32 %v5286_v6, %v3616_v22  ;;  %v5291_v44 = vld [vmem:[#allocation13_spill] sm:$0xff] }
 0x186   : > { %5284 = vst [vmem:[#allocation14_spill] sm:$0xff] %v4372_v63  ;;  %v1655_v38 = vmul.f32 0.5, %v1555_v56  ;;  %v4379_v42 = vpop.eup %3103  ;;  %2196 = vmatprep.mubr.bf16.mxu0 %v1842_v53  ;;  %v1844_v59 = vpack.c.bf16 %v1756_v40, %v1752_v14  ;;  %v1753_v9 = vmul.f32 %v1653_v35, %v5289_v47  ;;  %v4386_v39 = vadd.f32 %v5290_v61, %v3618_v23  ;;  %v5292_v56 = vld [vmem:[#allocation18_spill] sm:$0xff] }
 0x187   : > { %5283 = vst [vmem:[#allocation35_spill] sm:$0xff] %v4370_v41  ;;  %5287 = vst [vmem:[#allocation29_spill] sm:$0xff] %v4377_v13  ;;  %v989_v54 = vmul.f32 %v4370_v41, %v4370_v41  ;;  %v4388_v46 = vpop.eup %3105  ;;  %v1751_v20 = vmul.f32 %v1651_v58, %v5291_v44  ;;  %v991_v45 = vmul.f32 %v4377_v13, %v4377_v13  ;;  %v5293_v14 = vld [vmem:[#allocation42_spill] sm:$0xff]  ;;  %v5295_v58 = vld [vmem:[#allocation43_spill] sm:$0xff] }
 0x188   : > { %5288 = vst [vmem:[#allocation19_spill] sm:$0xff] %v4379_v42  ;;  %v1755_v19 = vmul.f32 %v1655_v38, %v5292_v56  ;;  %v4396_v53 = vadd.f32 %v5293_v14, %v3620_v24  ;;  %v4398_v40 = vpop.eup %3107  ;;  %2332 = vmatprep.mubr.bf16.mxu1 %v1844_v59  ;;  %v1841_v35 = vpack.c.bf16 %v1753_v9, %v1749_v31  ;;  %v5298_v59 = vld [vmem:[#allocation44_spill] sm:$0xff] }
 0x189   : > { %v1089_v3 = vmul.f32 %v989_v54, %v4370_v41  ;;  %v990_v6 = vmul.f32 %v4386_v39, %v4386_v39  ;;  %v4405_v47 = vadd.f32 %v5295_v58, %v3614_v21  ;;  %v4407_v38 = vpop.eup %3109  ;;  %v1091_v44 = vmul.f32 %v991_v45, %v4377_v13 }
 0x18a   : > { %5294 = vst [vmem:[#allocation15_spill] sm:$0xff] %v4396_v53  ;;  %5297 = vst [vmem:[#allocation22_spill] sm:$0xff] %v4407_v38  ;;  %v1843_v61 = vpack.c.bf16 %v1755_v19, %v1751_v20  ;;  %v992_v56 = vmul.f32 %v4396_v53, %v4396_v53  ;;  %v4414_v31 = vadd.f32 %v5298_v59, %v3616_v22  ;;  %v4416_v9 = vpop.eup %3111  ;;  %2197 = vmatmul.mubr.bf16.gmra.mrb[60].mxu0 %v1841_v35  ;;  %v5301_v20 = vld [vmem:[#allocation45_spill] sm:$0xff]  ;;  %v5303_v35 = vld [vmem:[#allocation46_spill] sm:$0xff] }
 0x18b   : > { %5296 = vst [vmem:[#allocation34_spill] sm:$0xff] %v4405_v47  ;;  %5300 = vst [vmem:[#allocation12_spill] sm:$0xff] %v4416_v9  ;;  %v1189_v54 = vmul.f32 0.044715, %v1089_v3  ;;  %v1090_v14 = vmul.f32 %v990_v6, %v4386_v39  ;;  %v993_v58 = vmul.f32 %v4405_v47, %v4405_v47  ;;  %v4423_v19 = vadd.f32 %v5301_v20, %v3618_v23 }
 0x18c   : > { %5299 = vst [vmem:[#allocation38_spill] sm:$0xff] %v4414_v31  ;;  %v4425_v45 = vpop.eup %3113  ;;  %2333 = vmatmul.mubr.bf16.gmra.mrb[60].mxu1 %v1843_v61  ;;  %v1191_v29 = vmul.f32 0.044715, %v1091_v44  ;;  %v1092_v59 = vmul.f32 %v992_v56, %v4396_v53  ;;  %v995_v50 = vmul.f32 %v4414_v31, %v4414_v31  ;;  %v4432_v3 = vadd.f32 %v5303_v35, %v3620_v24 }
 0x18d   : > { %5302 = vst [vmem:[#allocation39_spill] sm:$0xff] %v4423_v19  ;;  %v1289_v6 = vadd.f32 %v1189_v54, %v4370_v41  ;;  %v1190_v8 = vmul.f32 0.044715, %v1090_v14  ;;  %v1093_v2 = vmul.f32 %v993_v58, %v4405_v47  ;;  %v994_v20 = vmul.f32 %v4423_v19, %v4423_v19  ;;  %v4438_v9 = vpop.eup %3115 }
 0x18e   : > { %5304 = vst [vmem:[#allocation17_spill] sm:$0xff] %v4432_v3  ;;  %v1291_v61 = vadd.f32 %v1191_v29, %v4377_v13  ;;  %v1192_v44 = vmul.f32 0.044715, %v1092_v59  ;;  %v1095_v56 = vmul.f32 %v995_v50, %v4414_v31  ;;  %v996_v42 = vmul.f32 %v4432_v3, %v4432_v3 }
 0x18f   : > { %v1389_v35 = vmul.f32 0.7978846, %v1289_v6  ;;  %v1290_v49 = vadd.f32 %v1190_v8, %v4386_v39  ;;  %v1193_v54 = vmul.f32 0.044715, %v1093_v2  ;;  %v1094_v14 = vmul.f32 %v994_v20, %v4423_v19 }
 0x190   : > { %v1391_v58 = vmul.f32 0.7978846, %v1291_v61  ;;  %v1292_v41 = vadd.f32 %v1192_v44, %v4396_v53  ;;  %v1195_v38 = vmul.f32 0.044715, %v1095_v56  ;;  %v1096_v34 = vmul.f32 %v996_v42, %v4432_v3 }
 0x191   : > { %3117 = vtanh.f32 %v1389_v35  ;;  %v1390_v29 = vmul.f32 0.7978846, %v1290_v49  ;;  %v1293_v59 = vadd.f32 %v1193_v54, %v4405_v47  ;;  %v1194_v50 = vmul.f32 0.044715, %v1094_v14  ;;  %v5305_v54 = vld [vmem:[#allocation25_spill] sm:$0xff] }
 0x192   : > { %3119 = vtanh.f32 %v1391_v58  ;;  %v1392_v13 = vmul.f32 0.7978846, %v1292_v41  ;;  %v1295_v6 = vadd.f32 %v1195_v38, %v4414_v31  ;;  %v1196_v63 = vmul.f32 0.044715, %v1096_v34 }
 0x193   : > { %3121 = vtanh.f32 %v1390_v29  ;;  %v1393_v8 = vmul.f32 0.7978846, %v1293_v59  ;;  %v1294_v2 = vadd.f32 %v1194_v50, %v4423_v19  ;;  %v1558_v20 = vadd.f32 1.0, %v4081_v28  ;;  %v5308_v59 = vld [vmem:[#allocation61_spill] sm:$0xff] }
 0x194   : > { %3123 = vtanh.f32 %v1392_v13  ;;  %v1395_v61 = vmul.f32 0.7978846, %v1295_v6  ;;  %v1296_v42 = vadd.f32 %v1196_v63, %v4432_v3  ;;  %v1562_v49 = vadd.f32 1.0, %v4114_v7  ;;  %v5306_v13 = vld [vmem:[#allocation50_spill] sm:$0xff]  ;;  %v5307_v63 = vld [vmem:[#allocation33_spill] sm:$0xff] }
 0x195   : > { %3125 = vtanh.f32 %v1393_v8  ;;  %v1394_v44 = vmul.f32 0.7978846, %v1294_v2  ;;  %v1658_v56 = vmul.f32 0.5, %v1558_v20  ;;  %v1560_v41 = vadd.f32 1.0, %v4090_v18  ;;  %v5309_v6 = vld [vmem:[#allocation26_spill] sm:$0xff]  ;;  %v5310_v2 = vld [vmem:[#allocation53_spill] sm:$0xff] }
 0x196   : > { %3127 = vtanh.f32 %v1395_v61  ;;  %v1396_v38 = vmul.f32 0.7978846, %v1296_v42  ;;  %v1662_v34 = vmul.f32 0.5, %v1562_v49  ;;  %v1564_v35 = vadd.f32 1.0, %v4129_v16  ;;  %v5311_v42 = vld [vmem:[#allocation36_spill] sm:$0xff] }
 0x197   : > { %3129 = vtanh.f32 %v1394_v44  ;;  %v1758_v14 = vmul.f32 %v1658_v56, %v5305_v54  ;;  %v1660_v28 = vmul.f32 0.5, %v1560_v41  ;;  %v1557_v58 = vadd.f32 1.0, %v5306_v13  ;;  %v5312_v56 = vld [vmem:[#allocation51_spill] sm:$0xff] }
 0x198   : > { %3131 = vtanh.f32 %v1396_v38  ;;  %v1762_v29 = vmul.f32 %v1662_v34, %v5307_v63  ;;  %v1664_v7 = vmul.f32 0.5, %v1564_v35  ;;  %v1561_v50 = vadd.f32 1.0, %v5308_v59  ;;  %v5315_v34 = vld [vmem:[#allocation23_spill] sm:$0xff] }
 0x199   : > { %v1760_v8 = vmul.f32 %v1660_v28, %v5309_v6  ;;  %v1657_v18 = vmul.f32 0.5, %v1557_v58  ;;  %v1559_v20 = vadd.f32 1.0, %v5310_v2  ;;  %v1563_v61 = vadd.f32 1.0, %v4107_v17  ;;  %v5316_v28 = vld [vmem:[#allocation52_spill] sm:$0xff]  ;;  %v5320_v59 = vld [vmem:[#allocation55_spill] sm:$0xff] }
 0x19a   : > { %v1846_v16 = vpack.c.bf16 %v1762_v29, %v1758_v14  ;;  %v1764_v49 = vmul.f32 %v1664_v7, %v5311_v42  ;;  %v1661_v44 = vmul.f32 0.5, %v1561_v50  ;;  %v4466_v41 = vadd.f32 %v5312_v56, %v3614_v21  ;;  %v5319_v14 = vld [vmem:[#allocation27_spill] sm:$0xff] }
 0x19b   : > { %v4468_v38 = vpop.eup %3117  ;;  %v1757_v35 = vmul.f32 %v1657_v18, %v5315_v34  ;;  %v1659_v54 = vmul.f32 0.5, %v1559_v20  ;;  %v1663_v13 = vmul.f32 0.5, %v1563_v61  ;;  %v4473_v58 = vadd.f32 %v5316_v28, %v3616_v22  ;;  %v5321_v18 = vld [vmem:[#allocation24_spill] sm:$0xff] }
 0x19c   : > { %5313 = vst [vmem:[#allocation41_spill] sm:$0xff] %v4466_v41  ;;  %5314 = vst [vmem:[#allocation13_spill] sm:$0xff] %v4468_v38  ;;  %v4475_v63 = vpop.eup %3119  ;;  %2204 = vmatprep.mubr.bf16.mxu0 %v1846_v16  ;;  %v1848_v17 = vpack.c.bf16 %v1764_v49, %v1760_v8  ;;  %v1761_v29 = vmul.f32 %v1661_v44, %v5319_v14  ;;  %v997_v7 = vmul.f32 %v4466_v41, %v4466_v41  ;;  %v5322_v20 = vld [vmem:[#allocation32_spill] sm:$0xff] }
 0x19d   : > { %5317 = vst [vmem:[#allocation18_spill] sm:$0xff] %v4473_v58  ;;  %5318 = vst [vmem:[#allocation42_spill] sm:$0xff] %v4475_v63  ;;  %v4482_v50 = vadd.f32 %v5320_v59, %v3618_v23  ;;  %v4484_v6 = vpop.eup %3121  ;;  %v1759_v2 = vmul.f32 %v1659_v54, %v5321_v18  ;;  %v1763_v61 = vmul.f32 %v1663_v13, %v5322_v20  ;;  %v5323_v8 = vld [vmem:[#allocation56_spill] sm:$0xff]  ;;  %v5324_v54 = vld [vmem:[#allocation57_spill] sm:$0xff] }
 0x19e   : > { %v999_v42 = vmul.f32 %v4473_v58, %v4473_v58  ;;  %v4492_v16 = vadd.f32 %v5323_v8, %v3620_v24  ;;  %v4494_v49 = vpop.eup %3123  ;;  %2340 = vmatprep.mubr.bf16.mxu1 %v1848_v17  ;;  %v1845_v44 = vpack.c.bf16 %v1761_v29, %v1757_v35  ;;  %v1097_v56 = vmul.f32 %v997_v7, %v4466_v41  ;;  %v5326_v17 = vld [vmem:[#allocation58_spill] sm:$0xff] }
 0x19f   : > { %v998_v34 = vmul.f32 %v4482_v50, %v4482_v50  ;;  %v4501_v28 = vadd.f32 %v5324_v54, %v3614_v21  ;;  %v4503_v13 = vpop.eup %3125  ;;  %v1847_v14 = vpack.c.bf16 %v1763_v61, %v1759_v2  ;;  %v4510_v35 = vadd.f32 %v5326_v17, %v3616_v22  ;;  %v5328_v2 = vld [vmem:[#allocation59_spill] sm:$0xff] }
 0x1a0   : > { %5325 = vst [vmem:[#allocation43_spill] sm:$0xff] %v4503_v13  ;;  %v1099_v59 = vmul.f32 %v999_v42, %v4473_v58  ;;  %v1000_v18 = vmul.f32 %v4492_v16, %v4492_v16  ;;  %v4512_v29 = vpop.eup %3127  ;;  %2205 = vmatmul.mubr.bf16.gmra.mrb[64].mxu0 %v1845_v44  ;;  %v1197_v7 = vmul.f32 0.044715, %v1097_v56  ;;  %v4519_v61 = vadd.f32 %v5328_v2, %v3618_v23  ;;  %v5329_v44 = vld [vmem:[#allocation60_spill] sm:$0xff] }
 0x1a1   : > { %5327 = vst [vmem:[#allocation44_spill] sm:$0xff] %v4512_v29  ;;  %v1098_v20 = vmul.f32 %v998_v34, %v4482_v50  ;;  %v1001_v8 = vmul.f32 %v4501_v28, %v4501_v28  ;;  %v4521_v42 = vpop.eup %3129  ;;  %2341 = vmatmul.mubr.bf16.gmra.mrb[64].mxu1 %v1847_v14  ;;  %v1003_v31 = vmul.f32 %v4510_v35, %v4510_v35 }
 0x1a2   : > { %v1199_v54 = vmul.f32 0.044715, %v1099_v59  ;;  %v1100_v17 = vmul.f32 %v1000_v18, %v4492_v16  ;;  %v4528_v56 = vadd.f32 %v5329_v44, %v3620_v24  ;;  %v4530_v34 = vpop.eup %3131  ;;  %v1297_v47 = vadd.f32 %v1197_v7, %v4466_v41 }
 0x1a3   : > { %v1198_v3 = vmul.f32 0.044715, %v1098_v20  ;;  %v1101_v2 = vmul.f32 %v1001_v8, %v4501_v28  ;;  %v1002_v14 = vmul.f32 %v4519_v61, %v4519_v61  ;;  %v1103_v29 = vmul.f32 %v1003_v31, %v4510_v35 }
 0x1a4   : > { %v1299_v59 = vadd.f32 %v1199_v54, %v4473_v58  ;;  %v1200_v18 = vmul.f32 0.044715, %v1100_v17  ;;  %v1004_v63 = vmul.f32 %v4528_v56, %v4528_v56  ;;  %v1397_v44 = vmul.f32 0.7978846, %v1297_v47 }
 0x1a5   : > { %v1298_v53 = vadd.f32 %v1198_v3, %v4482_v50  ;;  %v1201_v13 = vmul.f32 0.044715, %v1101_v2  ;;  %v1102_v7 = vmul.f32 %v1002_v14, %v4519_v61  ;;  %v1203_v41 = vmul.f32 0.044715, %v1103_v29 }
 0x1a6   : > { %v1399_v20 = vmul.f32 0.7978846, %v1299_v59  ;;  %v1300_v8 = vadd.f32 %v1200_v18, %v4492_v16  ;;  %v1104_v19 = vmul.f32 %v1004_v63, %v4528_v56  ;;  %3133 = vtanh.f32 %v1397_v44 }
 0x1a7   : > { %v1398_v54 = vmul.f32 0.7978846, %v1298_v53  ;;  %v1301_v17 = vadd.f32 %v1201_v13, %v4501_v28  ;;  %v1202_v31 = vmul.f32 0.044715, %v1102_v7  ;;  %v1303_v47 = vadd.f32 %v1203_v41, %v4510_v35  ;;  %v5330_v7 = vld [vmem:[#allocation47_spill] sm:$0xff] }
 0x1a8   : > { %3135 = vtanh.f32 %v1399_v20  ;;  %v1400_v58 = vmul.f32 0.7978846, %v1300_v8  ;;  %v1204_v38 = vmul.f32 0.044715, %v1104_v19  ;;  %v1566_v14 = vadd.f32 1.0, %v4183_v25 }
 0x1a9   : > { %3137 = vtanh.f32 %v1398_v54  ;;  %v1401_v3 = vmul.f32 0.7978846, %v1301_v17  ;;  %v1302_v2 = vadd.f32 %v1202_v31, %v4519_v61  ;;  %v1403_v29 = vmul.f32 0.7978846, %v1303_v47  ;;  %v5331_v54 = vld [vmem:[#allocation48_spill] sm:$0xff] }
 0x1aa   : > { %3139 = vtanh.f32 %v1400_v58  ;;  %v1304_v63 = vadd.f32 %v1204_v38, %v4528_v56  ;;  %v1570_v53 = vadd.f32 1.0, %v4228_v32  ;;  %v1666_v59 = vmul.f32 0.5, %v1566_v14 }
 0x1ab   : > { %3141 = vtanh.f32 %v1401_v3  ;;  %v1402_v13 = vmul.f32 0.7978846, %v1302_v2  ;;  %v1568_v18 = vadd.f32 1.0, %v4197_v51  ;;  %v1572_v44 = vadd.f32 1.0, %v4236_v43 }
 0x1ac   : > { %3143 = vtanh.f32 %v1403_v29  ;;  %v1404_v41 = vmul.f32 0.7978846, %v1304_v63  ;;  %v1670_v19 = vmul.f32 0.5, %v1570_v53  ;;  %v1766_v20 = vmul.f32 %v1666_v59, %v5330_v7 }
 0x1ad   : > { %3145 = vtanh.f32 %v1402_v13  ;;  %v1668_v25 = vmul.f32 0.5, %v1568_v18  ;;  %v1565_v58 = vadd.f32 1.0, %v4140_v27  ;;  %v1672_v32 = vmul.f32 0.5, %v1572_v44  ;;  %v5337_v44 = vld [vmem:[#allocation54_spill] sm:$0xff] }
 0x1ae   : > { %3147 = vtanh.f32 %v1404_v41  ;;  %v1770_v38 = vmul.f32 %v1670_v19, %v4068_v4  ;;  %v1569_v8 = vadd.f32 1.0, %v4217_v15  ;;  %v1567_v31 = vadd.f32 1.0, %v4145_v55  ;;  %v5333_v4 = vld [vmem:[#allocation37_spill] sm:$0xff]  ;;  %v5336_v41 = vld [vmem:[#allocation40_spill] sm:$0xff] }
 0x1af   : > { %v1768_v17 = vmul.f32 %v1668_v25, %v5331_v54  ;;  %v1665_v51 = vmul.f32 0.5, %v1565_v58  ;;  %v1571_v47 = vadd.f32 1.0, %v4223_v57  ;;  %v1772_v3 = vmul.f32 %v1672_v32, %v4088_v26  ;;  %v5335_v26 = vld [vmem:[#allocation49_spill] sm:$0xff] }
 0x1b0   : > { %v1850_v43 = vpack.c.bf16 %v1770_v38, %v1766_v20  ;;  %v1669_v2 = vmul.f32 0.5, %v1569_v8  ;;  %v4562_v27 = vadd.f32 %v4103_v11, %v3614_v21  ;;  %v4564_v14 = vpop.eup %3133  ;;  %v1667_v15 = vmul.f32 0.5, %v1567_v31  ;;  %v5338_v20 = vld [vmem:[#allocation62_spill] sm:$0xff] }
 0x1b1   : > { %v1765_v29 = vmul.f32 %v1665_v51, %v5333_v4  ;;  %v1671_v63 = vmul.f32 0.5, %v1571_v47  ;;  %v4569_v53 = vadd.f32 %v4105_v5, %v3616_v22  ;;  %v1852_v57 = vpack.c.bf16 %v1772_v3, %v1768_v17  ;;  %v5341_v4 = vld [vmem:[#allocation63_spill] sm:$0xff] }
 0x1b2   : > { %5332 = vst [vmem:[#allocation45_spill] sm:$0xff] %v4562_v27  ;;  %v4571_v55 = vpop.eup %3135  ;;  %2212 = vmatprep.mubr.bf16.mxu0 %v1850_v43  ;;  %v1769_v13 = vmul.f32 %v1669_v2, %v5335_v26  ;;  %v1005_v11 = vmul.f32 %v4562_v27, %v4562_v27  ;;  %v4578_v59 = vadd.f32 %v4110_v60, %v3618_v23  ;;  %v5342_v26 = vld [vmem:[#allocation64_spill] sm:$0xff] }
 0x1b3   : > { %5334 = vst [vmem:[#allocation46_spill] sm:$0xff] %v4569_v53  ;;  %v4580_v18 = vpop.eup %3137  ;;  %v1767_v19 = vmul.f32 %v1667_v15, %v5336_v41  ;;  %v1771_v5 = vmul.f32 %v1671_v63, %v5337_v44  ;;  %v1007_v7 = vmul.f32 %v4569_v53, %v4569_v53  ;;  %v4588_v25 = vadd.f32 %v5338_v20, %v3620_v24 }
 0x1b4   : > { %v4590_v58 = vpop.eup %3139  ;;  %2348 = vmatprep.mubr.bf16.mxu1 %v1852_v57  ;;  %v1849_v38 = vpack.c.bf16 %v1769_v13, %v1765_v29  ;;  %v1105_v60 = vmul.f32 %v1005_v11, %v4562_v27  ;;  %v1006_v32 = vmul.f32 %v4578_v59, %v4578_v59  ;;  %v4597_v8 = vadd.f32 %v4119_v37, %v3614_v21 }
 0x1b5   : > { %v4599_v54 = vpop.eup %3141  ;;  %v1851_v17 = vpack.c.bf16 %v1771_v5, %v1767_v19  ;;  %v1107_v51 = vmul.f32 %v1007_v7, %v4569_v53  ;;  %v1008_v31 = vmul.f32 %v4588_v25, %v4588_v25  ;;  %v4606_v47 = vadd.f32 %v4121_v12, %v3616_v22 }
 0x1b6   : > { %5339 = vst [vmem:[#allocation25_spill] sm:$0xff] %v4597_v8  ;;  %v4608_v43 = vpop.eup %3143  ;;  %2213 = vmatmul.mubr.bf16.gmra.mrb[68].mxu0 %v1849_v38  ;;  %v1205_v3 = vmul.f32 0.044715, %v1105_v60  ;;  %v1106_v2 = vmul.f32 %v1006_v32, %v4578_v59  ;;  %v1009_v37 = vmul.f32 %v4597_v8, %v4597_v8  ;;  %v4615_v29 = vadd.f32 %v5341_v4, %v3618_v23 }
 0x1b7   : > { %5340 = vst [vmem:[#allocation50_spill] sm:$0xff] %v4606_v47  ;;  %v4617_v15 = vpop.eup %3145  ;;  %2349 = vmatmul.mubr.bf16.gmra.mrb[68].mxu1 %v1851_v17  ;;  %v1207_v63 = vmul.f32 0.044715, %v1107_v51  ;;  %v1108_v12 = vmul.f32 %v1008_v31, %v4588_v25  ;;  %v1011_v57 = vmul.f32 %v4606_v47, %v4606_v47  ;;  %v4624_v13 = vadd.f32 %v5342_v26, %v3620_v24 }
 0x1b8   : > { %v4626_v11 = vpop.eup %3147  ;;  %v1305_v41 = vadd.f32 %v1205_v3, %v4562_v27  ;;  %v1206_v19 = vmul.f32 0.044715, %v1106_v2  ;;  %v1109_v44 = vmul.f32 %v1009_v37, %v4597_v8  ;;  %v1010_v5 = vmul.f32 %v4615_v29, %v4615_v29 }
 0x1b9   : > { %v1307_v7 = vadd.f32 %v1207_v63, %v4569_v53  ;;  %v1208_v20 = vmul.f32 0.044715, %v1108_v12  ;;  %v1111_v38 = vmul.f32 %v1011_v57, %v4606_v47  ;;  %v1012_v60 = vmul.f32 %v4624_v13, %v4624_v13 }
 0x1ba   : > { %v1405_v32 = vmul.f32 0.7978846, %v1305_v41  ;;  %v1306_v17 = vadd.f32 %v1206_v19, %v4578_v59  ;;  %v1209_v51 = vmul.f32 0.044715, %v1109_v44  ;;  %v1110_v31 = vmul.f32 %v1010_v5, %v4615_v29 }
 0x1bb   : > { %v1407_v3 = vmul.f32 0.7978846, %v1307_v7  ;;  %v1308_v2 = vadd.f32 %v1208_v20, %v4588_v25  ;;  %v1211_v37 = vmul.f32 0.044715, %v1111_v38  ;;  %v1112_v4 = vmul.f32 %v1012_v60, %v4624_v13 }
 0x1bc   : > { %3149 = vtanh.f32 %v1405_v32  ;;  %v1406_v63 = vmul.f32 0.7978846, %v1306_v17  ;;  %v1309_v12 = vadd.f32 %v1209_v51, %v4597_v8  ;;  %v1210_v57 = vmul.f32 0.044715, %v1110_v31 }
 0x1bd   : > { %3151 = vtanh.f32 %v1407_v3  ;;  %v1408_v26 = vmul.f32 0.7978846, %v1308_v2  ;;  %v1311_v41 = vadd.f32 %v1211_v37, %v4606_v47  ;;  %v1212_v53 = vmul.f32 0.044715, %v1112_v4 }
 0x1be   : > { %3153 = vtanh.f32 %v1406_v63  ;;  %v1409_v19 = vmul.f32 0.7978846, %v1309_v12  ;;  %v1310_v44 = vadd.f32 %v1210_v57, %v4615_v29  ;;  %v1574_v5 = vadd.f32 1.0, %v4295_v10  ;;  %v5343_v63 = vld [vmem:[#allocation67_spill] sm:$0xff] }
 0x1bf   : > { %3155 = vtanh.f32 %v1408_v26  ;;  %v1411_v7 = vmul.f32 0.7978846, %v1311_v41  ;;  %v1312_v20 = vadd.f32 %v1212_v53, %v4624_v13  ;;  %v1578_v38 = vadd.f32 1.0, %v4327_v62  ;;  %v5344_v26 = vld [vmem:[#allocation28_spill] sm:$0xff] }
 0x1c0   : > { %3157 = vtanh.f32 %v1409_v19  ;;  %v1410_v60 = vmul.f32 0.7978846, %v1310_v44  ;;  %v1674_v32 = vmul.f32 0.5, %v1574_v5  ;;  %v1576_v17 = vadd.f32 1.0, %v4301_v36  ;;  %v5345_v19 = vld [vmem:[#allocation76_spill] sm:$0xff]  ;;  %v5346_v5 = vld [vmem:[#allocation70_spill] sm:$0xff] }
 0x1c1   : > { %3159 = vtanh.f32 %v1411_v7  ;;  %v1412_v51 = vmul.f32 0.7978846, %v1312_v20  ;;  %v1678_v31 = vmul.f32 0.5, %v1578_v38  ;;  %v1580_v3 = vadd.f32 1.0, %v4336_v48 }
 0x1c2   : > { %3161 = vtanh.f32 %v1410_v60  ;;  %v1774_v2 = vmul.f32 %v1674_v32, %v4152_v1  ;;  %v1676_v10 = vmul.f32 0.5, %v1576_v17  ;;  %v1573_v37 = vadd.f32 1.0, %v4268_v33  ;;  %v5349_v60 = vld [vmem:[#allocation71_spill] sm:$0xff] }
 0x1c3   : > { %3163 = vtanh.f32 %v1412_v51  ;;  %v1778_v53 = vmul.f32 %v1678_v31, %v4191_v52  ;;  %v1680_v62 = vmul.f32 0.5, %v1580_v3  ;;  %v1577_v4 = vadd.f32 1.0, %v4314_v30  ;;  %v5348_v52 = vld [vmem:[#allocation65_spill] sm:$0xff]  ;;  %v5352_v51 = vld [vmem:[#allocation68_spill] sm:$0xff] }
 0x1c4   : > { %v1776_v12 = vmul.f32 %v1676_v10, %v5343_v63  ;;  %v1673_v36 = vmul.f32 0.5, %v1573_v37  ;;  %v1575_v57 = vadd.f32 1.0, %v4275_v0  ;;  %v1579_v41 = vadd.f32 1.0, %v5344_v26 }
 0x1c5   : > { %v1854_v48 = vpack.c.bf16 %v1778_v53, %v1774_v2  ;;  %v1780_v44 = vmul.f32 %v1680_v62, %v5345_v19  ;;  %v1677_v1 = vmul.f32 0.5, %v1577_v4  ;;  %v4658_v33 = vadd.f32 %v5346_v5, %v3614_v21  ;;  %v5353_v2 = vld [vmem:[#allocation72_spill] sm:$0xff]  ;;  %v5355_v53 = vld [vmem:[#allocation66_spill] sm:$0xff]  ;;  %v5356_v4 = vld [vmem:[#allocation69_spill] sm:$0xff] }
 0x1c6   : > { %v4660_v7 = vpop.eup %3149  ;;  %v1773_v20 = vmul.f32 %v1673_v36, %v5348_v52  ;;  %v1675_v30 = vmul.f32 0.5, %v1575_v57  ;;  %v1679_v38 = vmul.f32 0.5, %v1579_v41  ;;  %v4665_v32 = vadd.f32 %v5349_v60, %v3616_v22  ;;  %v5361_v60 = vld [vmem:[#allocation75_spill] sm:$0xff] }
 0x1c7   : > { %5347 = vst [vmem:[#allocation33_spill] sm:$0xff] %v4658_v33  ;;  %v4667_v0 = vpop.eup %3151  ;;  %2220 = vmatprep.mubr.bf16.mxu0 %v1854_v48  ;;  %v1856_v17 = vpack.c.bf16 %v1780_v44, %v1776_v12  ;;  %v1777_v31 = vmul.f32 %v1677_v1, %v5352_v51  ;;  %v1013_v3 = vmul.f32 %v4658_v33, %v4658_v33  ;;  %v5357_v12 = vld [vmem:[#allocation73_spill] sm:$0xff]  ;;  %v5359_v44 = vld [vmem:[#allocation74_spill] sm:$0xff] }
 0x1c8   : > { %5350 = vst [vmem:[#allocation61_spill] sm:$0xff] %v4665_v32  ;;  %5351 = vst [vmem:[#allocation26_spill] sm:$0xff] %v4667_v0  ;;  %v4674_v10 = vadd.f32 %v5353_v2, %v3618_v23  ;;  %v4676_v37 = vpop.eup %3153  ;;  %v1775_v62 = vmul.f32 %v1675_v30, %v5355_v53  ;;  %v1779_v63 = vmul.f32 %v1679_v38, %v5356_v4  ;;  %v5364_v2 = vld [vmem:[#allocation77_spill] sm:$0xff] }
 0x1c9   : > { %v1015_v36 = vmul.f32 %v4665_v32, %v4665_v32  ;;  %v4684_v57 = vadd.f32 %v5357_v12, %v3620_v24  ;;  %v4686_v26 = vpop.eup %3155  ;;  %2356 = vmatprep.mubr.bf16.mxu1 %v1856_v17  ;;  %v1853_v41 = vpack.c.bf16 %v1777_v31, %v1773_v20  ;;  %v1113_v48 = vmul.f32 %v1013_v3, %v4658_v33  ;;  %v5366_v12 = vld [vmem:[#allocation78_spill] sm:$0xff] }
 0x1ca   : > { %5354 = vst [vmem:[#allocation53_spill] sm:$0xff] %v4674_v10  ;;  %v1014_v19 = vmul.f32 %v4674_v10, %v4674_v10  ;;  %v4693_v1 = vadd.f32 %v5359_v44, %v3614_v21  ;;  %v4695_v5 = vpop.eup %3157  ;;  %v1855_v52 = vpack.c.bf16 %v1779_v63, %v1775_v62  ;;  %v4702_v20 = vadd.f32 %v5361_v60, %v3616_v22 }
 0x1cb   : > { %5358 = vst [vmem:[#allocation36_spill] sm:$0xff] %v4684_v57  ;;  %v1115_v30 = vmul.f32 %v1015_v36, %v4665_v32  ;;  %v1016_v38 = vmul.f32 %v4684_v57, %v4684_v57  ;;  %v4704_v17 = vpop.eup %3159  ;;  %2221 = vmatmul.mubr.bf16.gmra.mrb[72].mxu0 %v1853_v41  ;;  %v1213_v51 = vmul.f32 0.044715, %v1113_v48  ;;  %v4711_v53 = vadd.f32 %v5364_v2, %v3618_v23 }
 0x1cc   : > { %5360 = vst [vmem:[#allocation51_spill] sm:$0xff] %v4693_v1  ;;  %5362 = vst [vmem:[#allocation23_spill] sm:$0xff] %v4702_v20  ;;  %v1114_v31 = vmul.f32 %v1014_v19, %v4674_v10  ;;  %v1017_v3 = vmul.f32 %v4693_v1, %v4693_v1  ;;  %v4713_v62 = vpop.eup %3161  ;;  %2357 = vmatmul.mubr.bf16.gmra.mrb[72].mxu1 %v1855_v52  ;;  %v1019_v36 = vmul.f32 %v4702_v20, %v4702_v20 }
 0x1cd   : > { %5363 = vst [vmem:[#allocation52_spill] sm:$0xff] %v4704_v17  ;;  %5365 = vst [vmem:[#allocation27_spill] sm:$0xff] %v4711_v53  ;;  %v1215_v4 = vmul.f32 0.044715, %v1115_v30  ;;  %v1116_v63 = vmul.f32 %v1016_v38, %v4684_v57  ;;  %v4720_v41 = vadd.f32 %v5366_v12, %v3620_v24  ;;  %v4722_v48 = vpop.eup %3163  ;;  %v1313_v19 = vadd.f32 %v1213_v51, %v4658_v33 }
 0x1ce   : > { %v1214_v44 = vmul.f32 0.044715, %v1114_v31  ;;  %v1117_v60 = vmul.f32 %v1017_v3, %v4693_v1  ;;  %v1018_v52 = vmul.f32 %v4711_v53, %v4711_v53  ;;  %v1119_v2 = vmul.f32 %v1019_v36, %v4702_v20 }
 0x1cf   : > { %5367 = vst [vmem:[#allocation55_spill] sm:$0xff] %v4720_v41  ;;  %v1315_v30 = vadd.f32 %v1215_v4, %v4665_v32  ;;  %v1216_v38 = vmul.f32 0.044715, %v1116_v63  ;;  %v1020_v47 = vmul.f32 %v4720_v41, %v4720_v41  ;;  %v1413_v12 = vmul.f32 0.7978846, %v1313_v19 }
 0x1d0   : > { %v1314_v8 = vadd.f32 %v1214_v44, %v4674_v10  ;;  %v1217_v17 = vmul.f32 0.044715, %v1117_v60  ;;  %v1118_v51 = vmul.f32 %v1018_v52, %v4711_v53  ;;  %v1219_v33 = vmul.f32 0.044715, %v1119_v2 }
 0x1d1   : > { %v1415_v31 = vmul.f32 0.7978846, %v1315_v30  ;;  %v1316_v3 = vadd.f32 %v1216_v38, %v4684_v57  ;;  %v1120_v27 = vmul.f32 %v1020_v47, %v4720_v41  ;;  %3165 = vtanh.f32 %v1413_v12 }
 0x1d2   : > { %v1414_v4 = vmul.f32 0.7978846, %v1314_v8  ;;  %v1317_v63 = vadd.f32 %v1217_v17, %v4693_v1  ;;  %v1218_v36 = vmul.f32 0.044715, %v1118_v51  ;;  %v1319_v19 = vadd.f32 %v1219_v33, %v4702_v20  ;;  %v5368_v51 = vld [vmem:[#allocation20_spill] sm:$0xff] }
 0x1d3   : > { %3167 = vtanh.f32 %v1415_v31  ;;  %v1416_v32 = vmul.f32 0.7978846, %v1316_v3  ;;  %v1220_v0 = vmul.f32 0.044715, %v1120_v27  ;;  %v1582_v52 = vadd.f32 1.0, %v4388_v46 }
 0x1d4   : > { %3169 = vtanh.f32 %v1414_v4  ;;  %v1417_v44 = vmul.f32 0.7978846, %v1317_v63  ;;  %v1318_v60 = vadd.f32 %v1218_v36, %v4711_v53  ;;  %v1419_v30 = vmul.f32 0.7978846, %v1319_v19  ;;  %v5371_v63 = vld [vmem:[#allocation22_spill] sm:$0xff]  ;;  %v5372_v19 = vld [vmem:[#allocation11_spill] sm:$0xff] }
 0x1d5   : > { %3171 = vtanh.f32 %v1416_v32  ;;  %v1320_v47 = vadd.f32 %v1220_v0, %v4720_v41  ;;  %v1586_v8 = vadd.f32 1.0, %v4425_v45  ;;  %v1682_v38 = vmul.f32 0.5, %v1582_v52  ;;  %v5369_v32 = vld [vmem:[#allocation14_spill] sm:$0xff]  ;;  %v5370_v0 = vld [vmem:[#allocation8_spill] sm:$0xff] }
 0x1d6   : > { %3173 = vtanh.f32 %v1417_v44  ;;  %v1418_v17 = vmul.f32 0.7978846, %v1318_v60  ;;  %v1584_v2 = vadd.f32 1.0, %v4398_v40  ;;  %v1588_v12 = vadd.f32 1.0, %v4438_v9  ;;  %v5373_v60 = vld [vmem:[#allocation19_spill] sm:$0xff] }
 0x1d7   : > { %3175 = vtanh.f32 %v1419_v30  ;;  %v1420_v33 = vmul.f32 0.7978846, %v1320_v47  ;;  %v1686_v27 = vmul.f32 0.5, %v1586_v8  ;;  %v1782_v31 = vmul.f32 %v1682_v38, %v5368_v51  ;;  %v5374_v30 = vld [vmem:[#allocation12_spill] sm:$0xff]  ;;  %v5375_v8 = vld [vmem:[#allocation6_spill] sm:$0xff] }
 0x1d8   : > { %3177 = vtanh.f32 %v1418_v17  ;;  %v1684_v46 = vmul.f32 0.5, %v1584_v2  ;;  %v1581_v3 = vadd.f32 1.0, %v5369_v32  ;;  %v1688_v45 = vmul.f32 0.5, %v1588_v12  ;;  %v5376_v2 = vld [vmem:[#allocation79_spill] sm:$0xff] }
 0x1d9   : > { %3179 = vtanh.f32 %v1420_v33  ;;  %v1786_v4 = vmul.f32 %v1686_v27, %v5370_v0  ;;  %v1585_v36 = vadd.f32 1.0, %v5371_v63  ;;  %v1583_v52 = vadd.f32 1.0, %v5373_v60  ;;  %v5379_v27 = vld [vmem:[#allocation10_spill] sm:$0xff] }
 0x1da   : > { %v1784_v44 = vmul.f32 %v1684_v46, %v5372_v19  ;;  %v1681_v40 = vmul.f32 0.5, %v1581_v3  ;;  %v1587_v47 = vadd.f32 1.0, %v5374_v30  ;;  %v1788_v17 = vmul.f32 %v1688_v45, %v5375_v8  ;;  %v5380_v46 = vld [vmem:[#allocation80_spill] sm:$0xff]  ;;  %v5384_v19 = vld [vmem:[#allocation81_spill] sm:$0xff] }
 0x1db   : > { %v1858_v9 = vpack.c.bf16 %v1786_v4, %v1782_v31  ;;  %v1685_v38 = vmul.f32 0.5, %v1585_v36  ;;  %v4754_v51 = vadd.f32 %v5376_v2, %v3614_v21  ;;  %v4756_v33 = vpop.eup %3165  ;;  %v1683_v32 = vmul.f32 0.5, %v1583_v52  ;;  %v5383_v4 = vld [vmem:[#allocation16_spill] sm:$0xff]  ;;  %v5385_v52 = vld [vmem:[#allocation7_spill] sm:$0xff] }
 0x1dc   : > { %5378 = vst [vmem:[#allocation32_spill] sm:$0xff] %v4756_v33  ;;  %v1781_v12 = vmul.f32 %v1681_v40, %v5379_v27  ;;  %v1687_v0 = vmul.f32 0.5, %v1587_v47  ;;  %v4761_v3 = vadd.f32 %v5380_v46, %v3616_v22  ;;  %v1860_v31 = vpack.c.bf16 %v1788_v17, %v1784_v44  ;;  %v5386_v47 = vld [vmem:[#allocation21_spill] sm:$0xff]  ;;  %v5387_v44 = vld [vmem:[#allocation82_spill] sm:$0xff] }
 0x1dd   : > { %5377 = vst [vmem:[#allocation24_spill] sm:$0xff] %v4754_v51  ;;  %v4763_v63 = vpop.eup %3167  ;;  %2228 = vmatprep.mubr.bf16.mxu0 %v1858_v9  ;;  %v1785_v45 = vmul.f32 %v1685_v38, %v5383_v4  ;;  %v1021_v36 = vmul.f32 %v4754_v51, %v4754_v51  ;;  %v4770_v60 = vadd.f32 %v5384_v19, %v3618_v23 }
 0x1de   : > { %5381 = vst [vmem:[#allocation56_spill] sm:$0xff] %v4761_v3  ;;  %5382 = vst [vmem:[#allocation57_spill] sm:$0xff] %v4763_v63  ;;  %v4772_v40 = vpop.eup %3169  ;;  %v1783_v30 = vmul.f32 %v1683_v32, %v5385_v52  ;;  %v1787_v8 = vmul.f32 %v1687_v0, %v5386_v47  ;;  %v1023_v2 = vmul.f32 %v4761_v3, %v4761_v3  ;;  %2364 = vmatprep.mubr.bf16.mxu1 %v1860_v31  ;;  %v5388_v32 = vld [vmem:[#allocation83_spill] sm:$0xff]  ;;  %v5390_v31 = vld [vmem:[#allocation84_spill] sm:$0xff] }
 0x1df   : > { %v4780_v9 = vadd.f32 %v5387_v44, %v3620_v24  ;;  %v4782_v17 = vpop.eup %3171  ;;  %v1857_v38 = vpack.c.bf16 %v1785_v45, %v1781_v12  ;;  %v1121_v27 = vmul.f32 %v1021_v36, %v4754_v51  ;;  %v1022_v46 = vmul.f32 %v4770_v60, %v4770_v60 }
 0x1e0   : > { %v4789_v4 = vadd.f32 %v5388_v32, %v3614_v21  ;;  %v4791_v0 = vpop.eup %3173  ;;  %v1859_v19 = vpack.c.bf16 %v1787_v8, %v1783_v30  ;;  %v1123_v52 = vmul.f32 %v1023_v2, %v4761_v3  ;;  %v4798_v12 = vadd.f32 %v5390_v31, %v3616_v22  ;;  %v5392_v30 = vld [vmem:[#allocation85_spill] sm:$0xff] }
 0x1e1   : > { %5389 = vst [vmem:[#allocation58_spill] sm:$0xff] %v4791_v0  ;;  %v1024_v47 = vmul.f32 %v4780_v9, %v4780_v9  ;;  %v4800_v45 = vpop.eup %3175  ;;  %2229 = vmatmul.mubr.bf16.gmra.mrb[76].mxu0 %v1857_v38  ;;  %v1221_v36 = vmul.f32 0.044715, %v1121_v27  ;;  %v1122_v44 = vmul.f32 %v1022_v46, %v4770_v60  ;;  %v4807_v8 = vadd.f32 %v5392_v30, %v3618_v23  ;;  %v5393_v38 = vld [vmem:[#allocation86_spill] sm:$0xff] }
 0x1e2   : > { %5391 = vst [vmem:[#allocation59_spill] sm:$0xff] %v4800_v45  ;;  %v1025_v32 = vmul.f32 %v4789_v4, %v4789_v4  ;;  %v4809_v2 = vpop.eup %3177  ;;  %2365 = vmatmul.mubr.bf16.gmra.mrb[76].mxu1 %v1859_v19  ;;  %v1223_v20 = vmul.f32 0.044715, %v1123_v52  ;;  %v1027_v1 = vmul.f32 %v4798_v12, %v4798_v12  ;;  %v4816_v27 = vadd.f32 %v5393_v38, %v3620_v24 }
 0x1e3   : > { %v1124_v31 = vmul.f32 %v1024_v47, %v4780_v9  ;;  %v4818_v46 = vpop.eup %3179  ;;  %v1321_v45 = vadd.f32 %v1221_v36, %v4754_v51  ;;  %v1222_v63 = vmul.f32 0.044715, %v1122_v44  ;;  %v1026_v19 = vmul.f32 %v4807_v8, %v4807_v8 }
 0x1e4   : > { %v1125_v30 = vmul.f32 %v1025_v32, %v4789_v4  ;;  %v1323_v52 = vadd.f32 %v1223_v20, %v4761_v3  ;;  %v1127_v41 = vmul.f32 %v1027_v1, %v4798_v12  ;;  %v1028_v57 = vmul.f32 %v4816_v27, %v4816_v27 }
 0x1e5   : > { %v1224_v47 = vmul.f32 0.044715, %v1124_v31  ;;  %v1421_v38 = vmul.f32 0.7978846, %v1321_v45  ;;  %v1322_v0 = vadd.f32 %v1222_v63, %v4770_v60  ;;  %v1126_v36 = vmul.f32 %v1026_v19, %v4807_v8 }
 0x1e6   : > { %v1225_v53 = vmul.f32 0.044715, %v1125_v30  ;;  %v1423_v44 = vmul.f32 0.7978846, %v1323_v52  ;;  %v1227_v51 = vmul.f32 0.044715, %v1127_v41  ;;  %v1128_v10 = vmul.f32 %v1028_v57, %v4816_v27 }
 0x1e7   : > { %v1324_v32 = vadd.f32 %v1224_v47, %v4780_v9  ;;  %3181 = vtanh.f32 %v1421_v38  ;;  %v1422_v20 = vmul.f32 0.7978846, %v1322_v0  ;;  %v1226_v1 = vmul.f32 0.044715, %v1126_v36 }
 0x1e8   : > { %v1325_v31 = vadd.f32 %v1225_v53, %v4789_v4  ;;  %3183 = vtanh.f32 %v1423_v44  ;;  %v1327_v45 = vadd.f32 %v1227_v51, %v4798_v12  ;;  %v1228_v33 = vmul.f32 0.044715, %v1128_v10 }
 0x1e9   : > { %v1424_v3 = vmul.f32 0.7978846, %v1324_v32  ;;  %3185 = vtanh.f32 %v1422_v20  ;;  %v1326_v30 = vadd.f32 %v1226_v1, %v4807_v8  ;;  %v1590_v19 = vadd.f32 1.0, %v4484_v6  ;;  %v5396_v20 = vld [vmem:[#allocation43_spill] sm:$0xff] }
 0x1ea   : > { %v1425_v63 = vmul.f32 0.7978846, %v1325_v31  ;;  %v1427_v41 = vmul.f32 0.7978846, %v1327_v45  ;;  %v1328_v57 = vadd.f32 %v1228_v33, %v4816_v27  ;;  %v1594_v0 = vadd.f32 1.0, %v4521_v42  ;;  %v5395_v33 = vld [vmem:[#allocation39_spill] sm:$0xff] }
 0x1eb   : > { %3187 = vtanh.f32 %v1424_v3  ;;  %v1426_v53 = vmul.f32 0.7978846, %v1326_v30  ;;  %v1690_v52 = vmul.f32 0.5, %v1590_v19  ;;  %v1592_v47 = vadd.f32 1.0, %v4494_v49  ;;  %v5394_v3 = vld [vmem:[#allocation13_spill] sm:$0xff]  ;;  %v5397_v1 = vld [vmem:[#allocation15_spill] sm:$0xff] }
 0x1ec   : > { %3189 = vtanh.f32 %v1425_v63  ;;  %v1428_v51 = vmul.f32 0.7978846, %v1328_v57  ;;  %v1694_v10 = vmul.f32 0.5, %v1594_v0  ;;  %v1596_v38 = vadd.f32 1.0, %v4530_v34  ;;  %v5398_v63 = vld [vmem:[#allocation42_spill] sm:$0xff]  ;;  %v5399_v19 = vld [vmem:[#allocation44_spill] sm:$0xff] }
 0x1ed   : > { %3191 = vtanh.f32 %v1427_v41  ;;  %v1790_v36 = vmul.f32 %v1690_v52, %v4386_v39  ;;  %v1692_v6 = vmul.f32 0.5, %v1592_v47  ;;  %v1589_v44 = vadd.f32 1.0, %v5394_v3  ;;  %v5400_v57 = vld [vmem:[#allocation17_spill] sm:$0xff] }
 0x1ee   : > { %3193 = vtanh.f32 %v1426_v53  ;;  %v1794_v32 = vmul.f32 %v1694_v10, %v5395_v33  ;;  %v1696_v42 = vmul.f32 0.5, %v1596_v38  ;;  %v1593_v31 = vadd.f32 1.0, %v5396_v20  ;;  %v5401_v53 = vld [vmem:[#allocation5_spill] sm:$0xff] }
 0x1ef   : > { %3195 = vtanh.f32 %v1428_v51  ;;  %v1792_v45 = vmul.f32 %v1692_v6, %v5397_v1  ;;  %v1689_v49 = vmul.f32 0.5, %v1589_v44  ;;  %v1591_v30 = vadd.f32 1.0, %v5398_v63  ;;  %v5402_v51 = vld [vmem:[#allocation35_spill] sm:$0xff]  ;;  %v5403_v6 = vld [vmem:[#allocation30_spill] sm:$0xff]  ;;  %v5405_v20 = vld [vmem:[#allocation9_spill] sm:$0xff] }
 0x1f0   : > { %v1595_v41 = vadd.f32 1.0, %v5399_v19  ;;  %v1862_v34 = vpack.c.bf16 %v1794_v32, %v1790_v36  ;;  %v1796_v0 = vmul.f32 %v1696_v42, %v5400_v57  ;;  %v1693_v39 = vmul.f32 0.5, %v1593_v31  ;;  %v5404_v32 = vld [vmem:[#allocation34_spill] sm:$0xff] }
 0x1f1   : > { %v4850_v52 = vadd.f32 %v5401_v53, %v3614_v21  ;;  %v4852_v47 = vpop.eup %3181  ;;  %v1789_v10 = vmul.f32 %v1689_v49, %v5402_v51  ;;  %v1691_v38 = vmul.f32 0.5, %v1591_v30  ;;  %v4857_v44 = vadd.f32 %v5403_v6, %v3616_v22  ;;  %v5406_v49 = vld [vmem:[#allocation29_spill] sm:$0xff]  ;;  %v5407_v30 = vld [vmem:[#allocation38_spill] sm:$0xff] }
 0x1f2   : > { %v1695_v3 = vmul.f32 0.5, %v1595_v41  ;;  %v4859_v33 = vpop.eup %3183  ;;  %2236 = vmatprep.mubr.bf16.mxu0 %v1862_v34  ;;  %v1864_v36 = vpack.c.bf16 %v1796_v0, %v1792_v45  ;;  %v1793_v42 = vmul.f32 %v1693_v39, %v5404_v32  ;;  %v4866_v31 = vadd.f32 %v5405_v20, %v3618_v23  ;;  %v5408_v45 = vld [vmem:[#allocation31_spill] sm:$0xff] }
 0x1f3   : > { %v1029_v21 = vmul.f32 %v4850_v52, %v4850_v52  ;;  %v4868_v1 = vpop.eup %3185  ;;  %v1791_v63 = vmul.f32 %v1691_v38, %v5406_v49  ;;  %v1031_v19 = vmul.f32 %v4857_v44, %v4857_v44  ;;  %v4876_v41 = vadd.f32 %v5408_v45, %v3620_v24 }
 0x1f4   : > { %v1795_v22 = vmul.f32 %v1695_v3, %v5407_v30  ;;  %2372 = vmatprep.mubr.bf16.mxu1 %v1864_v36  ;;  %v1861_v57 = vpack.c.bf16 %v1793_v42, %v1789_v10  ;;  %v1030_v0 = vmul.f32 %v4866_v31, %v4866_v31  ;;  %v1598_v39 = vadd.f32 1.0, %v4580_v18 }
 0x1f5   : > { %v4878_v34 = vpop.eup %3187  ;;  %v1129_v23 = vmul.f32 %v1029_v21, %v4850_v52  ;;  %v1131_v38 = vmul.f32 %v1031_v19, %v4857_v44  ;;  %v1032_v24 = vmul.f32 %v4876_v41, %v4876_v41  ;;  %v1602_v3 = vadd.f32 1.0, %v4617_v15 }
 0x1f6   : > { %v4884_v53 = vpop.eup %3189  ;;  %v1863_v51 = vpack.c.bf16 %v1795_v22, %v1791_v63  ;;  %2237 = vmatmul.mubr.bf16.gmra.mrb[80].mxu0 %v1861_v57  ;;  %v1130_v36 = vmul.f32 %v1030_v0, %v4866_v31  ;;  %v1698_v32 = vmul.f32 0.5, %v1598_v39  ;;  %v1600_v42 = vadd.f32 1.0, %v4590_v58 }
 0x1f7   : > { %v4890_v6 = vpop.eup %3191  ;;  %v1229_v10 = vmul.f32 0.044715, %v1129_v23  ;;  %v1231_v21 = vmul.f32 0.044715, %v1131_v38  ;;  %v1132_v20 = vmul.f32 %v1032_v24, %v4876_v41  ;;  %v1702_v49 = vmul.f32 0.5, %v1602_v3 }
 0x1f8   : > { %v4894_v18 = vpop.eup %3193  ;;  %2373 = vmatmul.mubr.bf16.gmra.mrb[80].mxu1 %v1863_v51  ;;  %v1604_v63 = vadd.f32 1.0, %v4626_v11  ;;  %v1230_v22 = vmul.f32 0.044715, %v1130_v36  ;;  %v1798_v19 = vmul.f32 %v1698_v32, %v4482_v50  ;;  %v1700_v45 = vmul.f32 0.5, %v1600_v42 }
 0x1f9   : > { %v4898_v30 = vpop.eup %3195  ;;  %v1329_v15 = vadd.f32 %v1229_v10, %v4850_v52  ;;  %v1331_v57 = vadd.f32 %v1231_v21, %v4857_v44  ;;  %v1232_v58 = vmul.f32 0.044715, %v1132_v20  ;;  %v1802_v23 = vmul.f32 %v1702_v49, %v4519_v61 }
 0x1fa   : > { %v1704_v0 = vmul.f32 0.5, %v1604_v63  ;;  %v1330_v51 = vadd.f32 %v1230_v22, %v4866_v31  ;;  %v1800_v38 = vmul.f32 %v1700_v45, %v4492_v16  ;;  %v1597_v11 = vadd.f32 1.0, %v4564_v14  ;;  %v5409_v14 = vld [vmem:[#allocation41_spill] sm:$0xff] }
 0x1fb   : > { %v1429_v39 = vmul.f32 0.7978846, %v1329_v15  ;;  %v1431_v24 = vmul.f32 0.7978846, %v1331_v57  ;;  %v1332_v3 = vadd.f32 %v1232_v58, %v4876_v41  ;;  %v1866_v10 = vpack.c.bf16 %v1802_v23, %v1798_v19  ;;  %v5410_v57 = vld [vmem:[#allocation18_spill] sm:$0xff] }
 0x1fc   : > { %v1804_v50 = vmul.f32 %v1704_v0, %v4528_v56  ;;  %v1430_v36 = vmul.f32 0.7978846, %v1330_v51  ;;  %v1601_v32 = vadd.f32 1.0, %v4599_v54  ;;  %v1697_v42 = vmul.f32 0.5, %v1597_v11 }
 0x1fd   : > { %3197 = vtanh.f32 %v1429_v39  ;;  %v1432_v61 = vmul.f32 0.7978846, %v1332_v3  ;;  %2244 = vmatprep.mubr.bf16.mxu0 %v1866_v10  ;;  %v1599_v20 = vadd.f32 1.0, %v4571_v55  ;;  %v1603_v63 = vadd.f32 1.0, %v4608_v43  ;;  %v5411_v10 = vld [vmem:[#allocation26_spill] sm:$0xff] }
 0x1fe   : > { %3199 = vtanh.f32 %v1431_v24  ;;  %v1868_v21 = vpack.c.bf16 %v1804_v50, %v1800_v38  ;;  %v1701_v16 = vmul.f32 0.5, %v1601_v32  ;;  %v1797_v49 = vmul.f32 %v1697_v42, %v5409_v14  ;;  %v5413_v42 = vld [vmem:[#allocation52_spill] sm:$0xff] }
 0x1ff   : > { %3201 = vtanh.f32 %v1430_v36  ;;  %v1699_v56 = vmul.f32 0.5, %v1599_v20  ;;  %v1606_v15 = vadd.f32 1.0, %v4676_v37  ;;  %v1610_v54 = vadd.f32 1.0, %v4713_v62 }
 0x200   : > { %3203 = vtanh.f32 %v1432_v61  ;;  %2380 = vmatprep.mubr.bf16.mxu1 %v1868_v21  ;;  %v1801_v22 = vmul.f32 %v1701_v16, %v4501_v28  ;;  %v1703_v19 = vmul.f32 0.5, %v1603_v63  ;;  %v1608_v45 = vadd.f32 1.0, %v4686_v26 }
 0x201   : > { %v1612_v55 = vadd.f32 1.0, %v4722_v48  ;;  %v1799_v58 = vmul.f32 %v1699_v56, %v5410_v57  ;;  %v1706_v23 = vmul.f32 0.5, %v1606_v15  ;;  %v1710_v0 = vmul.f32 0.5, %v1610_v54  ;;  %v5415_v15 = vld [vmem:[#allocation46_spill] sm:$0xff] }
 0x202   : > { %v1605_v43 = vadd.f32 1.0, %v4660_v7  ;;  %v1865_v39 = vpack.c.bf16 %v1801_v22, %v1797_v49  ;;  %v1803_v51 = vmul.f32 %v1703_v19, %v4510_v35  ;;  %v1708_v38 = vmul.f32 0.5, %v1608_v45  ;;  %v5412_v35 = vld [vmem:[#allocation45_spill] sm:$0xff]  ;;  %v5416_v45 = vld [vmem:[#allocation32_spill] sm:$0xff]  ;;  %v5417_v57 = vld [vmem:[#allocation50_spill] sm:$0xff] }
 0x203   : > { %v1712_v37 = vmul.f32 0.5, %v1612_v55  ;;  %v1806_v62 = vmul.f32 %v1706_v23, %v4578_v59  ;;  %v1810_v28 = vmul.f32 %v1710_v0, %v4615_v29  ;;  %v1609_v11 = vadd.f32 1.0, %v4695_v5 }
 0x204   : > { %v1705_v26 = vmul.f32 0.5, %v1605_v43  ;;  %2245 = vmatmul.mubr.bf16.gmra.mrb[84].mxu0 %v1865_v39  ;;  %v1867_v48 = vpack.c.bf16 %v1803_v51, %v1799_v58  ;;  %v1808_v24 = vmul.f32 %v1708_v38, %v4588_v25  ;;  %v1607_v7 = vadd.f32 1.0, %v5411_v10  ;;  %v5418_v43 = vld [vmem:[#allocation53_spill] sm:$0xff]  ;;  %v5419_v51 = vld [vmem:[#allocation27_spill] sm:$0xff]  ;;  %v5420_v38 = vld [vmem:[#allocation58_spill] sm:$0xff] }
 0x205   : > { %v1812_v3 = vmul.f32 %v1712_v37, %v4624_v13  ;;  %v1870_v50 = vpack.c.bf16 %v1810_v28, %v1806_v62  ;;  %v1709_v36 = vmul.f32 0.5, %v1609_v11  ;;  %v1611_v61 = vadd.f32 1.0, %v5413_v42  ;;  %v5414_v13 = vld [vmem:[#allocation25_spill] sm:$0xff]  ;;  %v5421_v28 = vld [vmem:[#allocation36_spill] sm:$0xff] }
 0x206   : > { %v1805_v32 = vmul.f32 %v1705_v26, %v5412_v35  ;;  %2381 = vmatmul.mubr.bf16.gmra.mrb[84].mxu1 %v1867_v48  ;;  %v1707_v5 = vmul.f32 0.5, %v1607_v7  ;;  %v1614_v21 = vadd.f32 1.0, %v4772_v40  ;;  %v1618_v20 = vadd.f32 1.0, %v4809_v2  ;;  %v5422_v26 = vld [vmem:[#allocation55_spill] sm:$0xff] }
 0x207   : > { %v4929_v59 = vpop.eup %3197  ;;  %v1872_v29 = vpack.c.bf16 %v1812_v3, %v1808_v24  ;;  %2252 = vmatprep.mubr.bf16.mxu0 %v1870_v50  ;;  %v1809_v16 = vmul.f32 %v1709_v36, %v5414_v13  ;;  %v1711_v14 = vmul.f32 0.5, %v1611_v61  ;;  %v1616_v49 = vadd.f32 1.0, %v4782_v17  ;;  %v5423_v24 = vld [vmem:[#allocation57_spill] sm:$0xff]  ;;  %v5425_v35 = vld [vmem:[#allocation59_spill] sm:$0xff] }
 0x208   : > { %v4933_v25 = vpop.eup %3199  ;;  %v1620_v63 = vadd.f32 1.0, %v4818_v46  ;;  %v1807_v54 = vmul.f32 %v1707_v5, %v5415_v15  ;;  %v1714_v22 = vmul.f32 0.5, %v1614_v21  ;;  %v1718_v19 = vmul.f32 0.5, %v1618_v20  ;;  %v5424_v50 = vld [vmem:[#allocation33_spill] sm:$0xff]  ;;  %v5426_v21 = vld [vmem:[#allocation51_spill] sm:$0xff] }
 0x209   : > { %v3202_v56 = vpop.eup %3201  ;;  %2388 = vmatprep.mubr.bf16.mxu1 %v1872_v29  ;;  %v1613_v40 = vadd.f32 1.0, %v5416_v45  ;;  %v1869_v2 = vpack.c.bf16 %v1809_v16, %v1805_v32  ;;  %v1811_v58 = vmul.f32 %v1711_v14, %v5417_v57  ;;  %v1716_v23 = vmul.f32 0.5, %v1616_v49  ;;  %v5427_v49 = vld [vmem:[#allocation61_spill] sm:$0xff] }
 0x20a   : > { %v3204_v55 = vpop.eup %3203  ;;  %v1720_v0 = vmul.f32 0.5, %v1620_v63  ;;  %v1814_v39 = vmul.f32 %v1714_v22, %v5418_v43  ;;  %v1818_v17 = vmul.f32 %v1718_v19, %v5419_v51  ;;  %v1617_v46 = vadd.f32 1.0, %v5420_v38 }
 0x20b   : > { %v1713_v37 = vmul.f32 0.5, %v1613_v40  ;;  %v1871_v62 = vpack.c.bf16 %v1811_v58, %v1807_v54  ;;  %v1816_v11 = vmul.f32 %v1716_v23, %v5421_v28  ;;  %v1615_v3 = vadd.f32 1.0, %v5423_v24 }
 0x20c   : > { %v1820_v48 = vmul.f32 %v1720_v0, %v5422_v26  ;;  %2253 = vmatmul.mubr.bf16.gmra.mrb[88].mxu0 %v1869_v2  ;;  %v1874_v10 = vpack.c.bf16 %v1818_v17, %v1814_v39  ;;  %v1717_v7 = vmul.f32 0.5, %v1617_v46  ;;  %v1619_v32 = vadd.f32 1.0, %v5425_v35 }
 0x20d   : > { %v1813_v36 = vmul.f32 %v1713_v37, %v5424_v50  ;;  %v1715_v61 = vmul.f32 0.5, %v1615_v3  ;;  %v1622_v29 = vadd.f32 1.0, %v4868_v1  ;;  %v1626_v5 = vadd.f32 1.0, %v4894_v18  ;;  %v5428_v1 = vld [vmem:[#allocation23_spill] sm:$0xff] }
 0x20e   : > { %v1876_v42 = vpack.c.bf16 %v1820_v48, %v1816_v11  ;;  %2389 = vmatmul.mubr.bf16.gmra.mrb[88].mxu1 %v1871_v62  ;;  %2260 = vmatprep.mubr.bf16.mxu0 %v1874_v10  ;;  %v1817_v20 = vmul.f32 %v1717_v7, %v5426_v21  ;;  %v1719_v13 = vmul.f32 0.5, %v1619_v32  ;;  %v1624_v16 = vadd.f32 1.0, %v4878_v34  ;;  %v5430_v11 = vld [vmem:[#allocation56_spill] sm:$0xff]  ;;  %v4978_v50 = vld [vmem:[%s5095_s4] ss:$0 sm:$0xff] }
 0x20f   : > { %v1628_v14 = vadd.f32 1.0, %v4898_v30  ;;  %v1815_v63 = vmul.f32 %v1715_v61, %v5427_v49  ;;  %v1722_v15 = vmul.f32 0.5, %v1622_v29  ;;  %v1726_v54 = vmul.f32 0.5, %v1626_v5 }
 0x210   : > { %2396 = vmatprep.mubr.bf16.mxu1 %v1876_v42  ;;  %v1621_v22 = vadd.f32 1.0, %v4852_v47  ;;  %v1873_v19 = vpack.c.bf16 %v1817_v20, %v1813_v36  ;;  %v1819_v45 = vmul.f32 %v1719_v13, %v5428_v1  ;;  %v1724_v18 = vmul.f32 0.5, %v1624_v16 }
 0x211   : > { %v1728_v40 = vmul.f32 0.5, %v1628_v14  ;;  %v1822_v2 = vmul.f32 %v1722_v15, %v4770_v60  ;;  %v1826_v57 = vmul.f32 %v1726_v54, %v4807_v8  ;;  %v1625_v34 = vadd.f32 1.0, %v4884_v53  ;;  %v5429_v8 = vld [vmem:[#allocation24_spill] sm:$0xff] }
 0x212   : > { %v1721_v58 = vmul.f32 0.5, %v1621_v22  ;;  %v1875_v30 = vpack.c.bf16 %v1819_v45, %v1815_v63  ;;  %v1824_v23 = vmul.f32 %v1724_v18, %v4780_v9  ;;  %v1623_v43 = vadd.f32 1.0, %v4859_v33 }
 0x213   : > { %v1828_v0 = vmul.f32 %v1728_v40, %v4816_v27  ;;  %v1878_v47 = vpack.c.bf16 %v1826_v57, %v1822_v2  ;;  %v1725_v39 = vmul.f32 0.5, %v1625_v34  ;;  %v1627_v51 = vadd.f32 1.0, %v4890_v6 }
 0x214   : > { %2261 = vmatmul.mubr.bf16.gmra.mrb[92].mxu0 %v1873_v19  ;;  %v1723_v38 = vmul.f32 0.5, %v1623_v43  ;;  %v1630_v60 = vadd.f32 1.0, %v3202_v56  ;;  %v1632_v46 = vadd.f32 1.0, %v3204_v55  ;;  %v1821_v53 = vmul.f32 %v1721_v58, %v5429_v8 }
 0x215   : > { %v1880_v17 = vpack.c.bf16 %v1828_v0, %v1824_v23  ;;  %2268 = vmatprep.mubr.bf16.mxu0 %v1878_v47  ;;  %v1825_v37 = vmul.f32 %v1725_v39, %v4789_v4  ;;  %v1727_v62 = vmul.f32 0.5, %v1627_v51  ;;  %v1629_v33 = vadd.f32 1.0, %v4929_v59 }
 0x216   : > { %2397 = vmatmul.mubr.bf16.gmra.mrb[92].mxu1 %v1875_v30  ;;  %v1730_v9 = vmul.f32 0.5, %v1630_v60  ;;  %v1732_v27 = vmul.f32 0.5, %v1632_v46  ;;  %v1823_v6 = vmul.f32 %v1723_v38, %v5430_v11  ;;  %v1631_v48 = vadd.f32 1.0, %v4933_v25 }
 0x217   : > { %2404 = vmatprep.mubr.bf16.mxu1 %v1880_v17  ;;  %v1877_v28 = vpack.c.bf16 %v1825_v37, %v1821_v53  ;;  %v1827_v26 = vmul.f32 %v1727_v62, %v4798_v12  ;;  %v1729_v3 = vmul.f32 0.5, %v1629_v33 }
 0x218   : > { %v1830_v56 = vmul.f32 %v1730_v9, %v4866_v31  ;;  %v1832_v55 = vmul.f32 %v1732_v27, %v4876_v41  ;;  %v1731_v7 = vmul.f32 0.5, %v1631_v48 }
 0x219   : > { %v1879_v24 = vpack.c.bf16 %v1827_v26, %v1823_v6  ;;  %v1829_v59 = vmul.f32 %v1729_v3, %v4850_v52 }
 0x21a   : > { %v1882_v4 = vpack.c.bf16 %v1830_v56, %v1830_v56  ;;  %v1884_v10 = vpack.c.bf16 %v1832_v55, %v1832_v55  ;;  %v1831_v12 = vmul.f32 %v1731_v7, %v4857_v44 }
 0x21b   : > { %v1881_v31 = vpack.c.bf16 %v1829_v59, %v1829_v59 }
 0x21c   : > { %2269 = vmatmul.mubr.bf16.gmra.mrb[96].mxu0 %v1877_v28  ;;  %v1883_v41 = vpack.c.bf16 %v1831_v12, %v1831_v12 }
 0x21d   : > { %2276 = vmatprep.mubr.bf16.mxu0 %v1882_v4 }
 0x21e   : > { %2405 = vmatmul.mubr.bf16.gmra.mrb[96].mxu1 %v1879_v24 }
 0x21f   : > { %2412 = vmatprep.mubr.bf16.mxu1 %v1884_v10 }
 0x224   : > { %2277 = vmatmul.mubr.bf16.gmra.mrb[100].mxu0 %v1881_v31 }
 0x226   : > { %2413 = vmatmul.mubr.bf16.gmra.mrb[100].mxu1 %v1883_v41 }
 0x231   : > { %v2681_v25 = vpop.f32.mrb[52].mxu0 }
 0x232   : > { %v2682_v36 = vpop.f32.mrb[53].mxu0 }
 0x233   : > { %v2683_v35 = vadd.f32 %v2682_v36, %v2681_v25  ;;  %v2684_v32 = vpop.f32.mrb[54].mxu0 }
 0x234   : > { %v2685_v52 = vpop.f32.mrb[55].mxu0 }
 0x235   : > { %v2183_v44 = vadd.f32 %v2683_v35, %v4978_v50  ;;  %v2686_v61 = vadd.f32 %v2685_v52, %v2684_v32 }
 0x236   : > { %v2775_v42 = vpop.f32.mrb[52].mxu1 }
 0x237   : > { %v2776_v29 = vpop.f32.mrb[53].mxu1  ;;  %v2186_v20 = vadd.f32 %v2686_v61, %v4978_v50 }
 0x238   : > { %v2777_v5 = vadd.f32 %v2776_v29, %v2775_v42  ;;  %v2778_v21 = vpop.f32.mrb[54].mxu1 }
 0x239   : > { %v2779_v13 = vpop.f32.mrb[55].mxu1 }
 0x23a   : > { %v2319_v16 = vadd.f32 %v2777_v5, %v2183_v44  ;;  %v2780_v14 = vadd.f32 %v2779_v13, %v2778_v21 }
 0x23c   : > { %2420 = vst [vmem:[%s4984_s17] sm:$0xff] %v2319_v16  ;;  %v2322_v49 = vadd.f32 %v2780_v14, %v2186_v20 }
 0x23e   : > { %2421 = vst [vmem:[%s4984_s17 + $0x8] sm:$0xff] %v2322_v49 }
 0x249   : > { %v2687_v63 = vpop.f32.mrb[56].mxu0 }
 0x24a   : > { %v2688_v15 = vpop.f32.mrb[57].mxu0  ;;  %v2781_v54 = vpop.f32.mrb[56].mxu1 }
 0x24b   : > { %v2689_v22 = vadd.f32 %v2688_v15, %v2687_v63  ;;  %v2690_v19 = vpop.f32.mrb[58].mxu0  ;;  %v2782_v1 = vpop.f32.mrb[57].mxu1 }
 0x24c   : > { %v2691_v45 = vpop.f32.mrb[59].mxu0  ;;  %v2783_v40 = vadd.f32 %v2782_v1, %v2781_v54  ;;  %v2784_v2 = vpop.f32.mrb[58].mxu1 }
 0x24d   : > { %v2191_v18 = vadd.f32 %v2689_v22, %v4978_v50  ;;  %v2692_v57 = vadd.f32 %v2691_v45, %v2690_v19  ;;  %v2785_v34 = vpop.f32.mrb[59].mxu1 }
 0x24e   : > { %v2786_v23 = vadd.f32 %v2785_v34, %v2784_v2 }
 0x24f   : > { %v2327_v58 = vadd.f32 %v2783_v40, %v2191_v18  ;;  %v2194_v30 = vadd.f32 %v2692_v57, %v4978_v50 }
 0x251   : > { %2422 = vst [vmem:[%s4984_s17 + $0x10] sm:$0xff] %v2327_v58  ;;  %v2330_v0 = vadd.f32 %v2786_v23, %v2194_v30 }
 0x253   : > { %2423 = vst [vmem:[%s4984_s17 + $0x18] sm:$0xff] %v2330_v0 }
 0x25d   : > { %v2693_v43 = vpop.f32.mrb[60].mxu0 }
 0x25e   : > { %v2694_v39 = vpop.f32.mrb[61].mxu0 }
 0x25f   : > { %v2787_v47 = vpop.f32.mrb[60].mxu1  ;;  %v2695_v51 = vadd.f32 %v2694_v39, %v2693_v43  ;;  %v2696_v38 = vpop.f32.mrb[62].mxu0 }
 0x260   : > { %v2788_v17 = vpop.f32.mrb[61].mxu1  ;;  %v2697_v8 = vpop.f32.mrb[63].mxu0 }
 0x261   : > { %v2789_v60 = vadd.f32 %v2788_v17, %v2787_v47  ;;  %v2790_v46 = vpop.f32.mrb[62].mxu1  ;;  %v2199_v53 = vadd.f32 %v2695_v51, %v4978_v50  ;;  %v2698_v37 = vadd.f32 %v2697_v8, %v2696_v38 }
 0x262   : > { %v2791_v62 = vpop.f32.mrb[63].mxu1 }
 0x263   : > { %v2792_v9 = vadd.f32 %v2791_v62, %v2790_v46  ;;  %v2335_v27 = vadd.f32 %v2789_v60, %v2199_v53  ;;  %v2202_v33 = vadd.f32 %v2698_v37, %v4978_v50 }
 0x265   : > { %2424 = vst [vmem:[%s4984_s17 + $0x20] sm:$0xff] %v2335_v27  ;;  %v2338_v28 = vadd.f32 %v2792_v9, %v2202_v33 }
 0x267   : > { %2425 = vst [vmem:[%s4984_s17 + $0x28] sm:$0xff] %v2338_v28 }
 0x273   : > { %v2699_v11 = vpop.f32.mrb[64].mxu0 }
 0x274   : > { %v2793_v6 = vpop.f32.mrb[64].mxu1  ;;  %v2700_v26 = vpop.f32.mrb[65].mxu0 }
 0x275   : > { %v2701_v56 = vadd.f32 %v2700_v26, %v2699_v11  ;;  %v2794_v55 = vpop.f32.mrb[65].mxu1  ;;  %v2702_v48 = vpop.f32.mrb[66].mxu0 }
 0x276   : > { %v2795_v24 = vadd.f32 %v2794_v55, %v2793_v6  ;;  %v2796_v4 = vpop.f32.mrb[66].mxu1  ;;  %v2703_v3 = vpop.f32.mrb[67].mxu0 }
 0x277   : > { %v2207_v10 = vadd.f32 %v2701_v56, %v4978_v50  ;;  %v2704_v7 = vadd.f32 %v2703_v3, %v2702_v48  ;;  %v2797_v59 = vpop.f32.mrb[67].mxu1 }
 0x278   : > { %v2798_v12 = vadd.f32 %v2797_v59, %v2796_v4 }
 0x279   : > { %v2343_v31 = vadd.f32 %v2795_v24, %v2207_v10  ;;  %v2210_v41 = vadd.f32 %v2704_v7, %v4978_v50 }
 0x27b   : > { %2426 = vst [vmem:[%s4984_s17 + $0x30] sm:$0xff] %v2343_v31  ;;  %v2346_v25 = vadd.f32 %v2798_v12, %v2210_v41 }
 0x27d   : > { %2427 = vst [vmem:[%s4984_s17 + $0x38] sm:$0xff] %v2346_v25 }
 0x289   : > { %v2705_v36 = vpop.f32.mrb[68].mxu0 }
 0x28a   : > { %v2799_v35 = vpop.f32.mrb[68].mxu1  ;;  %v2706_v32 = vpop.f32.mrb[69].mxu0 }
 0x28b   : > { %v2707_v52 = vadd.f32 %v2706_v32, %v2705_v36  ;;  %v2800_v42 = vpop.f32.mrb[69].mxu1  ;;  %v2708_v44 = vpop.f32.mrb[70].mxu0 }
 0x28c   : > { %v2801_v61 = vadd.f32 %v2800_v42, %v2799_v35  ;;  %v2802_v29 = vpop.f32.mrb[70].mxu1  ;;  %v2709_v5 = vpop.f32.mrb[71].mxu0 }
 0x28d   : > { %v2215_v21 = vadd.f32 %v2707_v52, %v4978_v50  ;;  %v2710_v20 = vadd.f32 %v2709_v5, %v2708_v44  ;;  %v2803_v13 = vpop.f32.mrb[71].mxu1 }
 0x28e   : > { %v2804_v16 = vadd.f32 %v2803_v13, %v2802_v29 }
 0x28f   : > { %v2351_v14 = vadd.f32 %v2801_v61, %v2215_v21  ;;  %v2218_v49 = vadd.f32 %v2710_v20, %v4978_v50 }
 0x291   : > { %2428 = vst [vmem:[%s4984_s17 + $0x40] sm:$0xff] %v2351_v14  ;;  %v2354_v63 = vadd.f32 %v2804_v16, %v2218_v49 }
 0x293   : > { %2429 = vst [vmem:[%s4984_s17 + $0x48] sm:$0xff] %v2354_v63 }
 0x29e   : > { %v2711_v15 = vpop.f32.mrb[72].mxu0 }
 0x29f   : > { %v2805_v54 = vpop.f32.mrb[72].mxu1  ;;  %v2712_v22 = vpop.f32.mrb[73].mxu0 }
 0x2a0   : > { %v2713_v19 = vadd.f32 %v2712_v22, %v2711_v15  ;;  %v2806_v1 = vpop.f32.mrb[73].mxu1  ;;  %v2714_v45 = vpop.f32.mrb[74].mxu0 }
 0x2a1   : > { %v2807_v18 = vadd.f32 %v2806_v1, %v2805_v54  ;;  %v2808_v40 = vpop.f32.mrb[74].mxu1  ;;  %v2715_v2 = vpop.f32.mrb[75].mxu0 }
 0x2a2   : > { %v2223_v57 = vadd.f32 %v2713_v19, %v4978_v50  ;;  %v2716_v34 = vadd.f32 %v2715_v2, %v2714_v45  ;;  %v2809_v58 = vpop.f32.mrb[75].mxu1 }
 0x2a3   : > { %v2810_v30 = vadd.f32 %v2809_v58, %v2808_v40 }
 0x2a4   : > { %v2359_v23 = vadd.f32 %v2807_v18, %v2223_v57  ;;  %v2226_v0 = vadd.f32 %v2716_v34, %v4978_v50 }
 0x2a6   : > { %2430 = vst [vmem:[%s4984_s17 + $0x50] sm:$0xff] %v2359_v23  ;;  %v2362_v43 = vadd.f32 %v2810_v30, %v2226_v0 }
 0x2a8   : > { %2431 = vst [vmem:[%s4984_s17 + $0x58] sm:$0xff] %v2362_v43 }
 0x2b4   : > { %v2717_v47 = vpop.f32.mrb[76].mxu0 }
 0x2b5   : > { %v2811_v39 = vpop.f32.mrb[76].mxu1  ;;  %v2718_v51 = vpop.f32.mrb[77].mxu0 }
 0x2b6   : > { %v2719_v17 = vadd.f32 %v2718_v51, %v2717_v47  ;;  %v2812_v38 = vpop.f32.mrb[77].mxu1  ;;  %v2720_v60 = vpop.f32.mrb[78].mxu0 }
 0x2b7   : > { %v2813_v46 = vadd.f32 %v2812_v38, %v2811_v39  ;;  %v2814_v8 = vpop.f32.mrb[78].mxu1  ;;  %v2721_v53 = vpop.f32.mrb[79].mxu0 }
 0x2b8   : > { %v2231_v37 = vadd.f32 %v2719_v17, %v4978_v50  ;;  %v2722_v62 = vadd.f32 %v2721_v53, %v2720_v60  ;;  %v2815_v9 = vpop.f32.mrb[79].mxu1 }
 0x2b9   : > { %v2816_v27 = vadd.f32 %v2815_v9, %v2814_v8 }
 0x2ba   : > { %v2367_v33 = vadd.f32 %v2813_v46, %v2231_v37  ;;  %v2234_v28 = vadd.f32 %v2722_v62, %v4978_v50 }
 0x2bc   : > { %2432 = vst [vmem:[%s4984_s17 + $0x60] sm:$0xff] %v2367_v33  ;;  %v2370_v11 = vadd.f32 %v2816_v27, %v2234_v28 }
 0x2be   : > { %2433 = vst [vmem:[%s4984_s17 + $0x68] sm:$0xff] %v2370_v11 }
 0x2c9   : > { %v2723_v6 = vpop.f32.mrb[80].mxu0 }
 0x2ca   : > { %v2724_v56 = vpop.f32.mrb[81].mxu0 }
 0x2cb   : > { %v2817_v26 = vpop.f32.mrb[80].mxu1  ;;  %v2725_v55 = vadd.f32 %v2724_v56, %v2723_v6  ;;  %v2726_v24 = vpop.f32.mrb[82].mxu0 }
 0x2cc   : > { %v2818_v48 = vpop.f32.mrb[81].mxu1  ;;  %v2727_v10 = vpop.f32.mrb[83].mxu0 }
 0x2cd   : > { %v2819_v4 = vadd.f32 %v2818_v48, %v2817_v26  ;;  %v2820_v3 = vpop.f32.mrb[82].mxu1  ;;  %v2239_v7 = vadd.f32 %v2725_v55, %v4978_v50  ;;  %v2728_v59 = vadd.f32 %v2727_v10, %v2726_v24 }
 0x2ce   : > { %v2821_v12 = vpop.f32.mrb[83].mxu1 }
 0x2cf   : > { %v2822_v31 = vadd.f32 %v2821_v12, %v2820_v3  ;;  %v2375_v41 = vadd.f32 %v2819_v4, %v2239_v7  ;;  %v2242_v25 = vadd.f32 %v2728_v59, %v4978_v50 }
 0x2d1   : > { %2434 = vst [vmem:[%s4984_s17 + $0x70] sm:$0xff] %v2375_v41  ;;  %v2378_v36 = vadd.f32 %v2822_v31, %v2242_v25 }
 0x2d3   : > { %2435 = vst [vmem:[%s4984_s17 + $0x78] sm:$0xff] %v2378_v36 }
 0x2d7   : > { %v2729_v35 = vpop.f32.mrb[84].mxu0 }
 0x2d8   : > { %v2730_v32 = vpop.f32.mrb[85].mxu0 }
 0x2d9   : > { %v2823_v52 = vpop.f32.mrb[84].mxu1  ;;  %v2731_v42 = vadd.f32 %v2730_v32, %v2729_v35  ;;  %v2732_v44 = vpop.f32.mrb[86].mxu0 }
 0x2da   : > { %v2824_v61 = vpop.f32.mrb[85].mxu1  ;;  %v2733_v29 = vpop.f32.mrb[87].mxu0 }
 0x2db   : > { %v2247_v5 = vadd.f32 %v2731_v42, %v4978_v50  ;;  %v2825_v21 = vadd.f32 %v2824_v61, %v2823_v52  ;;  %v2826_v20 = vpop.f32.mrb[86].mxu1  ;;  %v2734_v13 = vadd.f32 %v2733_v29, %v2732_v44 }
 0x2dc   : > { %v2827_v16 = vpop.f32.mrb[87].mxu1 }
 0x2dd   : > { %v2383_v14 = vadd.f32 %v2825_v21, %v2247_v5  ;;  %v2250_v49 = vadd.f32 %v2734_v13, %v4978_v50  ;;  %v2828_v63 = vadd.f32 %v2827_v16, %v2826_v20 }
 0x2df   : > { %2436 = vst [vmem:[%s4984_s17 + $0x80] sm:$0xff] %v2383_v14  ;;  %v2386_v15 = vadd.f32 %v2828_v63, %v2250_v49  ;;  %v2735_v54 = vpop.f32.mrb[88].mxu0 }
 0x2e0   : > { %v2736_v22 = vpop.f32.mrb[89].mxu0 }
 0x2e1   : > { %2437 = vst [vmem:[%s4984_s17 + $0x88] sm:$0xff] %v2386_v15  ;;  %v2829_v19 = vpop.f32.mrb[88].mxu1  ;;  %v2737_v1 = vadd.f32 %v2736_v22, %v2735_v54  ;;  %v2738_v45 = vpop.f32.mrb[90].mxu0 }
 0x2e2   : > { %v2830_v18 = vpop.f32.mrb[89].mxu1  ;;  %v2739_v40 = vpop.f32.mrb[91].mxu0 }
 0x2e3   : > { %v2255_v2 = vadd.f32 %v2737_v1, %v4978_v50  ;;  %v2831_v57 = vadd.f32 %v2830_v18, %v2829_v19  ;;  %v2832_v34 = vpop.f32.mrb[90].mxu1  ;;  %v2740_v58 = vadd.f32 %v2739_v40, %v2738_v45 }
 0x2e4   : > { %v2833_v30 = vpop.f32.mrb[91].mxu1 }
 0x2e5   : > { %v2391_v23 = vadd.f32 %v2831_v57, %v2255_v2  ;;  %v2258_v0 = vadd.f32 %v2740_v58, %v4978_v50  ;;  %v2834_v43 = vadd.f32 %v2833_v30, %v2832_v34 }
 0x2e7   : > { %2438 = vst [vmem:[%s4984_s17 + $0x90] sm:$0xff] %v2391_v23  ;;  %v2394_v47 = vadd.f32 %v2834_v43, %v2258_v0  ;;  %v2741_v39 = vpop.f32.mrb[92].mxu0 }
 0x2e8   : > { %v2742_v51 = vpop.f32.mrb[93].mxu0 }
 0x2e9   : > { %2439 = vst [vmem:[%s4984_s17 + $0x98] sm:$0xff] %v2394_v47  ;;  %v2835_v17 = vpop.f32.mrb[92].mxu1  ;;  %v2743_v38 = vadd.f32 %v2742_v51, %v2741_v39  ;;  %v2744_v60 = vpop.f32.mrb[94].mxu0 }
 0x2ea   : > { %v2836_v46 = vpop.f32.mrb[93].mxu1  ;;  %v2745_v8 = vpop.f32.mrb[95].mxu0 }
 0x2eb   : > { %v2263_v53 = vadd.f32 %v2743_v38, %v4978_v50  ;;  %v2837_v37 = vadd.f32 %v2836_v46, %v2835_v17  ;;  %v2838_v62 = vpop.f32.mrb[94].mxu1  ;;  %v2746_v9 = vadd.f32 %v2745_v8, %v2744_v60 }
 0x2ec   : > { %v2839_v27 = vpop.f32.mrb[95].mxu1 }
 0x2ed   : > { %v2399_v33 = vadd.f32 %v2837_v37, %v2263_v53  ;;  %v2266_v28 = vadd.f32 %v2746_v9, %v4978_v50  ;;  %v2840_v11 = vadd.f32 %v2839_v27, %v2838_v62 }
 0x2ef   : > { %2440 = vst [vmem:[%s4984_s17 + $0xa0] sm:$0xff] %v2399_v33  ;;  %v2402_v6 = vadd.f32 %v2840_v11, %v2266_v28  ;;  %v2747_v26 = vpop.f32.mrb[96].mxu0 }
 0x2f0   : > { %v2748_v56 = vpop.f32.mrb[97].mxu0 }
 0x2f1   : > { %2441 = vst [vmem:[%s4984_s17 + $0xa8] sm:$0xff] %v2402_v6  ;;  %v2841_v55 = vpop.f32.mrb[96].mxu1  ;;  %v2749_v48 = vadd.f32 %v2748_v56, %v2747_v26  ;;  %v2750_v24 = vpop.f32.mrb[98].mxu0 }
 0x2f2   : > { %v2842_v4 = vpop.f32.mrb[97].mxu1  ;;  %v2751_v3 = vpop.f32.mrb[99].mxu0 }
 0x2f3   : > { %v2271_v10 = vadd.f32 %v2749_v48, %v4978_v50  ;;  %v2843_v7 = vadd.f32 %v2842_v4, %v2841_v55  ;;  %v2844_v59 = vpop.f32.mrb[98].mxu1  ;;  %v2752_v12 = vadd.f32 %v2751_v3, %v2750_v24 }
 0x2f4   : > { %v2845_v31 = vpop.f32.mrb[99].mxu1 }
 0x2f5   : > { %v2407_v41 = vadd.f32 %v2843_v7, %v2271_v10  ;;  %v2274_v25 = vadd.f32 %v2752_v12, %v4978_v50  ;;  %v2846_v36 = vadd.f32 %v2845_v31, %v2844_v59 }
 0x2f7   : > { %2442 = vst [vmem:[%s4984_s17 + $0xb0] sm:$0xff] %v2407_v41  ;;  %v2410_v35 = vadd.f32 %v2846_v36, %v2274_v25  ;;  %v2753_v32 = vpop.f32.mrb[100].mxu0 }
 0x2f8   : > { %v2754_v52 = vpop.f32.mrb[101].mxu0 }
 0x2f9   : > { %2443 = vst [vmem:[%s4984_s17 + $0xb8] sm:$0xff] %v2410_v35  ;;  %v2847_v42 = vpop.f32.mrb[100].mxu1  ;;  %v2755_v44 = vadd.f32 %v2754_v52, %v2753_v32  ;;  %v2756_v61 = vpop.f32.mrb[102].mxu0 }
 0x2fa   : > { %v2848_v29 = vpop.f32.mrb[101].mxu1  ;;  %v2757_v5 = vpop.f32.mrb[103].mxu0 }
 0x2fb   : > { %v2279_v21 = vadd.f32 %v2755_v44, %v4978_v50  ;;  %v2849_v20 = vadd.f32 %v2848_v29, %v2847_v42  ;;  %v2850_v13 = vpop.f32.mrb[102].mxu1 }
 0x2fc   : > { %v2851_v16 = vpop.f32.mrb[103].mxu1 }
 0x2fd   : > { %v2415_v14 = vadd.f32 %v2849_v20, %v2279_v21 }
 0x2ff   : > { %2444 = vst [vmem:[%s4984_s17 + $0xc0] sm:$0xff] %v2415_v14 }
 0x300   : > { %3218 = shalt.err (!%p3215_p5)
}
 0x301   : > { %s3219_s12 = scalar_lea.hbm %s5040_s29, 3200  ;;  %s3223_s15 = scalar_lea.hbm %s5096_s5, 6400 }
 0x302   : > { %p3220_p6 = scmp.ne.s32.totalorder %s5040_s29, %s3219_s12  ;;  %p3224_p10 = scmp.lt.u32.totalorder %s5040_s29, %s5096_s5 }
 0x303   : > { %p3225_p11 = scmp.lt.u32.totalorder %s3223_s15, %s3219_s12  ;;  %p3227_p13 = scmp.lt.u32.totalorder %s3219_s12, %s5040_s29 }
 0x304   : > { %p3221_p7 = pnand %p3220_p6, %p3359_p4 }
 0x305   : > { %p3226_p12 = por %p3225_p11, %p3224_p10 }
 0x306   : > { %p3222_p9 = pneg %p3221_p7 }
 0x307   : > { %p3228_p0 = por %p3227_p13, %p3226_p12 }
 0x309   : > { %p3229_p1 = pnand %p3228_p0, %p3222_p9 }
 0x30b   : > { %3232 = shalt.err (!%p3229_p1)
}
 0x30c   : > { %s3287_s24 = smov 128   ;;  %s3288_s25 = smov 8  }
 0x30d   : > { %2854 = dma.vmem_to_hbm [thread:$0]  (%p3359_p4), %s5035_s8, 3200, %s5040_s29, %s5045_s21, %s3287_s24, %s3287_s24, %s3288_s25  }
 0x30e PF: > { %p2860_p2 = scmp.ge.s32.totalorder %s3283_s23, 2  ;;  %s2474_s27 = sand.u32 1, %s3263_s18  }
 0x30f   : > { %s2475_s7 = scalar_lea.sflag [#allocation3], %s2474_s27 }
 0x310   : > { %p2857_p3 = pnand %p2860_p2, %p3366_p8 }
 0x312   : > { %3258 = dma.done.wait (!%p2857_p3), %s2475_s7, 3200  }
 0x313   : > { %3260 = vsyncadd (!%p2857_p3), %s2475_s7, 4294964096  ;;  %s18_s23 = sadd.s32 1, %s3283_s23   ;;  %s5431_s18 = smov %s3267_s19 }
 0x314   : > { %p15_p5 = scmp.ge.s32.totalorder %s18_s23, 4   ;;  %s5432_s19 = smov %s3271_s20 }
 0x315   : > { %s5433_s20 = smov %s3372_s6  ;;  %s5434_s21 = smov %s3279_s22 }
 0x316   : > { %s5435_s22 = smov %s5437_s26  ;;  %17 = sbr.rel (!%p15_p5) target bundleno = 4 (0x4), region = 84 }
 0x31d   :  { %2480 = vsyncpa [#allocation3], 1 }
 0x31e   :  { %2482 = vsyncpa [#allocation3 + $0x1], 1 }

</bundles_post_ra>
